<compile_context>
chip_gen: v7x
topology: tpu7x:2x2x1
jax: 0.10.0
libtpu: 0.0.40
codegen_flags: <defaults>
</compile_context>

<pallas_src>
import functools
import math

import jax
import jax.numpy as jnp
from jax.experimental import pallas as pl
from jax.experimental.pallas import tpu as pltpu


DEFAULT_ROW_TILE = 256    # rows per grid step for row-tiled dense kernels
DEFAULT_Q_TILE = 128      # query rows per grid step for attention kernels


# ----------------------------------------------------------------------------
# In-kernel helpers
# ----------------------------------------------------------------------------
def _sigmoid(x):
    # 1/(1+e^-x) with the divide on the EUP slot (approximate reciprocal).
    return pl.reciprocal(1.0 + jnp.exp(-x), approx=True)


def _layernorm(x, g, b):
    mu = jnp.mean(x, axis=-1, keepdims=True)
    var = jnp.mean(jnp.square(x - mu), axis=-1, keepdims=True)
    return (x - mu) * jax.lax.rsqrt(var + 1e-5) * g + b


# ----------------------------------------------------------------------------
# Pallas kernels
# ----------------------------------------------------------------------------
def _linear_kernel(x_ref, w_ref, b_ref, o_ref, *, activation):
    x = x_ref[...].astype(jnp.bfloat16)
    acc = jnp.dot(x, w_ref[...], preferred_element_type=jnp.float32) + b_ref[...]
    if activation == "relu":
        acc = jnp.maximum(acc, 0.0)
    o_ref[...] = acc


def _layernorm_kernel(x_ref, g_ref, b_ref, o_ref):
    o_ref[...] = _layernorm(x_ref[...], g_ref[...], b_ref[...])


def _ln_linear_kernel(x_ref, g_ref, b_ref, w_ref, wb_ref, o_ref):
    # Fused LayerNorm + (wide) linear projection.
    xn = _layernorm(x_ref[...], g_ref[...], b_ref[...]).astype(jnp.bfloat16)
    o_ref[...] = jnp.dot(xn, w_ref[...],
                         preferred_element_type=jnp.float32) + wb_ref[...]


def _ffn_kernel(x_ref, g_ref, b_ref, w1_ref, b1_ref, w2_ref, b2_ref, o_ref):
    # LayerNorm -> Linear(D,4D) -> Swish -> Linear(4D,D), fused, row-tiled.
    xn = _layernorm(x_ref[...], g_ref[...], b_ref[...]).astype(jnp.bfloat16)
    h = jnp.dot(xn, w1_ref[...], preferred_element_type=jnp.float32) + b1_ref[...]
    h = h * _sigmoid(h)                                   # Swish
    o_ref[...] = jnp.dot(h.astype(jnp.bfloat16), w2_ref[...],
                         preferred_element_type=jnp.float32) + b2_ref[...]


def _ln_pw_glu_kernel(x_ref, g_ref, b_ref, wa_ref, ba_ref, wb_ref, bb_ref, o_ref):
    # LayerNorm + pointwise Conv1d (C -> 2C) + GLU; the 2C weight is split into
    # two lane-aligned halves so no mid-tensor lane slicing is needed.
    xn = _layernorm(x_ref[...], g_ref[...], b_ref[...]).astype(jnp.bfloat16)
    a = jnp.dot(xn, wa_ref[...], preferred_element_type=jnp.float32) + ba_ref[...]
    g = jnp.dot(xn, wb_ref[...], preferred_element_type=jnp.float32) + bb_ref[...]
    o_ref[...] = a * _sigmoid(g)


def _dw_bn_swish_pw_res_kernel(xpad_ref, res_ref, dw_ref, sc_ref, sh_ref,
                               w2_ref, b2_ref, o_ref, *, K, T):
    # Depthwise Conv1d ('SAME', pre-padded) + BatchNorm(eval) + Swish +
    # pointwise Conv1d (w2) + residual add, all fused (one HBM pass).
    x = xpad_ref[0]                                        # (T + K - 1, C)
    C = x.shape[1]
    acc = jnp.zeros((T, C), jnp.float32)
    for k in range(K):                                     # K is tiny and static
        acc = acc + x[k:k + T, :] * dw_ref[k:k + 1, :]
    y = acc * sc_ref[...] + sh_ref[...]                    # BatchNorm (running stats)
    y = y * _sigmoid(y)                                    # Swish
    y = jnp.dot(y.astype(jnp.bfloat16), w2_ref[...],       # pointwise conv 2
                preferred_element_type=jnp.float32) + b2_ref[...]
    o_ref[0] = y + res_ref[0]                              # fused residual add


def _pos_score_kernel(q_ref, p_ref, v_ref, o_ref):
    # (q + v_bias) @ P^T for all heads at once (batched einsum, no head loop).
    q = (q_ref[0] + v_ref[...]).astype(jnp.bfloat16)       # (H, tq, Dh)
    p = p_ref[...].astype(jnp.bfloat16)                    # (H, S, Dh)
    o_ref[0] = jnp.einsum("hqd,hkd->hqk", q, p,
                          preferred_element_type=jnp.float32)


def _attn_core_kernel(q_ref, k_ref, v_ref, ps_ref, u_ref, o_ref, *, scale):
    # content scores + shifted pos scores + softmax + attn@V fused; the content
    # score tensor never leaves VMEM.
    q = (q_ref[0] + u_ref[...]).astype(jnp.bfloat16)       # (H, tq, Dh)
    k = k_ref[0].astype(jnp.bfloat16)                      # (H, S, Dh)
    content = jnp.einsum("hqd,hkd->hqk", q, k,
                         preferred_element_type=jnp.float32)
    s = (content + ps_ref[0]) * scale
    s = s - jnp.max(s, axis=-1, keepdims=True)
    e = jnp.exp(s)
    a = e * pl.reciprocal(jnp.sum(e, axis=-1, keepdims=True), approx=True)
    o_ref[0] = jnp.einsum("hqk,hkd->hqd", a.astype(jnp.bfloat16),
                          v_ref[0].astype(jnp.bfloat16),
                          preferred_element_type=jnp.float32)


def _mean_classify_kernel(x_ref, w_ref, enc_ref, out_ref):
    # Vectorized mean over time + bias-free classification matmul.
    xm = jnp.mean(x_ref[...], axis=1)                      # (B, D)
    enc_ref[...] = xm
    out_ref[...] = jnp.dot(xm, w_ref[...], preferred_element_type=jnp.float32)
    # TODO(synk): num_classes is tiny (<128 lanes); output stays a masked store.


# ----------------------------------------------------------------------------
# pallas_call wrappers (row-tiled grids, weights pinned, bf16 weights)
# ----------------------------------------------------------------------------
def _row_tile(M, tm):
    tm = min(tm, M)
    return tm, pl.cdiv(M, tm)


def linear(x, w, b=None, activation="none", tm=DEFAULT_ROW_TILE):
    M, K = x.shape
    N = w.shape[1]
    tm, gm = _row_tile(M, tm)
    if b is None:
        b = jnp.zeros((N,), jnp.float32)
    kern = functools.partial(_linear_kernel, activation=activation)
    return pl.pallas_call(
        kern,
        out_shape=jax.ShapeDtypeStruct((M, N), jnp.float32),
        grid=(gm,),
        in_specs=[pl.BlockSpec((tm, K), lambda i: (i, 0)),
                  pl.BlockSpec((K, N), lambda i: (0, 0)),
                  pl.BlockSpec((1, N), lambda i: (0, 0))],
        out_specs=pl.BlockSpec((tm, N), lambda i: (i, 0)),
        compiler_params=pltpu.CompilerParams(dimension_semantics=("parallel",)),
    )(x, w.astype(jnp.bfloat16), b.reshape(1, N))


def layernorm(x, gamma, beta, tm=DEFAULT_ROW_TILE):
    M, D = x.shape
    tm, gm = _row_tile(M, tm)
    return pl.pallas_call(
        _layernorm_kernel,
        out_shape=jax.ShapeDtypeStruct((M, D), jnp.float32),
        grid=(gm,),
        in_specs=[pl.BlockSpec((tm, D), lambda i: (i, 0)),
                  pl.BlockSpec((1, D), lambda i: (0, 0)),
                  pl.BlockSpec((1, D), lambda i: (0, 0))],
        out_specs=pl.BlockSpec((tm, D), lambda i: (i, 0)),
        compiler_params=pltpu.CompilerParams(dimension_semantics=("parallel",)),
    )(x, gamma.reshape(1, D), beta.reshape(1, D))


def ln_linear(x, gamma, beta, w, b, tm=DEFAULT_ROW_TILE):
    M, D = x.shape
    N = w.shape[1]
    tm, gm = _row_tile(M, tm)
    return pl.pallas_call(
        _ln_linear_kernel,
        out_shape=jax.ShapeDtypeStruct((M, N), jnp.float32),
        grid=(gm,),
        in_specs=[pl.BlockSpec((tm, D), lambda i: (i, 0)),
                  pl.BlockSpec((1, D), lambda i: (0, 0)),
                  pl.BlockSpec((1, D), lambda i: (0, 0)),
                  pl.BlockSpec((D, N), lambda i: (0, 0)),
                  pl.BlockSpec((1, N), lambda i: (0, 0))],
        out_specs=pl.BlockSpec((tm, N), lambda i: (i, 0)),
        compiler_params=pltpu.CompilerParams(dimension_semantics=("parallel",)),
    )(x, gamma.reshape(1, D), beta.reshape(1, D),
      w.astype(jnp.bfloat16), b.reshape(1, N))


def ffn(x, p, tm=DEFAULT_ROW_TILE):
    M, D = x.shape
    DH = p["w1"].shape[1]
    tm, gm = _row_tile(M, tm)
    return pl.pallas_call(
        _ffn_kernel,
        out_shape=jax.ShapeDtypeStruct((M, D), jnp.float32),
        grid=(gm,),
        in_specs=[pl.BlockSpec((tm, D), lambda i: (i, 0)),
                  pl.BlockSpec((1, D), lambda i: (0, 0)),
                  pl.BlockSpec((1, D), lambda i: (0, 0)),
                  pl.BlockSpec((D, DH), lambda i: (0, 0)),
                  pl.BlockSpec((1, DH), lambda i: (0, 0)),
                  pl.BlockSpec((DH, D), lambda i: (0, 0)),
                  pl.BlockSpec((1, D), lambda i: (0, 0))],
        out_specs=pl.BlockSpec((tm, D), lambda i: (i, 0)),
        compiler_params=pltpu.CompilerParams(dimension_semantics=("parallel",)),
    )(x, p["gamma"].reshape(1, D), p["beta"].reshape(1, D),
      p["w1"].astype(jnp.bfloat16), p["b1"].reshape(1, DH),
      p["w2"].astype(jnp.bfloat16), p["b2"].reshape(1, D))


def ln_pw_glu(x, p, tm=DEFAULT_ROW_TILE):
    M, D = x.shape
    C = p["w1a"].shape[1]
    tm, gm = _row_tile(M, tm)
    return pl.pallas_call(
        _ln_pw_glu_kernel,
        out_shape=jax.ShapeDtypeStruct((M, C), jnp.float32),
        grid=(gm,),
        in_specs=[pl.BlockSpec((tm, D), lambda i: (i, 0)),
                  pl.BlockSpec((1, D), lambda i: (0, 0)),
                  pl.BlockSpec((1, D), lambda i: (0, 0)),
                  pl.BlockSpec((D, C), lambda i: (0, 0)),
                  pl.BlockSpec((1, C), lambda i: (0, 0)),
                  pl.BlockSpec((D, C), lambda i: (0, 0)),
                  pl.BlockSpec((1, C), lambda i: (0, 0))],
        out_specs=pl.BlockSpec((tm, C), lambda i: (i, 0)),
        compiler_params=pltpu.CompilerParams(dimension_semantics=("parallel",)),
    )(x, p["gamma"].reshape(1, D), p["beta"].reshape(1, D),
      p["w1a"].astype(jnp.bfloat16), p["b1a"].reshape(1, C),
      p["w1b"].astype(jnp.bfloat16), p["b1b"].reshape(1, C))


def dwconv_bn_swish_pw_res(xpad, res, dw, bn_scale, bn_shift, w2, b2, T):
    B, Tp, C = xpad.shape
    K = dw.shape[0]
    kern = functools.partial(_dw_bn_swish_pw_res_kernel, K=K, T=T)
    return pl.pallas_call(
        kern,
        out_shape=jax.ShapeDtypeStruct((B, T, C), jnp.float32),
        grid=(B,),
        in_specs=[pl.BlockSpec((1, Tp, C), lambda b: (b, 0, 0)),
                  pl.BlockSpec((1, T, C), lambda b: (b, 0, 0)),
                  pl.BlockSpec((K, C), lambda b: (0, 0)),
                  pl.BlockSpec((1, C), lambda b: (0, 0)),
                  pl.BlockSpec((1, C), lambda b: (0, 0)),
                  pl.BlockSpec((C, C), lambda b: (0, 0)),
                  pl.BlockSpec((1, C), lambda b: (0, 0))],
        out_specs=pl.BlockSpec((1, T, C), lambda b: (b, 0, 0)),
        compiler_params=pltpu.CompilerParams(dimension_semantics=("parallel",)),
    )(xpad, res, dw, bn_scale.reshape(1, C), bn_shift.reshape(1, C),
      w2.astype(jnp.bfloat16), b2.reshape(1, C))


def pos_scores(qh, ph, v_bias, tq=DEFAULT_Q_TILE):
    B, H, S, Dh = qh.shape
    tq = min(tq, S)
    gq = pl.cdiv(S, tq)
    return pl.pallas_call(
        _pos_score_kernel,
        out_shape=jax.ShapeDtypeStruct((B, H, S, S), jnp.float32),
        grid=(B, gq),
        in_specs=[pl.BlockSpec((1, H, tq, Dh), lambda b, t: (b, 0, t, 0)),
                  pl.BlockSpec((H, S, Dh), lambda b, t: (0, 0, 0)),
                  pl.BlockSpec((H, 1, Dh), lambda b, t: (0, 0, 0))],
        out_specs=pl.BlockSpec((1, H, tq, S), lambda b, t: (b, 0, t, 0)),
        compiler_params=pltpu.CompilerParams(
            dimension_semantics=("parallel", "parallel")),
    )(qh, ph, v_bias.reshape(H, 1, Dh))


def attn_core(qh, kh, vh, pos_sc, u_bias, scale, tq=DEFAULT_Q_TILE):
    B, H, S, Dh = qh.shape
    tq = min(tq, S)
    gq = pl.cdiv(S, tq)
    kern = functools.partial(_attn_core_kernel, scale=scale)
    return pl.pallas_call(
        kern,
        out_shape=jax.ShapeDtypeStruct((B, H, S, Dh), jnp.float32),
        grid=(B, gq),
        in_specs=[pl.BlockSpec((1, H, tq, Dh), lambda b, t: (b, 0, t, 0)),
                  pl.BlockSpec((1, H, S, Dh), lambda b, t: (b, 0, 0, 0)),
                  pl.BlockSpec((1, H, S, Dh), lambda b, t: (b, 0, 0, 0)),
                  pl.BlockSpec((1, H, tq, S), lambda b, t: (b, 0, t, 0)),
                  pl.BlockSpec((H, 1, Dh), lambda b, t: (0, 0, 0))],
        out_specs=pl.BlockSpec((1, H, tq, Dh), lambda b, t: (b, 0, t, 0)),
        compiler_params=pltpu.CompilerParams(
            dimension_semantics=("parallel", "parallel")),
    )(qh, kh, vh, pos_sc, u_bias.reshape(H, 1, Dh))


def mean_classify(x, wc):
    B, S, D = x.shape
    NC = wc.shape[1]
    return pl.pallas_call(
        _mean_classify_kernel,
        out_shape=(jax.ShapeDtypeStruct((B, D), jnp.float32),
                   jax.ShapeDtypeStruct((B, NC), jnp.float32)),
        grid=(1,),
        in_specs=[pl.BlockSpec((B, S, D), lambda i: (0, 0, 0)),
                  pl.BlockSpec((D, NC), lambda i: (0, 0))],
        out_specs=(pl.BlockSpec((B, D), lambda i: (0, 0)),
                   pl.BlockSpec((B, NC), lambda i: (0, 0))),
    )(x, wc)


# ----------------------------------------------------------------------------
# Plain-JAX glue (reshapes, padding, im2col, positional encoding, rel-shift)
# ----------------------------------------------------------------------------
def positional_encoding(length, d_model):
    position = jnp.arange(length, dtype=jnp.float32)[:, None]
    div = jnp.exp(jnp.arange(0, d_model, 2, dtype=jnp.float32)
                  * (-math.log(10000.0) / d_model))
    pe = jnp.zeros((length, d_model), jnp.float32)
    pe = pe.at[:, 0::2].set(jnp.sin(position * div))
    pe = pe.at[:, 1::2].set(jnp.cos(position * div))
    return pe


def relative_shift(pos_score):
    # Exact port of RelativeMultiHeadAttentionModule._relative_shift (XLA glue).
    B, H, S1, S2 = pos_score.shape
    zeros = jnp.zeros((B, H, S1, 1), pos_score.dtype)
    padded = jnp.concatenate([zeros, pos_score], axis=-1)
    padded = padded.reshape(B, H, S2 + 1, S1)
    return padded[:, :, 1:].reshape(B, H, S1, S2)


def extract_patches(x, kh=3, kw=3, stride=2):
    # (B, H, W, Cin) -> (B, Ho, Wo, Cin*kh*kw); flat index = c*kh*kw + i*kw + j
    B, Hh, W, Cin = x.shape
    Ho = (Hh - kh) // stride + 1
    Wo = (W - kw) // stride + 1
    cols = []
    for c in range(Cin):
        for i in range(kh):
            for j in range(kw):
                cols.append(x[:, i:i + stride * (Ho - 1) + 1:stride,
                              j:j + stride * (Wo - 1) + 1:stride, c])
    return jnp.stack(cols, axis=-1)


# ----------------------------------------------------------------------------
# Model forward (composition of Pallas kernels)
# ----------------------------------------------------------------------------
def conv_subsample(params, x):
    B, T, F = x.shape
    p1 = extract_patches(x[..., None])                              # (B,T1,F1,9)
    _, T1, F1, P1 = p1.shape
    y1 = linear(p1.reshape(B * T1 * F1, P1),
                params["conv1_w"], params["conv1_b"], activation="relu")
    y1 = y1.reshape(B, T1, F1, -1)                                  # (B,T1,F1,E)
    p2 = extract_patches(y1)                                        # (B,T2,F2,E*9)
    _, T2, F2, P2 = p2.shape
    y2 = linear(p2.reshape(B * T2 * F2, P2),
                params["conv2_w"], params["conv2_b"], activation="relu")
    y2 = y2.reshape(B, T2, F2, -1)                                  # (B,T2,F2,E)
    # PyTorch: (B,E,T2,F2).permute(0,2,1,3).view(B,T2,E*F2) -> channel-major flatten
    y2 = jnp.transpose(y2, (0, 1, 3, 2)).reshape(B, T2, -1)
    return y2


def mhsa(p, x, pe, *, num_heads):
    B, S, D = x.shape
    H = num_heads
    Dh = D // H
    # Fused LayerNorm + concatenated QKV projection (single wide MXU matmul).
    qkv = ln_linear(x.reshape(B * S, D), p["gamma"], p["beta"],
                    p["wqkv"], p["bqkv"])                           # (B*S, 3D)
    q, k, v = qkv[:, :D], qkv[:, D:2 * D], qkv[:, 2 * D:]
    # Positional projection is batch-independent -> compute once on (S, D).
    pp = linear(pe, p["wp"], None)

    def to_heads(t):
        return t.reshape(B, S, H, Dh).transpose(0, 2, 1, 3)

    qh, kh, vh = map(to_heads, (q, k, v))
    ph = pp.reshape(S, H, Dh).transpose(1, 0, 2)                    # (H, S, Dh)

    pos_sc = pos_scores(qh, ph, p["v"])                             # (B, H, S, S)
    pos_sc = relative_shift(pos_sc)                                 # XLA glue
    ctx = attn_core(qh, kh, vh, pos_sc, p["u"], 1.0 / math.sqrt(D))  # (B,H,S,Dh)
    ctx = ctx.transpose(0, 2, 1, 3).reshape(B * S, D)
    out = linear(ctx, p["wo"], p["bo"])
    # TODO(synk): attention / output dropout omitted (eval-mode semantics).
    return out.reshape(B, S, D)


def conv_module(p, x, *, kernel_size):
    # Returns x + ConformerConvModule(x) (residual fused into the last kernel).
    B, S, D = x.shape
    y = ln_pw_glu(x.reshape(B * S, D), p).reshape(B, S, D)          # LN + PW1 + GLU
    pad = (kernel_size - 1) // 2
    ypad = jnp.pad(y, ((0, 0), (pad, pad), (0, 0)))
    bn_scale = p["bn_gamma"] / jnp.sqrt(p["bn_var"] + 1e-5)
    bn_shift = p["bn_beta"] - p["bn_mean"] * bn_scale
    # TODO(synk): conv dropout omitted; BatchNorm uses running (eval) stats.
    return dwconv_bn_swish_pw_res(ypad, x, p["dw"], bn_scale, bn_shift,
                                  p["w2"], p["b2"], T=S)


def conformer_block(p, x, pe, *, num_heads, conv_kernel):
    B, S, D = x.shape
    x = x + 0.5 * ffn(x.reshape(B * S, D), p["ff1"]).reshape(B, S, D)
    x = x + mhsa(p["mhsa"], x, pe, num_heads=num_heads)
    x = conv_module(p["conv"], x, kernel_size=conv_kernel)          # residual inside
    x = x + 0.5 * ffn(x.reshape(B * S, D), p["ff2"]).reshape(B, S, D)
    x = layernorm(x.reshape(B * S, D),
                  p["ln"]["gamma"], p["ln"]["beta"]).reshape(B, S, D)
    return x


def conformer_forward(params, x, input_lengths, *, num_heads, conv_kernel):
    B = x.shape[0]
    D = params["inproj_w"].shape[1]
    y = conv_subsample(params, x)                                   # (B,S,E*F2)
    _, S, Fin = y.shape
    y = linear(y.reshape(B * S, Fin), params["inproj_w"], params["inproj_b"])
    y = y.reshape(B, S, D)
    # TODO(synk): input_projection dropout omitted (eval-mode semantics).
    pe = positional_encoding(S, D)
    for blk in params["blocks"]:
        y = conformer_block(blk, y, pe, num_heads=num_heads,
                            conv_kernel=conv_kernel)
    enc_mean, logits = mean_classify(y, params["cls_w"])
    out_lengths = (input_lengths >> 2) - 1
    return enc_mean, logits, out_lengths


# ----------------------------------------------------------------------------
# Deterministic parameter init (synthetic; shapes follow the PyTorch module)
# ----------------------------------------------------------------------------
def init_params(key, *, input_dim, encoder_dim, num_layers, num_heads,
                ffn_expansion, conv_kernel, num_classes):
    D = encoder_dim
    H = num_heads
    Dh = D // H
    K = conv_kernel
    keys = iter(jax.random.split(key, 1024))

    def w(shape, scale=0.02):
        return jax.random.normal(next(keys), shape, jnp.float32) * scale

    params = {
        # Conv2dSubsampling weights, pre-flattened for im2col matmul
        "conv1_w": w((1 * 3 * 3, D)), "conv1_b": w((D,)),
        "conv2_w": w((D * 3 * 3, D)), "conv2_b": w((D,)),
    }
    F2 = ((input_dim - 1) // 2 - 1) // 2
    params["inproj_w"] = w((D * F2, D))
    params["inproj_b"] = w((D,))

    blocks = []
    for _ in range(num_layers):
        blk = {}
        for name in ("ff1", "ff2"):
            blk[name] = dict(gamma=jnp.ones((D,), jnp.float32),
                             beta=jnp.zeros((D,), jnp.float32),
                             w1=w((D, D * ffn_expansion)), b1=w((D * ffn_expansion,)),
                             w2=w((D * ffn_expansion, D)), b2=w((D,)))
        blk["mhsa"] = dict(gamma=jnp.ones((D,), jnp.float32),
                           beta=jnp.zeros((D,), jnp.float32),
                           wqkv=w((D, 3 * D)), bqkv=w((3 * D,)),   # concat Q|K|V
                           wp=w((D, D)),
                           u=w((H, Dh)), v=w((H, Dh)),
                           wo=w((D, D)), bo=w((D,)))
        blk["conv"] = dict(gamma=jnp.ones((D,), jnp.float32),
                           beta=jnp.zeros((D,), jnp.float32),
                           w1a=w((D, D)), b1a=w((D,)),             # GLU "output" half
                           w1b=w((D, D)), b1b=w((D,)),             # GLU "gate" half
                           dw=w((K, D)),
                           bn_gamma=jnp.ones((D,), jnp.float32),
                           bn_beta=jnp.zeros((D,), jnp.float32),
                           bn_mean=jnp.zeros((D,), jnp.float32),
                           bn_var=jnp.ones((D,), jnp.float32),
                           w2=w((D, D)), b2=w((D,)))
        blk["ln"] = dict(gamma=jnp.ones((D,), jnp.float32),
                         beta=jnp.zeros((D,), jnp.float32))
        blocks.append(blk)
    params["blocks"] = blocks
    params["cls_w"] = w((D, num_classes))
    return params


# ----------------------------------------------------------------------------
if __name__ == "__main__":
    B, T, FEAT = 2, 32, 16          # batch, input time steps, spectrogram dim
    ENC_DIM, HEADS, LAYERS = 16, 2, 2
    CONV_K, FFN_EXP, NUM_CLASSES = 7, 4, 5

    key = jax.random.PRNGKey(0)
    k_x, k_p = jax.random.split(key)
    x = jax.random.normal(k_x, (B, T, FEAT), jnp.float32)
    input_lengths = jnp.array([32, 28], dtype=jnp.int32)

    params = init_params(k_p, input_dim=FEAT, encoder_dim=ENC_DIM,
                         num_layers=LAYERS, num_heads=HEADS,
                         ffn_expansion=FFN_EXP, conv_kernel=CONV_K,
                         num_classes=NUM_CLASSES)

    fwd = jax.jit(functools.partial(conformer_forward,
                                    num_heads=HEADS, conv_kernel=CONV_K))
    enc, logits, out_len = fwd(params, x, input_lengths)
    jax.block_until_ready((enc, logits, out_len))
    assert enc.shape == (B, ENC_DIM)
    assert logits.shape == (B, NUM_CLASSES)
    assert out_len.shape == (B,)
    print("KERNEL_OK")
</pallas_src>

<mosaic_0001>
module attributes {stable_mosaic.version = 11 : i64} {
  func.func @_linear_kernel(%arg0: i32, %arg1: memref<210x9xf32, #tpu.memory_space<vmem>>, %arg2: memref<9x16xbf16, #tpu.memory_space<vmem>>, %arg3: memref<1x16xf32, #tpu.memory_space<vmem>>, %arg4: memref<210x16xf32, #tpu.memory_space<vmem>>) attributes {dimension_semantics = [#tpu.dimension_semantics<parallel>], iteration_bounds = array<i64: 1>, scalar_prefetch = 0 : i64, scratch_operands = 0 : i64, tpu.core_type = #tpu.core_type<tc>, window_params = [{transform_indices = @transform_0, window_bounds = array<i64: 210, 9>}, {pipeline_mode = #tpu.pipeline_mode<synchronous>, transform_indices = @transform_1, window_bounds = array<i64: 9, 16>}, {pipeline_mode = #tpu.pipeline_mode<synchronous>, transform_indices = @transform_2, window_bounds = array<i64: 1, 16>}, {transform_indices = @transform_3, window_bounds = array<i64: 210, 16>}]} {
    %c0 = arith.constant 0 : index
    %c0_0 = arith.constant 0 : index
    %0 = vector.load %arg1[%c0, %c0_0] : memref<210x9xf32, #tpu.memory_space<vmem>>, vector<210x9xf32>
    %1 = arith.truncf %0 : vector<210x9xf32> to vector<210x9xbf16>
    %c0_1 = arith.constant 0 : index
    %c0_2 = arith.constant 0 : index
    %2 = vector.load %arg2[%c0_1, %c0_2] : memref<9x16xbf16, #tpu.memory_space<vmem>>, vector<9x16xbf16>
    %cst = arith.constant dense<0.000000e+00> : vector<210x16xf32>
    %3 = tpu.matmul %1, %2, %cst {dimension_numbers = #tpu.dot_dimension_numbers<[1], [0], [0], [1], [0, 0, 1, 1], [], []>} : vector<210x9xbf16>, vector<9x16xbf16>, vector<210x16xf32> -> vector<210x16xf32>
    %c0_3 = arith.constant 0 : index
    %c0_4 = arith.constant 0 : index
    %4 = vector.load %arg3[%c0_3, %c0_4] : memref<1x16xf32, #tpu.memory_space<vmem>>, vector<1x16xf32>
    %5 = vector.broadcast %4 : vector<1x16xf32> to vector<210x16xf32>
    %6 = arith.addf %3, %5 : vector<210x16xf32>
    %cst_5 = arith.constant 0.000000e+00 : f32
    %7 = vector.broadcast %cst_5 : f32 to vector<210x16xf32>
    %8 = arith.maximumf %6, %7 : vector<210x16xf32>
    %c0_6 = arith.constant 0 : index
    %c0_7 = arith.constant 0 : index
    %9 = vector.load %arg4[%c0_6, %c0_7] : memref<210x16xf32, #tpu.memory_space<vmem>>, vector<210x16xf32>
    tpu.vector_store %arg4[%c0_6, %c0_7], %8 {strides = array<i32>} : memref<210x16xf32, #tpu.memory_space<vmem>>, vector<210x16xf32>,
    return
  }
  func.func @transform_0(%arg0: i32) -> (i32, i32) {
    %c0_i32 = arith.constant 0 : i32
    %c0_i32_0 = arith.constant 0 : i32
    return %arg0, %c0_i32 : i32, i32
  }
  func.func @transform_1(%arg0: i32) -> (i32, i32) {
    %c0_i32 = arith.constant 0 : i32
    %c0_i32_0 = arith.constant 0 : i32
    %c0_i32_1 = arith.constant 0 : i32
    return %c0_i32, %c0_i32_0 : i32, i32
  }
  func.func @transform_2(%arg0: i32) -> (i32, i32) {
    %c0_i32 = arith.constant 0 : i32
    %c0_i32_0 = arith.constant 0 : i32
    %c0_i32_1 = arith.constant 0 : i32
    return %c0_i32, %c0_i32_0 : i32, i32
  }
  func.func @transform_3(%arg0: i32) -> (i32, i32) {
    %c0_i32 = arith.constant 0 : i32
    %c0_i32_0 = arith.constant 0 : i32
    return %arg0, %c0_i32 : i32, i32
  }
}

module attributes {stable_mosaic.version = 11 : i64} {
  func.func @_linear_kernel(%arg0: i32, %arg1: memref<42x144xf32, #tpu.memory_space<vmem>>, %arg2: memref<144x16xbf16, #tpu.memory_space<vmem>>, %arg3: memref<1x16xf32, #tpu.memory_space<vmem>>, %arg4: memref<42x16xf32, #tpu.memory_space<vmem>>) attributes {dimension_semantics = [#tpu.dimension_semantics<parallel>], iteration_bounds = array<i64: 1>, scalar_prefetch = 0 : i64, scratch_operands = 0 : i64, tpu.core_type = #tpu.core_type<tc>, window_params = [{transform_indices = @transform_0, window_bounds = array<i64: 42, 144>}, {pipeline_mode = #tpu.pipeline_mode<synchronous>, transform_indices = @transform_1, window_bounds = array<i64: 144, 16>}, {pipeline_mode = #tpu.pipeline_mode<synchronous>, transform_indices = @transform_2, window_bounds = array<i64: 1, 16>}, {transform_indices = @transform_3, window_bounds = array<i64: 42, 16>}]} {
    %c0 = arith.constant 0 : index
    %c0_0 = arith.constant 0 : index
    %0 = vector.load %arg1[%c0, %c0_0] : memref<42x144xf32, #tpu.memory_space<vmem>>, vector<42x144xf32>
    %1 = arith.truncf %0 : vector<42x144xf32> to vector<42x144xbf16>
    %c0_1 = arith.constant 0 : index
    %c0_2 = arith.constant 0 : index
    %2 = vector.load %arg2[%c0_1, %c0_2] : memref<144x16xbf16, #tpu.memory_space<vmem>>, vector<144x16xbf16>
    %cst = arith.constant dense<0.000000e+00> : vector<42x16xf32>
    %3 = tpu.matmul %1, %2, %cst {dimension_numbers = #tpu.dot_dimension_numbers<[1], [0], [0], [1], [0, 0, 1, 1], [], []>} : vector<42x144xbf16>, vector<144x16xbf16>, vector<42x16xf32> -> vector<42x16xf32>
    %c0_3 = arith.constant 0 : index
    %c0_4 = arith.constant 0 : index
    %4 = vector.load %arg3[%c0_3, %c0_4] : memref<1x16xf32, #tpu.memory_space<vmem>>, vector<1x16xf32>
    %5 = vector.broadcast %4 : vector<1x16xf32> to vector<42x16xf32>
    %6 = arith.addf %3, %5 : vector<42x16xf32>
    %cst_5 = arith.constant 0.000000e+00 : f32
    %7 = vector.broadcast %cst_5 : f32 to vector<42x16xf32>
    %8 = arith.maximumf %6, %7 : vector<42x16xf32>
    %c0_6 = arith.constant 0 : index
    %c0_7 = arith.constant 0 : index
    %9 = vector.load %arg4[%c0_6, %c0_7] : memref<42x16xf32, #tpu.memory_space<vmem>>, vector<42x16xf32>
    tpu.vector_store %arg4[%c0_6, %c0_7], %8 {strides = array<i32>} : memref<42x16xf32, #tpu.memory_space<vmem>>, vector<42x16xf32>,
    return
  }
  func.func @transform_0(%arg0: i32) -> (i32, i32) {
    %c0_i32 = arith.constant 0 : i32
    %c0_i32_0 = arith.constant 0 : i32
    return %arg0, %c0_i32 : i32, i32
  }
  func.func @transform_1(%arg0: i32) -> (i32, i32) {
    %c0_i32 = arith.constant 0 : i32
    %c0_i32_0 = arith.constant 0 : i32
    %c0_i32_1 = arith.constant 0 : i32
    return %c0_i32, %c0_i32_0 : i32, i32
  }
  func.func @transform_2(%arg0: i32) -> (i32, i32) {
    %c0_i32 = arith.constant 0 : i32
    %c0_i32_0 = arith.constant 0 : i32
    %c0_i32_1 = arith.constant 0 : i32
    return %c0_i32, %c0_i32_0 : i32, i32
  }
  func.func @transform_3(%arg0: i32) -> (i32, i32) {
    %c0_i32 = arith.constant 0 : i32
    %c0_i32_0 = arith.constant 0 : i32
    return %arg0, %c0_i32 : i32, i32
  }
}

module attributes {stable_mosaic.version = 11 : i64} {
  func.func @_linear_kernel(%arg0: i32, %arg1: memref<14x48xf32, #tpu.memory_space<vmem>>, %arg2: memref<48x16xbf16, #tpu.memory_space<vmem>>, %arg3: memref<1x16xf32, #tpu.memory_space<vmem>>, %arg4: memref<14x16xf32, #tpu.memory_space<vmem>>) attributes {dimension_semantics = [#tpu.dimension_semantics<parallel>], iteration_bounds = array<i64: 1>, scalar_prefetch = 0 : i64, scratch_operands = 0 : i64, tpu.core_type = #tpu.core_type<tc>, window_params = [{transform_indices = @transform_0, window_bounds = array<i64: 14, 48>}, {pipeline_mode = #tpu.pipeline_mode<synchronous>, transform_indices = @transform_1, window_bounds = array<i64: 48, 16>}, {pipeline_mode = #tpu.pipeline_mode<synchronous>, transform_indices = @transform_2, window_bounds = array<i64: 1, 16>}, {transform_indices = @transform_3, window_bounds = array<i64: 14, 16>}]} {
    %c0 = arith.constant 0 : index
    %c0_0 = arith.constant 0 : index
    %0 = vector.load %arg1[%c0, %c0_0] : memref<14x48xf32, #tpu.memory_space<vmem>>, vector<14x48xf32>
    %1 = arith.truncf %0 : vector<14x48xf32> to vector<14x48xbf16>
    %c0_1 = arith.constant 0 : index
    %c0_2 = arith.constant 0 : index
    %2 = vector.load %arg2[%c0_1, %c0_2] : memref<48x16xbf16, #tpu.memory_space<vmem>>, vector<48x16xbf16>
    %cst = arith.constant dense<0.000000e+00> : vector<14x16xf32>
    %3 = tpu.matmul %1, %2, %cst {dimension_numbers = #tpu.dot_dimension_numbers<[1], [0], [0], [1], [0, 0, 1, 1], [], []>} : vector<14x48xbf16>, vector<48x16xbf16>, vector<14x16xf32> -> vector<14x16xf32>
    %c0_3 = arith.constant 0 : index
    %c0_4 = arith.constant 0 : index
    %4 = vector.load %arg3[%c0_3, %c0_4] : memref<1x16xf32, #tpu.memory_space<vmem>>, vector<1x16xf32>
    %5 = vector.broadcast %4 : vector<1x16xf32> to vector<14x16xf32>
    %6 = arith.addf %3, %5 : vector<14x16xf32>
    %c0_5 = arith.constant 0 : index
    %c0_6 = arith.constant 0 : index
    %7 = vector.load %arg4[%c0_5, %c0_6] : memref<14x16xf32, #tpu.memory_space<vmem>>, vector<14x16xf32>
    tpu.vector_store %arg4[%c0_5, %c0_6], %6 {strides = array<i32>} : memref<14x16xf32, #tpu.memory_space<vmem>>, vector<14x16xf32>,
    return
  }
  func.func @transform_0(%arg0: i32) -> (i32, i32) {
    %c0_i32 = arith.constant 0 : i32
    %c0_i32_0 = arith.constant 0 : i32
    return %arg0, %c0_i32 : i32, i32
  }
  func.func @transform_1(%arg0: i32) -> (i32, i32) {
    %c0_i32 = arith.constant 0 : i32
    %c0_i32_0 = arith.constant 0 : i32
    %c0_i32_1 = arith.constant 0 : i32
    return %c0_i32, %c0_i32_0 : i32, i32
  }
  func.func @transform_2(%arg0: i32) -> (i32, i32) {
    %c0_i32 = arith.constant 0 : i32
    %c0_i32_0 = arith.constant 0 : i32
    %c0_i32_1 = arith.constant 0 : i32
    return %c0_i32, %c0_i32_0 : i32, i32
  }
  func.func @transform_3(%arg0: i32) -> (i32, i32) {
    %c0_i32 = arith.constant 0 : i32
    %c0_i32_0 = arith.constant 0 : i32
    return %arg0, %c0_i32 : i32, i32
  }
}

module attributes {stable_mosaic.version = 11 : i64} {
  func.func @_ffn_kernel(%arg0: i32, %arg1: memref<14x16xf32, #tpu.memory_space<vmem>>, %arg2: memref<1x16xf32, #tpu.memory_space<vmem>>, %arg3: memref<1x16xf32, #tpu.memory_space<vmem>>, %arg4: memref<16x64xbf16, #tpu.memory_space<vmem>>, %arg5: memref<1x64xf32, #tpu.memory_space<vmem>>, %arg6: memref<64x16xbf16, #tpu.memory_space<vmem>>, %arg7: memref<1x16xf32, #tpu.memory_space<vmem>>, %arg8: memref<14x16xf32, #tpu.memory_space<vmem>>) attributes {dimension_semantics = [#tpu.dimension_semantics<parallel>], iteration_bounds = array<i64: 1>, scalar_prefetch = 0 : i64, scratch_operands = 0 : i64, tpu.core_type = #tpu.core_type<tc>, window_params = [{transform_indices = @transform_0, window_bounds = array<i64: 14, 16>}, {pipeline_mode = #tpu.pipeline_mode<synchronous>, transform_indices = @transform_1, window_bounds = array<i64: 1, 16>}, {pipeline_mode = #tpu.pipeline_mode<synchronous>, transform_indices = @transform_2, window_bounds = array<i64: 1, 16>}, {pipeline_mode = #tpu.pipeline_mode<synchronous>, transform_indices = @transform_3, window_bounds = array<i64: 16, 64>}, {pipeline_mode = #tpu.pipeline_mode<synchronous>, transform_indices = @transform_4, window_bounds = array<i64: 1, 64>}, {pipeline_mode = #tpu.pipeline_mode<synchronous>, transform_indices = @transform_5, window_bounds = array<i64: 64, 16>}, {pipeline_mode = #tpu.pipeline_mode<synchronous>, transform_indices = @transform_6, window_bounds = array<i64: 1, 16>}, {transform_indices = @transform_7, window_bounds = array<i64: 14, 16>}]} {
    %c0 = arith.constant 0 : index
    %c0_0 = arith.constant 0 : index
    %0 = vector.load %arg1[%c0, %c0_0] : memref<14x16xf32, #tpu.memory_space<vmem>>, vector<14x16xf32>
    %c0_1 = arith.constant 0 : index
    %c0_2 = arith.constant 0 : index
    %1 = vector.load %arg2[%c0_1, %c0_2] : memref<1x16xf32, #tpu.memory_space<vmem>>, vector<1x16xf32>
    %c0_3 = arith.constant 0 : index
    %c0_4 = arith.constant 0 : index
    %2 = vector.load %arg3[%c0_3, %c0_4] : memref<1x16xf32, #tpu.memory_space<vmem>>, vector<1x16xf32>
    %cst = arith.constant dense<0.000000e+00> : vector<14xf32>
    %3 = vector.multi_reduction <add>, %0, %cst [1] : vector<14x16xf32> to vector<14xf32>
    %4 = vector.shape_cast %3 : vector<14xf32> to vector<14x1xf32>
    %cst_5 = arith.constant 1.600000e+01 : f32
    %5 = vector.broadcast %cst_5 : f32 to vector<14x1xf32>
    %6 = arith.divf %4, %5 : vector<14x1xf32>
    %7 = vector.broadcast %6 : vector<14x1xf32> to vector<14x16xf32>
    %8 = arith.subf %0, %7 : vector<14x16xf32>
    %9 = arith.mulf %8, %8 : vector<14x16xf32>
    %cst_6 = arith.constant dense<0.000000e+00> : vector<14xf32>
    %10 = vector.multi_reduction <add>, %9, %cst_6 [1] : vector<14x16xf32> to vector<14xf32>
    %11 = vector.shape_cast %10 : vector<14xf32> to vector<14x1xf32>
    %cst_7 = arith.constant 1.600000e+01 : f32
    %12 = vector.broadcast %cst_7 : f32 to vector<14x1xf32>
    %13 = arith.divf %11, %12 : vector<14x1xf32>
    %14 = vector.broadcast %6 : vector<14x1xf32> to vector<14x16xf32>
    %15 = arith.subf %0, %14 : vector<14x16xf32>
    %cst_8 = arith.constant 9.99999974E-6 : f32
    %16 = vector.broadcast %cst_8 : f32 to vector<14x1xf32>
    %17 = arith.addf %13, %16 : vector<14x1xf32>
    %18 = math.rsqrt %17 : vector<14x1xf32>
    %19 = vector.broadcast %18 : vector<14x1xf32> to vector<14x16xf32>
    %20 = arith.mulf %15, %19 : vector<14x16xf32>
    %21 = vector.broadcast %1 : vector<1x16xf32> to vector<14x16xf32>
    %22 = arith.mulf %20, %21 : vector<14x16xf32>
    %23 = vector.broadcast %2 : vector<1x16xf32> to vector<14x16xf32>
    %24 = arith.addf %22, %23 : vector<14x16xf32>
    %25 = arith.truncf %24 : vector<14x16xf32> to vector<14x16xbf16>
    %c0_9 = arith.constant 0 : index
    %c0_10 = arith.constant 0 : index
    %26 = vector.load %arg4[%c0_9, %c0_10] : memref<16x64xbf16, #tpu.memory_space<vmem>>, vector<16x64xbf16>
    %cst_11 = arith.constant dense<0.000000e+00> : vector<14x64xf32>
    %27 = tpu.matmul %25, %26, %cst_11 {dimension_numbers = #tpu.dot_dimension_numbers<[1], [0], [0], [1], [0, 0, 1, 1], [], []>} : vector<14x16xbf16>, vector<16x64xbf16>, vector<14x64xf32> -> vector<14x64xf32>
    %c0_12 = arith.constant 0 : index
    %c0_13 = arith.constant 0 : index
    %28 = vector.load %arg5[%c0_12, %c0_13] : memref<1x64xf32, #tpu.memory_space<vmem>>, vector<1x64xf32>
    %29 = vector.broadcast %28 : vector<1x64xf32> to vector<14x64xf32>
    %30 = arith.addf %27, %29 : vector<14x64xf32>
    %cst_14 = arith.constant 0.000000e+00 : f32
    %31 = vector.broadcast %cst_14 : f32 to vector<14x64xf32>
    %32 = arith.subf %31, %30 : vector<14x64xf32>
    %33 = math.exp %32 : vector<14x64xf32>
    %cst_15 = arith.constant 1.000000e+00 : f32
    %34 = vector.broadcast %cst_15 : f32 to vector<14x64xf32>
    %35 = arith.addf %34, %33 : vector<14x64xf32>
    %36 = tpu.reciprocal %35 {approx = true} : vector<14x64xf32> -> vector<14x64xf32>
    %37 = arith.mulf %30, %36 : vector<14x64xf32>
    %38 = arith.truncf %37 : vector<14x64xf32> to vector<14x64xbf16>
    %c0_16 = arith.constant 0 : index
    %c0_17 = arith.constant 0 : index
    %39 = vector.load %arg6[%c0_16, %c0_17] : memref<64x16xbf16, #tpu.memory_space<vmem>>, vector<64x16xbf16>
    %cst_18 = arith.constant dense<0.000000e+00> : vector<14x16xf32>
    %40 = tpu.matmul %38, %39, %cst_18 {dimension_numbers = #tpu.dot_dimension_numbers<[1], [0], [0], [1], [0, 0, 1, 1], [], []>} : vector<14x64xbf16>, vector<64x16xbf16>, vector<14x16xf32> -> vector<14x16xf32>
    %c0_19 = arith.constant 0 : index
    %c0_20 = arith.constant 0 : index
    %41 = vector.load %arg7[%c0_19, %c0_20] : memref<1x16xf32, #tpu.memory_space<vmem>>, vector<1x16xf32>
    %42 = vector.broadcast %41 : vector<1x16xf32> to vector<14x16xf32>
    %43 = arith.addf %40, %42 : vector<14x16xf32>
    %c0_21 = arith.constant 0 : index
    %c0_22 = arith.constant 0 : index
    %44 = vector.load %arg8[%c0_21, %c0_22] : memref<14x16xf32, #tpu.memory_space<vmem>>, vector<14x16xf32>
    tpu.vector_store %arg8[%c0_21, %c0_22], %43 {strides = array<i32>} : memref<14x16xf32, #tpu.memory_space<vmem>>, vector<14x16xf32>,
    return
  }
  func.func @transform_0(%arg0: i32) -> (i32, i32) {
    %c0_i32 = arith.constant 0 : i32
    %c0_i32_0 = arith.constant 0 : i32
    return %arg0, %c0_i32 : i32, i32
  }
  func.func @transform_1(%arg0: i32) -> (i32, i32) {
    %c0_i32 = arith.constant 0 : i32
    %c0_i32_0 = arith.constant 0 : i32
    %c0_i32_1 = arith.constant 0 : i32
    return %c0_i32, %c0_i32_0 : i32, i32
  }
  func.func @transform_2(%arg0: i32) -> (i32, i32) {
    %c0_i32 = arith.constant 0 : i32
    %c0_i32_0 = arith.constant 0 : i32
    %c0_i32_1 = arith.constant 0 : i32
    return %c0_i32, %c0_i32_0 : i32, i32
  }
  func.func @transform_3(%arg0: i32) -> (i32, i32) {
    %c0_i32 = arith.constant 0 : i32
    %c0_i32_0 = arith.constant 0 : i32
    %c0_i32_1 = arith.constant 0 : i32
    return %c0_i32, %c0_i32_0 : i32, i32
  }
  func.func @transform_4(%arg0: i32) -> (i32, i32) {
    %c0_i32 = arith.constant 0 : i32
    %c0_i32_0 = arith.constant 0 : i32
    %c0_i32_1 = arith.constant 0 : i32
    return %c0_i32, %c0_i32_0 : i32, i32
  }
  func.func @transform_5(%arg0: i32) -> (i32, i32) {
    %c0_i32 = arith.constant 0 : i32
    %c0_i32_0 = arith.constant 0 : i32
    %c0_i32_1 = arith.constant 0 : i32
    return %c0_i32, %c0_i32_0 : i32, i32
  }
  func.func @transform_6(%arg0: i32) -> (i32, i32) {
    %c0_i32 = arith.constant 0 : i32
    %c0_i32_0 = arith.constant 0 : i32
    %c0_i32_1 = arith.constant 0 : i32
    return %c0_i32, %c0_i32_0 : i32, i32
  }
  func.func @transform_7(%arg0: i32) -> (i32, i32) {
    %c0_i32 = arith.constant 0 : i32
    %c0_i32_0 = arith.constant 0 : i32
    return %arg0, %c0_i32 : i32, i32
  }
}

module attributes {stable_mosaic.version = 11 : i64} {
  func.func @_ln_linear_kernel(%arg0: i32, %arg1: memref<14x16xf32, #tpu.memory_space<vmem>>, %arg2: memref<1x16xf32, #tpu.memory_space<vmem>>, %arg3: memref<1x16xf32, #tpu.memory_space<vmem>>, %arg4: memref<16x48xbf16, #tpu.memory_space<vmem>>, %arg5: memref<1x48xf32, #tpu.memory_space<vmem>>, %arg6: memref<14x48xf32, #tpu.memory_space<vmem>>) attributes {dimension_semantics = [#tpu.dimension_semantics<parallel>], iteration_bounds = array<i64: 1>, scalar_prefetch = 0 : i64, scratch_operands = 0 : i64, tpu.core_type = #tpu.core_type<tc>, window_params = [{transform_indices = @transform_0, window_bounds = array<i64: 14, 16>}, {pipeline_mode = #tpu.pipeline_mode<synchronous>, transform_indices = @transform_1, window_bounds = array<i64: 1, 16>}, {pipeline_mode = #tpu.pipeline_mode<synchronous>, transform_indices = @transform_2, window_bounds = array<i64: 1, 16>}, {pipeline_mode = #tpu.pipeline_mode<synchronous>, transform_indices = @transform_3, window_bounds = array<i64: 16, 48>}, {pipeline_mode = #tpu.pipeline_mode<synchronous>, transform_indices = @transform_4, window_bounds = array<i64: 1, 48>}, {transform_indices = @transform_5, window_bounds = array<i64: 14, 48>}]} {
    %c0 = arith.constant 0 : index
    %c0_0 = arith.constant 0 : index
    %0 = vector.load %arg1[%c0, %c0_0] : memref<14x16xf32, #tpu.memory_space<vmem>>, vector<14x16xf32>
    %c0_1 = arith.constant 0 : index
    %c0_2 = arith.constant 0 : index
    %1 = vector.load %arg2[%c0_1, %c0_2] : memref<1x16xf32, #tpu.memory_space<vmem>>, vector<1x16xf32>
    %c0_3 = arith.constant 0 : index
    %c0_4 = arith.constant 0 : index
    %2 = vector.load %arg3[%c0_3, %c0_4] : memref<1x16xf32, #tpu.memory_space<vmem>>, vector<1x16xf32>
    %cst = arith.constant dense<0.000000e+00> : vector<14xf32>
    %3 = vector.multi_reduction <add>, %0, %cst [1] : vector<14x16xf32> to vector<14xf32>
    %4 = vector.shape_cast %3 : vector<14xf32> to vector<14x1xf32>
    %cst_5 = arith.constant 1.600000e+01 : f32
    %5 = vector.broadcast %cst_5 : f32 to vector<14x1xf32>
    %6 = arith.divf %4, %5 : vector<14x1xf32>
    %7 = vector.broadcast %6 : vector<14x1xf32> to vector<14x16xf32>
    %8 = arith.subf %0, %7 : vector<14x16xf32>
    %9 = arith.mulf %8, %8 : vector<14x16xf32>
    %cst_6 = arith.constant dense<0.000000e+00> : vector<14xf32>
    %10 = vector.multi_reduction <add>, %9, %cst_6 [1] : vector<14x16xf32> to vector<14xf32>
    %11 = vector.shape_cast %10 : vector<14xf32> to vector<14x1xf32>
    %cst_7 = arith.constant 1.600000e+01 : f32
    %12 = vector.broadcast %cst_7 : f32 to vector<14x1xf32>
    %13 = arith.divf %11, %12 : vector<14x1xf32>
    %14 = vector.broadcast %6 : vector<14x1xf32> to vector<14x16xf32>
    %15 = arith.subf %0, %14 : vector<14x16xf32>
    %cst_8 = arith.constant 9.99999974E-6 : f32
    %16 = vector.broadcast %cst_8 : f32 to vector<14x1xf32>
    %17 = arith.addf %13, %16 : vector<14x1xf32>
    %18 = math.rsqrt %17 : vector<14x1xf32>
    %19 = vector.broadcast %18 : vector<14x1xf32> to vector<14x16xf32>
    %20 = arith.mulf %15, %19 : vector<14x16xf32>
    %21 = vector.broadcast %1 : vector<1x16xf32> to vector<14x16xf32>
    %22 = arith.mulf %20, %21 : vector<14x16xf32>
    %23 = vector.broadcast %2 : vector<1x16xf32> to vector<14x16xf32>
    %24 = arith.addf %22, %23 : vector<14x16xf32>
    %25 = arith.truncf %24 : vector<14x16xf32> to vector<14x16xbf16>
    %c0_9 = arith.constant 0 : index
    %c0_10 = arith.constant 0 : index
    %26 = vector.load %arg4[%c0_9, %c0_10] : memref<16x48xbf16, #tpu.memory_space<vmem>>, vector<16x48xbf16>
    %cst_11 = arith.constant dense<0.000000e+00> : vector<14x48xf32>
    %27 = tpu.matmul %25, %26, %cst_11 {dimension_numbers = #tpu.dot_dimension_numbers<[1], [0], [0], [1], [0, 0, 1, 1], [], []>} : vector<14x16xbf16>, vector<16x48xbf16>, vector<14x48xf32> -> vector<14x48xf32>
    %c0_12 = arith.constant 0 : index
    %c0_13 = arith.constant 0 : index
    %28 = vector.load %arg5[%c0_12, %c0_13] : memref<1x48xf32, #tpu.memory_space<vmem>>, vector<1x48xf32>
    %29 = vector.broadcast %28 : vector<1x48xf32> to vector<14x48xf32>
    %30 = arith.addf %27, %29 : vector<14x48xf32>
    %c0_14 = arith.constant 0 : index
    %c0_15 = arith.constant 0 : index
    %31 = vector.load %arg6[%c0_14, %c0_15] : memref<14x48xf32, #tpu.memory_space<vmem>>, vector<14x48xf32>
    tpu.vector_store %arg6[%c0_14, %c0_15], %30 {strides = array<i32>} : memref<14x48xf32, #tpu.memory_space<vmem>>, vector<14x48xf32>,
    return
  }
  func.func @transform_0(%arg0: i32) -> (i32, i32) {
    %c0_i32 = arith.constant 0 : i32
    %c0_i32_0 = arith.constant 0 : i32
    return %arg0, %c0_i32 : i32, i32
  }
  func.func @transform_1(%arg0: i32) -> (i32, i32) {
    %c0_i32 = arith.constant 0 : i32
    %c0_i32_0 = arith.constant 0 : i32
    %c0_i32_1 = arith.constant 0 : i32
    return %c0_i32, %c0_i32_0 : i32, i32
  }
  func.func @transform_2(%arg0: i32) -> (i32, i32) {
    %c0_i32 = arith.constant 0 : i32
    %c0_i32_0 = arith.constant 0 : i32
    %c0_i32_1 = arith.constant 0 : i32
    return %c0_i32, %c0_i32_0 : i32, i32
  }
  func.func @transform_3(%arg0: i32) -> (i32, i32) {
    %c0_i32 = arith.constant 0 : i32
    %c0_i32_0 = arith.constant 0 : i32
    %c0_i32_1 = arith.constant 0 : i32
    return %c0_i32, %c0_i32_0 : i32, i32
  }
  func.func @transform_4(%arg0: i32) -> (i32, i32) {
    %c0_i32 = arith.constant 0 : i32
    %c0_i32_0 = arith.constant 0 : i32
    %c0_i32_1 = arith.constant 0 : i32
    return %c0_i32, %c0_i32_0 : i32, i32
  }
  func.func @transform_5(%arg0: i32) -> (i32, i32) {
    %c0_i32 = arith.constant 0 : i32
    %c0_i32_0 = arith.constant 0 : i32
    return %arg0, %c0_i32 : i32, i32
  }
}

module attributes {stable_mosaic.version = 11 : i64} {
  func.func @_linear_kernel(%arg0: i32, %arg1: memref<7x16xf32, #tpu.memory_space<vmem>>, %arg2: memref<16x16xbf16, #tpu.memory_space<vmem>>, %arg3: memref<1x16xf32, #tpu.memory_space<vmem>>, %arg4: memref<7x16xf32, #tpu.memory_space<vmem>>) attributes {dimension_semantics = [#tpu.dimension_semantics<parallel>], iteration_bounds = array<i64: 1>, scalar_prefetch = 0 : i64, scratch_operands = 0 : i64, tpu.core_type = #tpu.core_type<tc>, window_params = [{transform_indices = @transform_0, window_bounds = array<i64: 7, 16>}, {pipeline_mode = #tpu.pipeline_mode<synchronous>, transform_indices = @transform_1, window_bounds = array<i64: 16, 16>}, {pipeline_mode = #tpu.pipeline_mode<synchronous>, transform_indices = @transform_2, window_bounds = array<i64: 1, 16>}, {transform_indices = @transform_3, window_bounds = array<i64: 7, 16>}]} {
    %c0 = arith.constant 0 : index
    %c0_0 = arith.constant 0 : index
    %0 = vector.load %arg1[%c0, %c0_0] : memref<7x16xf32, #tpu.memory_space<vmem>>, vector<7x16xf32>
    %1 = arith.truncf %0 : vector<7x16xf32> to vector<7x16xbf16>
    %c0_1 = arith.constant 0 : index
    %c0_2 = arith.constant 0 : index
    %2 = vector.load %arg2[%c0_1, %c0_2] : memref<16x16xbf16, #tpu.memory_space<vmem>>, vector<16x16xbf16>
    %cst = arith.constant dense<0.000000e+00> : vector<7x16xf32>
    %3 = tpu.matmul %1, %2, %cst {dimension_numbers = #tpu.dot_dimension_numbers<[1], [0], [0], [1], [0, 0, 1, 1], [], []>} : vector<7x16xbf16>, vector<16x16xbf16>, vector<7x16xf32> -> vector<7x16xf32>
    %c0_3 = arith.constant 0 : index
    %c0_4 = arith.constant 0 : index
    %4 = vector.load %arg3[%c0_3, %c0_4] : memref<1x16xf32, #tpu.memory_space<vmem>>, vector<1x16xf32>
    %5 = vector.broadcast %4 : vector<1x16xf32> to vector<7x16xf32>
    %6 = arith.addf %3, %5 : vector<7x16xf32>
    %c0_5 = arith.constant 0 : index
    %c0_6 = arith.constant 0 : index
    %7 = vector.load %arg4[%c0_5, %c0_6] : memref<7x16xf32, #tpu.memory_space<vmem>>, vector<7x16xf32>
    tpu.vector_store %arg4[%c0_5, %c0_6], %6 {strides = array<i32>} : memref<7x16xf32, #tpu.memory_space<vmem>>, vector<7x16xf32>,
    return
  }
  func.func @transform_0(%arg0: i32) -> (i32, i32) {
    %c0_i32 = arith.constant 0 : i32
    %c0_i32_0 = arith.constant 0 : i32
    return %arg0, %c0_i32 : i32, i32
  }
  func.func @transform_1(%arg0: i32) -> (i32, i32) {
    %c0_i32 = arith.constant 0 : i32
    %c0_i32_0 = arith.constant 0 : i32
    %c0_i32_1 = arith.constant 0 : i32
    return %c0_i32, %c0_i32_0 : i32, i32
  }
  func.func @transform_2(%arg0: i32) -> (i32, i32) {
    %c0_i32 = arith.constant 0 : i32
    %c0_i32_0 = arith.constant 0 : i32
    %c0_i32_1 = arith.constant 0 : i32
    return %c0_i32, %c0_i32_0 : i32, i32
  }
  func.func @transform_3(%arg0: i32) -> (i32, i32) {
    %c0_i32 = arith.constant 0 : i32
    %c0_i32_0 = arith.constant 0 : i32
    return %arg0, %c0_i32 : i32, i32
  }
}

module attributes {stable_mosaic.version = 11 : i64} {
  func.func @_pos_score_kernel(%arg0: i32, %arg1: i32, %arg2: memref<1x2x7x8xf32, #tpu.memory_space<vmem>>, %arg3: memref<2x7x8xf32, #tpu.memory_space<vmem>>, %arg4: memref<2x1x8xf32, #tpu.memory_space<vmem>>, %arg5: memref<1x2x7x7xf32, #tpu.memory_space<vmem>>) attributes {dimension_semantics = [#tpu.dimension_semantics<parallel>, #tpu.dimension_semantics<parallel>], iteration_bounds = array<i64: 2, 1>, scalar_prefetch = 0 : i64, scratch_operands = 0 : i64, tpu.core_type = #tpu.core_type<tc>, window_params = [{transform_indices = @transform_0, window_bounds = array<i64: 1, 2, 7, 8>}, {pipeline_mode = #tpu.pipeline_mode<synchronous>, transform_indices = @transform_1, window_bounds = array<i64: 2, 7, 8>}, {pipeline_mode = #tpu.pipeline_mode<synchronous>, transform_indices = @transform_2, window_bounds = array<i64: 2, 1, 8>}, {transform_indices = @transform_3, window_bounds = array<i64: 1, 2, 7, 7>}]} {
    %c0 = arith.constant 0 : index
    %c0_0 = arith.constant 0 : index
    %c0_1 = arith.constant 0 : index
    %c0_2 = arith.constant 0 : index
    %0 = vector.load %arg2[%c0, %c0_0, %c0_1, %c0_2] : memref<1x2x7x8xf32, #tpu.memory_space<vmem>>, vector<1x2x7x8xf32>
    %1 = vector.shape_cast %0 : vector<1x2x7x8xf32> to vector<2x7x8xf32>
    %c0_3 = arith.constant 0 : index
    %c0_4 = arith.constant 0 : index
    %c0_5 = arith.constant 0 : index
    %2 = vector.load %arg4[%c0_3, %c0_4, %c0_5] : memref<2x1x8xf32, #tpu.memory_space<vmem>>, vector<2x1x8xf32>
    %3 = vector.broadcast %2 : vector<2x1x8xf32> to vector<2x7x8xf32>
    %4 = arith.addf %1, %3 : vector<2x7x8xf32>
    %5 = arith.truncf %4 : vector<2x7x8xf32> to vector<2x7x8xbf16>
    %c0_6 = arith.constant 0 : index
    %c0_7 = arith.constant 0 : index
    %c0_8 = arith.constant 0 : index
    %6 = vector.load %arg3[%c0_6, %c0_7, %c0_8] : memref<2x7x8xf32, #tpu.memory_space<vmem>>, vector<2x7x8xf32>
    %7 = arith.truncf %6 : vector<2x7x8xf32> to vector<2x7x8xbf16>
    "tpu.trace_start"() <{level = 10 : i32, message = "hqd,hkd->hqk"}> : () -> ()
    %cst = arith.constant dense<0.000000e+00> : vector<2x7x7xf32>
    %8 = tpu.matmul %5, %7, %cst {dimension_numbers = #tpu.dot_dimension_numbers<[2], [2], [1], [1], [0, 0, 0, 1, 1, 1], [0], [0]>} : vector<2x7x8xbf16>, vector<2x7x8xbf16>, vector<2x7x7xf32> -> vector<2x7x7xf32>
    "tpu.trace_stop"() : () -> ()
    %c0_9 = arith.constant 0 : index
    %c0_10 = arith.constant 0 : index
    %c0_11 = arith.constant 0 : index
    %c0_12 = arith.constant 0 : index
    %9 = vector.load %arg5[%c0_9, %c0_10, %c0_11, %c0_12] : memref<1x2x7x7xf32, #tpu.memory_space<vmem>>, vector<1x2x7x7xf32>
    %10 = vector.shape_cast %9 : vector<1x2x7x7xf32> to vector<2x7x7xf32>
    %11 = vector.shape_cast %8 : vector<2x7x7xf32> to vector<1x2x7x7xf32>
    tpu.vector_store %arg5[%c0_9, %c0_10, %c0_11, %c0_12], %11 {strides = array<i32>} : memref<1x2x7x7xf32, #tpu.memory_space<vmem>>, vector<1x2x7x7xf32>,
    return
  }
  func.func @transform_0(%arg0: i32, %arg1: i32) -> (i32, i32, i32, i32) {
    %c0_i32 = arith.constant 0 : i32
    %c0_i32_0 = arith.constant 0 : i32
    %c0_i32_1 = arith.constant 0 : i32
    return %arg0, %c0_i32, %arg1, %c0_i32_0 : i32, i32, i32, i32
  }
  func.func @transform_1(%arg0: i32, %arg1: i32) -> (i32, i32, i32) {
    %c0_i32 = arith.constant 0 : i32
    %c0_i32_0 = arith.constant 0 : i32
    %c0_i32_1 = arith.constant 0 : i32
    %c0_i32_2 = arith.constant 0 : i32
    return %c0_i32, %c0_i32_0, %c0_i32_1 : i32, i32, i32
  }
  func.func @transform_2(%arg0: i32, %arg1: i32) -> (i32, i32, i32) {
    %c0_i32 = arith.constant 0 : i32
    %c0_i32_0 = arith.constant 0 : i32
    %c0_i32_1 = arith.constant 0 : i32
    %c0_i32_2 = arith.constant 0 : i32
    return %c0_i32, %c0_i32_0, %c0_i32_1 : i32, i32, i32
  }
  func.func @transform_3(%arg0: i32, %arg1: i32) -> (i32, i32, i32, i32) {
    %c0_i32 = arith.constant 0 : i32
    %c0_i32_0 = arith.constant 0 : i32
    %c0_i32_1 = arith.constant 0 : i32
    return %arg0, %c0_i32, %arg1, %c0_i32_0 : i32, i32, i32, i32
  }
}

module attributes {stable_mosaic.version = 11 : i64} {
  func.func @_attn_core_kernel(%arg0: i32, %arg1: i32, %arg2: memref<1x2x7x8xf32, #tpu.memory_space<vmem>>, %arg3: memref<1x2x7x8xf32, #tpu.memory_space<vmem>>, %arg4: memref<1x2x7x8xf32, #tpu.memory_space<vmem>>, %arg5: memref<1x2x7x7xf32, #tpu.memory_space<vmem>>, %arg6: memref<2x1x8xf32, #tpu.memory_space<vmem>>, %arg7: memref<1x2x7x8xf32, #tpu.memory_space<vmem>>) attributes {dimension_semantics = [#tpu.dimension_semantics<parallel>, #tpu.dimension_semantics<parallel>], iteration_bounds = array<i64: 2, 1>, scalar_prefetch = 0 : i64, scratch_operands = 0 : i64, tpu.core_type = #tpu.core_type<tc>, window_params = [{transform_indices = @transform_0, window_bounds = array<i64: 1, 2, 7, 8>}, {transform_indices = @transform_1, window_bounds = array<i64: 1, 2, 7, 8>}, {transform_indices = @transform_2, window_bounds = array<i64: 1, 2, 7, 8>}, {transform_indices = @transform_3, window_bounds = array<i64: 1, 2, 7, 7>}, {pipeline_mode = #tpu.pipeline_mode<synchronous>, transform_indices = @transform_4, window_bounds = array<i64: 2, 1, 8>}, {transform_indices = @transform_5, window_bounds = array<i64: 1, 2, 7, 8>}]} {
    %c0 = arith.constant 0 : index
    %c0_0 = arith.constant 0 : index
    %c0_1 = arith.constant 0 : index
    %c0_2 = arith.constant 0 : index
    %0 = vector.load %arg2[%c0, %c0_0, %c0_1, %c0_2] : memref<1x2x7x8xf32, #tpu.memory_space<vmem>>, vector<1x2x7x8xf32>
    %1 = vector.shape_cast %0 : vector<1x2x7x8xf32> to vector<2x7x8xf32>
    %c0_3 = arith.constant 0 : index
    %c0_4 = arith.constant 0 : index
    %c0_5 = arith.constant 0 : index
    %2 = vector.load %arg6[%c0_3, %c0_4, %c0_5] : memref<2x1x8xf32, #tpu.memory_space<vmem>>, vector<2x1x8xf32>
    %3 = vector.broadcast %2 : vector<2x1x8xf32> to vector<2x7x8xf32>
    %4 = arith.addf %1, %3 : vector<2x7x8xf32>
    %5 = arith.truncf %4 : vector<2x7x8xf32> to vector<2x7x8xbf16>
    %c0_6 = arith.constant 0 : index
    %c0_7 = arith.constant 0 : index
    %c0_8 = arith.constant 0 : index
    %c0_9 = arith.constant 0 : index
    %6 = vector.load %arg3[%c0_6, %c0_7, %c0_8, %c0_9] : memref<1x2x7x8xf32, #tpu.memory_space<vmem>>, vector<1x2x7x8xf32>
    %7 = vector.shape_cast %6 : vector<1x2x7x8xf32> to vector<2x7x8xf32>
    %8 = arith.truncf %7 : vector<2x7x8xf32> to vector<2x7x8xbf16>
    "tpu.trace_start"() <{level = 10 : i32, message = "hqd,hkd->hqk"}> : () -> ()
    %cst = arith.constant dense<0.000000e+00> : vector<2x7x7xf32>
    %9 = tpu.matmul %5, %8, %cst {dimension_numbers = #tpu.dot_dimension_numbers<[2], [2], [1], [1], [0, 0, 0, 1, 1, 1], [0], [0]>} : vector<2x7x8xbf16>, vector<2x7x8xbf16>, vector<2x7x7xf32> -> vector<2x7x7xf32>
    "tpu.trace_stop"() : () -> ()
    %c0_10 = arith.constant 0 : index
    %c0_11 = arith.constant 0 : index
    %c0_12 = arith.constant 0 : index
    %c0_13 = arith.constant 0 : index
    %10 = vector.load %arg5[%c0_10, %c0_11, %c0_12, %c0_13] : memref<1x2x7x7xf32, #tpu.memory_space<vmem>>, vector<1x2x7x7xf32>
    %11 = vector.shape_cast %10 : vector<1x2x7x7xf32> to vector<2x7x7xf32>
    %12 = arith.addf %9, %11 : vector<2x7x7xf32>
    %cst_14 = arith.constant 2.500000e-01 : f32
    %13 = vector.broadcast %cst_14 : f32 to vector<2x7x7xf32>
    %14 = arith.mulf %12, %13 : vector<2x7x7xf32>
    %cst_15 = arith.constant dense<0xFF800000> : vector<2x7xf32>
    %15 = vector.multi_reduction <maximumf>, %14, %cst_15 [2] : vector<2x7x7xf32> to vector<2x7xf32>
    %16 = vector.shape_cast %15 : vector<2x7xf32> to vector<2x7x1xf32>
    %17 = vector.broadcast %16 : vector<2x7x1xf32> to vector<2x7x7xf32>
    %18 = arith.subf %14, %17 : vector<2x7x7xf32>
    %19 = math.exp %18 : vector<2x7x7xf32>
    %cst_16 = arith.constant dense<0.000000e+00> : vector<2x7xf32>
    %20 = vector.multi_reduction <add>, %19, %cst_16 [2] : vector<2x7x7xf32> to vector<2x7xf32>
    %21 = vector.shape_cast %20 : vector<2x7xf32> to vector<2x7x1xf32>
    %22 = tpu.reciprocal %21 {approx = true} : vector<2x7x1xf32> -> vector<2x7x1xf32>
    %23 = vector.broadcast %22 : vector<2x7x1xf32> to vector<2x7x7xf32>
    %24 = arith.mulf %19, %23 : vector<2x7x7xf32>
    %25 = arith.truncf %24 : vector<2x7x7xf32> to vector<2x7x7xbf16>
    %c0_17 = arith.constant 0 : index
    %c0_18 = arith.constant 0 : index
    %c0_19 = arith.constant 0 : index
    %c0_20 = arith.constant 0 : index
    %26 = vector.load %arg4[%c0_17, %c0_18, %c0_19, %c0_20] : memref<1x2x7x8xf32, #tpu.memory_space<vmem>>, vector<1x2x7x8xf32>
    %27 = vector.shape_cast %26 : vector<1x2x7x8xf32> to vector<2x7x8xf32>
    %28 = arith.truncf %27 : vector<2x7x8xf32> to vector<2x7x8xbf16>
    "tpu.trace_start"() <{level = 10 : i32, message = "hqk,hkd->hqd"}> : () -> ()
    %cst_21 = arith.constant dense<0.000000e+00> : vector<2x7x8xf32>
    %29 = tpu.matmul %25, %28, %cst_21 {dimension_numbers = #tpu.dot_dimension_numbers<[2], [1], [1], [2], [0, 0, 0, 1, 1, 2], [0], [0]>} : vector<2x7x7xbf16>, vector<2x7x8xbf16>, vector<2x7x8xf32> -> vector<2x7x8xf32>
    "tpu.trace_stop"() : () -> ()
    %c0_22 = arith.constant 0 : index
    %c0_23 = arith.constant 0 : index
    %c0_24 = arith.constant 0 : index
    %c0_25 = arith.constant 0 : index
    %30 = vector.load %arg7[%c0_22, %c0_23, %c0_24, %c0_25] : memref<1x2x7x8xf32, #tpu.memory_space<vmem>>, vector<1x2x7x8xf32>
    %31 = vector.shape_cast %30 : vector<1x2x7x8xf32> to vector<2x7x8xf32>
    %32 = vector.shape_cast %29 : vector<2x7x8xf32> to vector<1x2x7x8xf32>
    tpu.vector_store %arg7[%c0_22, %c0_23, %c0_24, %c0_25], %32 {strides = array<i32>} : memref<1x2x7x8xf32, #tpu.memory_space<vmem>>, vector<1x2x7x8xf32>,
    return
  }
  func.func @transform_0(%arg0: i32, %arg1: i32) -> (i32, i32, i32, i32) {
    %c0_i32 = arith.constant 0 : i32
    %c0_i32_0 = arith.constant 0 : i32
    %c0_i32_1 = arith.constant 0 : i32
    return %arg0, %c0_i32, %arg1, %c0_i32_0 : i32, i32, i32, i32
  }
  func.func @transform_1(%arg0: i32, %arg1: i32) -> (i32, i32, i32, i32) {
    %c0_i32 = arith.constant 0 : i32
    %c0_i32_0 = arith.constant 0 : i32
    %c0_i32_1 = arith.constant 0 : i32
    %c0_i32_2 = arith.constant 0 : i32
    return %arg0, %c0_i32, %c0_i32_0, %c0_i32_1 : i32, i32, i32, i32
  }
  func.func @transform_2(%arg0: i32, %arg1: i32) -> (i32, i32, i32, i32) {
    %c0_i32 = arith.constant 0 : i32
    %c0_i32_0 = arith.constant 0 : i32
    %c0_i32_1 = arith.constant 0 : i32
    %c0_i32_2 = arith.constant 0 : i32
    return %arg0, %c0_i32, %c0_i32_0, %c0_i32_1 : i32, i32, i32, i32
  }
  func.func @transform_3(%arg0: i32, %arg1: i32) -> (i32, i32, i32, i32) {
    %c0_i32 = arith.constant 0 : i32
    %c0_i32_0 = arith.constant 0 : i32
    %c0_i32_1 = arith.constant 0 : i32
    return %arg0, %c0_i32, %arg1, %c0_i32_0 : i32, i32, i32, i32
  }
  func.func @transform_4(%arg0: i32, %arg1: i32) -> (i32, i32, i32) {
    %c0_i32 = arith.constant 0 : i32
    %c0_i32_0 = arith.constant 0 : i32
    %c0_i32_1 = arith.constant 0 : i32
    %c0_i32_2 = arith.constant 0 : i32
    return %c0_i32, %c0_i32_0, %c0_i32_1 : i32, i32, i32
  }
  func.func @transform_5(%arg0: i32, %arg1: i32) -> (i32, i32, i32, i32) {
    %c0_i32 = arith.constant 0 : i32
    %c0_i32_0 = arith.constant 0 : i32
    %c0_i32_1 = arith.constant 0 : i32
    return %arg0, %c0_i32, %arg1, %c0_i32_0 : i32, i32, i32, i32
  }
}

module attributes {stable_mosaic.version = 11 : i64} {
  func.func @_linear_kernel(%arg0: i32, %arg1: memref<14x16xf32, #tpu.memory_space<vmem>>, %arg2: memref<16x16xbf16, #tpu.memory_space<vmem>>, %arg3: memref<1x16xf32, #tpu.memory_space<vmem>>, %arg4: memref<14x16xf32, #tpu.memory_space<vmem>>) attributes {dimension_semantics = [#tpu.dimension_semantics<parallel>], iteration_bounds = array<i64: 1>, scalar_prefetch = 0 : i64, scratch_operands = 0 : i64, tpu.core_type = #tpu.core_type<tc>, window_params = [{transform_indices = @transform_0, window_bounds = array<i64: 14, 16>}, {pipeline_mode = #tpu.pipeline_mode<synchronous>, transform_indices = @transform_1, window_bounds = array<i64: 16, 16>}, {pipeline_mode = #tpu.pipeline_mode<synchronous>, transform_indices = @transform_2, window_bounds = array<i64: 1, 16>}, {transform_indices = @transform_3, window_bounds = array<i64: 14, 16>}]} {
    %c0 = arith.constant 0 : index
    %c0_0 = arith.constant 0 : index
    %0 = vector.load %arg1[%c0, %c0_0] : memref<14x16xf32, #tpu.memory_space<vmem>>, vector<14x16xf32>
    %1 = arith.truncf %0 : vector<14x16xf32> to vector<14x16xbf16>
    %c0_1 = arith.constant 0 : index
    %c0_2 = arith.constant 0 : index
    %2 = vector.load %arg2[%c0_1, %c0_2] : memref<16x16xbf16, #tpu.memory_space<vmem>>, vector<16x16xbf16>
    %cst = arith.constant dense<0.000000e+00> : vector<14x16xf32>
    %3 = tpu.matmul %1, %2, %cst {dimension_numbers = #tpu.dot_dimension_numbers<[1], [0], [0], [1], [0, 0, 1, 1], [], []>} : vector<14x16xbf16>, vector<16x16xbf16>, vector<14x16xf32> -> vector<14x16xf32>
    %c0_3 = arith.constant 0 : index
    %c0_4 = arith.constant 0 : index
    %4 = vector.load %arg3[%c0_3, %c0_4] : memref<1x16xf32, #tpu.memory_space<vmem>>, vector<1x16xf32>
    %5 = vector.broadcast %4 : vector<1x16xf32> to vector<14x16xf32>
    %6 = arith.addf %3, %5 : vector<14x16xf32>
    %c0_5 = arith.constant 0 : index
    %c0_6 = arith.constant 0 : index
    %7 = vector.load %arg4[%c0_5, %c0_6] : memref<14x16xf32, #tpu.memory_space<vmem>>, vector<14x16xf32>
    tpu.vector_store %arg4[%c0_5, %c0_6], %6 {strides = array<i32>} : memref<14x16xf32, #tpu.memory_space<vmem>>, vector<14x16xf32>,
    return
  }
  func.func @transform_0(%arg0: i32) -> (i32, i32) {
    %c0_i32 = arith.constant 0 : i32
    %c0_i32_0 = arith.constant 0 : i32
    return %arg0, %c0_i32 : i32, i32
  }
  func.func @transform_1(%arg0: i32) -> (i32, i32) {
    %c0_i32 = arith.constant 0 : i32
    %c0_i32_0 = arith.constant 0 : i32
    %c0_i32_1 = arith.constant 0 : i32
    return %c0_i32, %c0_i32_0 : i32, i32
  }
  func.func @transform_2(%arg0: i32) -> (i32, i32) {
    %c0_i32 = arith.constant 0 : i32
    %c0_i32_0 = arith.constant 0 : i32
    %c0_i32_1 = arith.constant 0 : i32
    return %c0_i32, %c0_i32_0 : i32, i32
  }
  func.func @transform_3(%arg0: i32) -> (i32, i32) {
    %c0_i32 = arith.constant 0 : i32
    %c0_i32_0 = arith.constant 0 : i32
    return %arg0, %c0_i32 : i32, i32
  }
}

module attributes {stable_mosaic.version = 11 : i64} {
  func.func @_ln_pw_glu_kernel(%arg0: i32, %arg1: memref<14x16xf32, #tpu.memory_space<vmem>>, %arg2: memref<1x16xf32, #tpu.memory_space<vmem>>, %arg3: memref<1x16xf32, #tpu.memory_space<vmem>>, %arg4: memref<16x16xbf16, #tpu.memory_space<vmem>>, %arg5: memref<1x16xf32, #tpu.memory_space<vmem>>, %arg6: memref<16x16xbf16, #tpu.memory_space<vmem>>, %arg7: memref<1x16xf32, #tpu.memory_space<vmem>>, %arg8: memref<14x16xf32, #tpu.memory_space<vmem>>) attributes {dimension_semantics = [#tpu.dimension_semantics<parallel>], iteration_bounds = array<i64: 1>, scalar_prefetch = 0 : i64, scratch_operands = 0 : i64, tpu.core_type = #tpu.core_type<tc>, window_params = [{transform_indices = @transform_0, window_bounds = array<i64: 14, 16>}, {pipeline_mode = #tpu.pipeline_mode<synchronous>, transform_indices = @transform_1, window_bounds = array<i64: 1, 16>}, {pipeline_mode = #tpu.pipeline_mode<synchronous>, transform_indices = @transform_2, window_bounds = array<i64: 1, 16>}, {pipeline_mode = #tpu.pipeline_mode<synchronous>, transform_indices = @transform_3, window_bounds = array<i64: 16, 16>}, {pipeline_mode = #tpu.pipeline_mode<synchronous>, transform_indices = @transform_4, window_bounds = array<i64: 1, 16>}, {pipeline_mode = #tpu.pipeline_mode<synchronous>, transform_indices = @transform_5, window_bounds = array<i64: 16, 16>}, {pipeline_mode = #tpu.pipeline_mode<synchronous>, transform_indices = @transform_6, window_bounds = array<i64: 1, 16>}, {transform_indices = @transform_7, window_bounds = array<i64: 14, 16>}]} {
    %c0 = arith.constant 0 : index
    %c0_0 = arith.constant 0 : index
    %0 = vector.load %arg1[%c0, %c0_0] : memref<14x16xf32, #tpu.memory_space<vmem>>, vector<14x16xf32>
    %c0_1 = arith.constant 0 : index
    %c0_2 = arith.constant 0 : index
    %1 = vector.load %arg2[%c0_1, %c0_2] : memref<1x16xf32, #tpu.memory_space<vmem>>, vector<1x16xf32>
    %c0_3 = arith.constant 0 : index
    %c0_4 = arith.constant 0 : index
    %2 = vector.load %arg3[%c0_3, %c0_4] : memref<1x16xf32, #tpu.memory_space<vmem>>, vector<1x16xf32>
    %cst = arith.constant dense<0.000000e+00> : vector<14xf32>
    %3 = vector.multi_reduction <add>, %0, %cst [1] : vector<14x16xf32> to vector<14xf32>
    %4 = vector.shape_cast %3 : vector<14xf32> to vector<14x1xf32>
    %cst_5 = arith.constant 1.600000e+01 : f32
    %5 = vector.broadcast %cst_5 : f32 to vector<14x1xf32>
    %6 = arith.divf %4, %5 : vector<14x1xf32>
    %7 = vector.broadcast %6 : vector<14x1xf32> to vector<14x16xf32>
    %8 = arith.subf %0, %7 : vector<14x16xf32>
    %9 = arith.mulf %8, %8 : vector<14x16xf32>
    %cst_6 = arith.constant dense<0.000000e+00> : vector<14xf32>
    %10 = vector.multi_reduction <add>, %9, %cst_6 [1] : vector<14x16xf32> to vector<14xf32>
    %11 = vector.shape_cast %10 : vector<14xf32> to vector<14x1xf32>
    %cst_7 = arith.constant 1.600000e+01 : f32
    %12 = vector.broadcast %cst_7 : f32 to vector<14x1xf32>
    %13 = arith.divf %11, %12 : vector<14x1xf32>
    %14 = vector.broadcast %6 : vector<14x1xf32> to vector<14x16xf32>
    %15 = arith.subf %0, %14 : vector<14x16xf32>
    %cst_8 = arith.constant 9.99999974E-6 : f32
    %16 = vector.broadcast %cst_8 : f32 to vector<14x1xf32>
    %17 = arith.addf %13, %16 : vector<14x1xf32>
    %18 = math.rsqrt %17 : vector<14x1xf32>
    %19 = vector.broadcast %18 : vector<14x1xf32> to vector<14x16xf32>
    %20 = arith.mulf %15, %19 : vector<14x16xf32>
    %21 = vector.broadcast %1 : vector<1x16xf32> to vector<14x16xf32>
    %22 = arith.mulf %20, %21 : vector<14x16xf32>
    %23 = vector.broadcast %2 : vector<1x16xf32> to vector<14x16xf32>
    %24 = arith.addf %22, %23 : vector<14x16xf32>
    %25 = arith.truncf %24 : vector<14x16xf32> to vector<14x16xbf16>
    %c0_9 = arith.constant 0 : index
    %c0_10 = arith.constant 0 : index
    %26 = vector.load %arg4[%c0_9, %c0_10] : memref<16x16xbf16, #tpu.memory_space<vmem>>, vector<16x16xbf16>
    %cst_11 = arith.constant dense<0.000000e+00> : vector<14x16xf32>
    %27 = tpu.matmul %25, %26, %cst_11 {dimension_numbers = #tpu.dot_dimension_numbers<[1], [0], [0], [1], [0, 0, 1, 1], [], []>} : vector<14x16xbf16>, vector<16x16xbf16>, vector<14x16xf32> -> vector<14x16xf32>
    %c0_12 = arith.constant 0 : index
    %c0_13 = arith.constant 0 : index
    %28 = vector.load %arg5[%c0_12, %c0_13] : memref<1x16xf32, #tpu.memory_space<vmem>>, vector<1x16xf32>
    %29 = vector.broadcast %28 : vector<1x16xf32> to vector<14x16xf32>
    %30 = arith.addf %27, %29 : vector<14x16xf32>
    %c0_14 = arith.constant 0 : index
    %c0_15 = arith.constant 0 : index
    %31 = vector.load %arg6[%c0_14, %c0_15] : memref<16x16xbf16, #tpu.memory_space<vmem>>, vector<16x16xbf16>
    %cst_16 = arith.constant dense<0.000000e+00> : vector<14x16xf32>
    %32 = tpu.matmul %25, %31, %cst_16 {dimension_numbers = #tpu.dot_dimension_numbers<[1], [0], [0], [1], [0, 0, 1, 1], [], []>} : vector<14x16xbf16>, vector<16x16xbf16>, vector<14x16xf32> -> vector<14x16xf32>
    %c0_17 = arith.constant 0 : index
    %c0_18 = arith.constant 0 : index
    %33 = vector.load %arg7[%c0_17, %c0_18] : memref<1x16xf32, #tpu.memory_space<vmem>>, vector<1x16xf32>
    %34 = vector.broadcast %33 : vector<1x16xf32> to vector<14x16xf32>
    %35 = arith.addf %32, %34 : vector<14x16xf32>
    %cst_19 = arith.constant 0.000000e+00 : f32
    %36 = vector.broadcast %cst_19 : f32 to vector<14x16xf32>
    %37 = arith.subf %36, %35 : vector<14x16xf32>
    %38 = math.exp %37 : vector<14x16xf32>
    %cst_20 = arith.constant 1.000000e+00 : f32
    %39 = vector.broadcast %cst_20 : f32 to vector<14x16xf32>
    %40 = arith.addf %39, %38 : vector<14x16xf32>
    %41 = tpu.reciprocal %40 {approx = true} : vector<14x16xf32> -> vector<14x16xf32>
    %42 = arith.mulf %30, %41 : vector<14x16xf32>
    %c0_21 = arith.constant 0 : index
    %c0_22 = arith.constant 0 : index
    %43 = vector.load %arg8[%c0_21, %c0_22] : memref<14x16xf32, #tpu.memory_space<vmem>>, vector<14x16xf32>
    tpu.vector_store %arg8[%c0_21, %c0_22], %42 {strides = array<i32>} : memref<14x16xf32, #tpu.memory_space<vmem>>, vector<14x16xf32>,
    return
  }
  func.func @transform_0(%arg0: i32) -> (i32, i32) {
    %c0_i32 = arith.constant 0 : i32
    %c0_i32_0 = arith.constant 0 : i32
    return %arg0, %c0_i32 : i32, i32
  }
  func.func @transform_1(%arg0: i32) -> (i32, i32) {
    %c0_i32 = arith.constant 0 : i32
    %c0_i32_0 = arith.constant 0 : i32
    %c0_i32_1 = arith.constant 0 : i32
    return %c0_i32, %c0_i32_0 : i32, i32
  }
  func.func @transform_2(%arg0: i32) -> (i32, i32) {
    %c0_i32 = arith.constant 0 : i32
    %c0_i32_0 = arith.constant 0 : i32
    %c0_i32_1 = arith.constant 0 : i32
    return %c0_i32, %c0_i32_0 : i32, i32
  }
  func.func @transform_3(%arg0: i32) -> (i32, i32) {
    %c0_i32 = arith.constant 0 : i32
    %c0_i32_0 = arith.constant 0 : i32
    %c0_i32_1 = arith.constant 0 : i32
    return %c0_i32, %c0_i32_0 : i32, i32
  }
  func.func @transform_4(%arg0: i32) -> (i32, i32) {
    %c0_i32 = arith.constant 0 : i32
    %c0_i32_0 = arith.constant 0 : i32
    %c0_i32_1 = arith.constant 0 : i32
    return %c0_i32, %c0_i32_0 : i32, i32
  }
  func.func @transform_5(%arg0: i32) -> (i32, i32) {
    %c0_i32 = arith.constant 0 : i32
    %c0_i32_0 = arith.constant 0 : i32
    %c0_i32_1 = arith.constant 0 : i32
    return %c0_i32, %c0_i32_0 : i32, i32
  }
  func.func @transform_6(%arg0: i32) -> (i32, i32) {
    %c0_i32 = arith.constant 0 : i32
    %c0_i32_0 = arith.constant 0 : i32
    %c0_i32_1 = arith.constant 0 : i32
    return %c0_i32, %c0_i32_0 : i32, i32
  }
  func.func @transform_7(%arg0: i32) -> (i32, i32) {
    %c0_i32 = arith.constant 0 : i32
    %c0_i32_0 = arith.constant 0 : i32
    return %arg0, %c0_i32 : i32, i32
  }
}

module attributes {stable_mosaic.version = 11 : i64} {
  func.func @_dw_bn_swish_pw_res_kernel(%arg0: i32, %arg1: memref<1x13x16xf32, #tpu.memory_space<vmem>>, %arg2: memref<1x7x16xf32, #tpu.memory_space<vmem>>, %arg3: memref<7x16xf32, #tpu.memory_space<vmem>>, %arg4: memref<1x16xf32, #tpu.memory_space<vmem>>, %arg5: memref<1x16xf32, #tpu.memory_space<vmem>>, %arg6: memref<16x16xbf16, #tpu.memory_space<vmem>>, %arg7: memref<1x16xf32, #tpu.memory_space<vmem>>, %arg8: memref<1x7x16xf32, #tpu.memory_space<vmem>>) attributes {dimension_semantics = [#tpu.dimension_semantics<parallel>], iteration_bounds = array<i64: 2>, scalar_prefetch = 0 : i64, scratch_operands = 0 : i64, tpu.core_type = #tpu.core_type<tc>, window_params = [{transform_indices = @transform_0, window_bounds = array<i64: 1, 13, 16>}, {transform_indices = @transform_1, window_bounds = array<i64: 1, 7, 16>}, {pipeline_mode = #tpu.pipeline_mode<synchronous>, transform_indices = @transform_2, window_bounds = array<i64: 7, 16>}, {pipeline_mode = #tpu.pipeline_mode<synchronous>, transform_indices = @transform_3, window_bounds = array<i64: 1, 16>}, {pipeline_mode = #tpu.pipeline_mode<synchronous>, transform_indices = @transform_4, window_bounds = array<i64: 1, 16>}, {pipeline_mode = #tpu.pipeline_mode<synchronous>, transform_indices = @transform_5, window_bounds = array<i64: 16, 16>}, {pipeline_mode = #tpu.pipeline_mode<synchronous>, transform_indices = @transform_6, window_bounds = array<i64: 1, 16>}, {transform_indices = @transform_7, window_bounds = array<i64: 1, 7, 16>}]} {
    %c0 = arith.constant 0 : index
    %c0_0 = arith.constant 0 : index
    %c0_1 = arith.constant 0 : index
    %0 = vector.load %arg1[%c0, %c0_0, %c0_1] : memref<1x13x16xf32, #tpu.memory_space<vmem>>, vector<1x13x16xf32>
    %1 = vector.shape_cast %0 : vector<1x13x16xf32> to vector<13x16xf32>
    %cst = arith.constant 0.000000e+00 : f32
    %2 = vector.broadcast %cst : f32 to vector<7x16xf32>
    %3 = vector.extract_strided_slice %1 {offsets = [0, 0], sizes = [7, 16], strides = [1, 1]} : vector<13x16xf32> to vector<7x16xf32>
    %c0_2 = arith.constant 0 : index
    %c0_3 = arith.constant 0 : index
    %4 = vector.load %arg3[%c0_2, %c0_3] : memref<7x16xf32, #tpu.memory_space<vmem>>, vector<1x16xf32>
    %5 = vector.broadcast %4 : vector<1x16xf32> to vector<7x16xf32>
    %6 = arith.mulf %3, %5 : vector<7x16xf32>
    %7 = arith.addf %2, %6 : vector<7x16xf32>
    %8 = vector.extract_strided_slice %1 {offsets = [1, 0], sizes = [7, 16], strides = [1, 1]} : vector<13x16xf32> to vector<7x16xf32>
    %c1 = arith.constant 1 : index
    %c0_4 = arith.constant 0 : index
    %9 = vector.load %arg3[%c1, %c0_4] : memref<7x16xf32, #tpu.memory_space<vmem>>, vector<1x16xf32>
    %10 = vector.broadcast %9 : vector<1x16xf32> to vector<7x16xf32>
    %11 = arith.mulf %8, %10 : vector<7x16xf32>
    %12 = arith.addf %7, %11 : vector<7x16xf32>
    %13 = vector.extract_strided_slice %1 {offsets = [2, 0], sizes = [7, 16], strides = [1, 1]} : vector<13x16xf32> to vector<7x16xf32>
    %c2 = arith.constant 2 : index
    %c0_5 = arith.constant 0 : index
    %14 = vector.load %arg3[%c2, %c0_5] : memref<7x16xf32, #tpu.memory_space<vmem>>, vector<1x16xf32>
    %15 = vector.broadcast %14 : vector<1x16xf32> to vector<7x16xf32>
    %16 = arith.mulf %13, %15 : vector<7x16xf32>
    %17 = arith.addf %12, %16 : vector<7x16xf32>
    %18 = vector.extract_strided_slice %1 {offsets = [3, 0], sizes = [7, 16], strides = [1, 1]} : vector<13x16xf32> to vector<7x16xf32>
    %c3 = arith.constant 3 : index
    %c0_6 = arith.constant 0 : index
    %19 = vector.load %arg3[%c3, %c0_6] : memref<7x16xf32, #tpu.memory_space<vmem>>, vector<1x16xf32>
    %20 = vector.broadcast %19 : vector<1x16xf32> to vector<7x16xf32>
    %21 = arith.mulf %18, %20 : vector<7x16xf32>
    %22 = arith.addf %17, %21 : vector<7x16xf32>
    %23 = vector.extract_strided_slice %1 {offsets = [4, 0], sizes = [7, 16], strides = [1, 1]} : vector<13x16xf32> to vector<7x16xf32>
    %c4 = arith.constant 4 : index
    %c0_7 = arith.constant 0 : index
    %24 = vector.load %arg3[%c4, %c0_7] : memref<7x16xf32, #tpu.memory_space<vmem>>, vector<1x16xf32>
    %25 = vector.broadcast %24 : vector<1x16xf32> to vector<7x16xf32>
    %26 = arith.mulf %23, %25 : vector<7x16xf32>
    %27 = arith.addf %22, %26 : vector<7x16xf32>
    %28 = vector.extract_strided_slice %1 {offsets = [5, 0], sizes = [7, 16], strides = [1, 1]} : vector<13x16xf32> to vector<7x16xf32>
    %c5 = arith.constant 5 : index
    %c0_8 = arith.constant 0 : index
    %29 = vector.load %arg3[%c5, %c0_8] : memref<7x16xf32, #tpu.memory_space<vmem>>, vector<1x16xf32>
    %30 = vector.broadcast %29 : vector<1x16xf32> to vector<7x16xf32>
    %31 = arith.mulf %28, %30 : vector<7x16xf32>
    %32 = arith.addf %27, %31 : vector<7x16xf32>
    %33 = vector.extract_strided_slice %1 {offsets = [6, 0], sizes = [7, 16], strides = [1, 1]} : vector<13x16xf32> to vector<7x16xf32>
    %c6 = arith.constant 6 : index
    %c0_9 = arith.constant 0 : index
    %34 = vector.load %arg3[%c6, %c0_9] : memref<7x16xf32, #tpu.memory_space<vmem>>, vector<1x16xf32>
    %35 = vector.broadcast %34 : vector<1x16xf32> to vector<7x16xf32>
    %36 = arith.mulf %33, %35 : vector<7x16xf32>
    %37 = arith.addf %32, %36 : vector<7x16xf32>
    %c0_10 = arith.constant 0 : index
    %c0_11 = arith.constant 0 : index
    %38 = vector.load %arg4[%c0_10, %c0_11] : memref<1x16xf32, #tpu.memory_space<vmem>>, vector<1x16xf32>
    %39 = vector.broadcast %38 : vector<1x16xf32> to vector<7x16xf32>
    %40 = arith.mulf %37, %39 : vector<7x16xf32>
    %c0_12 = arith.constant 0 : index
    %c0_13 = arith.constant 0 : index
    %41 = vector.load %arg5[%c0_12, %c0_13] : memref<1x16xf32, #tpu.memory_space<vmem>>, vector<1x16xf32>
    %42 = vector.broadcast %41 : vector<1x16xf32> to vector<7x16xf32>
    %43 = arith.addf %40, %42 : vector<7x16xf32>
    %cst_14 = arith.constant 0.000000e+00 : f32
    %44 = vector.broadcast %cst_14 : f32 to vector<7x16xf32>
    %45 = arith.subf %44, %43 : vector<7x16xf32>
    %46 = math.exp %45 : vector<7x16xf32>
    %cst_15 = arith.constant 1.000000e+00 : f32
    %47 = vector.broadcast %cst_15 : f32 to vector<7x16xf32>
    %48 = arith.addf %47, %46 : vector<7x16xf32>
    %49 = tpu.reciprocal %48 {approx = true} : vector<7x16xf32> -> vector<7x16xf32>
    %50 = arith.mulf %43, %49 : vector<7x16xf32>
    %51 = arith.truncf %50 : vector<7x16xf32> to vector<7x16xbf16>
    %c0_16 = arith.constant 0 : index
    %c0_17 = arith.constant 0 : index
    %52 = vector.load %arg6[%c0_16, %c0_17] : memref<16x16xbf16, #tpu.memory_space<vmem>>, vector<16x16xbf16>
    %cst_18 = arith.constant dense<0.000000e+00> : vector<7x16xf32>
    %53 = tpu.matmul %51, %52, %cst_18 {dimension_numbers = #tpu.dot_dimension_numbers<[1], [0], [0], [1], [0, 0, 1, 1], [], []>} : vector<7x16xbf16>, vector<16x16xbf16>, vector<7x16xf32> -> vector<7x16xf32>
    %c0_19 = arith.constant 0 : index
    %c0_20 = arith.constant 0 : index
    %54 = vector.load %arg7[%c0_19, %c0_20] : memref<1x16xf32, #tpu.memory_space<vmem>>, vector<1x16xf32>
    %55 = vector.broadcast %54 : vector<1x16xf32> to vector<7x16xf32>
    %56 = arith.addf %53, %55 : vector<7x16xf32>
    %c0_21 = arith.constant 0 : index
    %c0_22 = arith.constant 0 : index
    %c0_23 = arith.constant 0 : index
    %57 = vector.load %arg2[%c0_21, %c0_22, %c0_23] : memref<1x7x16xf32, #tpu.memory_space<vmem>>, vector<1x7x16xf32>
    %58 = vector.shape_cast %57 : vector<1x7x16xf32> to vector<7x16xf32>
    %59 = arith.addf %56, %58 : vector<7x16xf32>
    %c0_24 = arith.constant 0 : index
    %c0_25 = arith.constant 0 : index
    %c0_26 = arith.constant 0 : index
    %60 = vector.load %arg8[%c0_24, %c0_25, %c0_26] : memref<1x7x16xf32, #tpu.memory_space<vmem>>, vector<1x7x16xf32>
    %61 = vector.shape_cast %60 : vector<1x7x16xf32> to vector<7x16xf32>
    %62 = vector.shape_cast %59 : vector<7x16xf32> to vector<1x7x16xf32>
    tpu.vector_store %arg8[%c0_24, %c0_25, %c0_26], %62 {strides = array<i32>} : memref<1x7x16xf32, #tpu.memory_space<vmem>>, vector<1x7x16xf32>,
    return
  }
  func.func @transform_0(%arg0: i32) -> (i32, i32, i32) {
    %c0_i32 = arith.constant 0 : i32
    %c0_i32_0 = arith.constant 0 : i32
    %c0_i32_1 = arith.constant 0 : i32
    return %arg0, %c0_i32, %c0_i32_0 : i32, i32, i32
  }
  func.func @transform_1(%arg0: i32) -> (i32, i32, i32) {
    %c0_i32 = arith.constant 0 : i32
    %c0_i32_0 = arith.constant 0 : i32
    %c0_i32_1 = arith.constant 0 : i32
    return %arg0, %c0_i32, %c0_i32_0 : i32, i32, i32
  }
  func.func @transform_2(%arg0: i32) -> (i32, i32) {
    %c0_i32 = arith.constant 0 : i32
    %c0_i32_0 = arith.constant 0 : i32
    %c0_i32_1 = arith.constant 0 : i32
    return %c0_i32, %c0_i32_0 : i32, i32
  }
  func.func @transform_3(%arg0: i32) -> (i32, i32) {
    %c0_i32 = arith.constant 0 : i32
    %c0_i32_0 = arith.constant 0 : i32
    %c0_i32_1 = arith.constant 0 : i32
    return %c0_i32, %c0_i32_0 : i32, i32
  }
  func.func @transform_4(%arg0: i32) -> (i32, i32) {
    %c0_i32 = arith.constant 0 : i32
    %c0_i32_0 = arith.constant 0 : i32
    %c0_i32_1 = arith.constant 0 : i32
    return %c0_i32, %c0_i32_0 : i32, i32
  }
  func.func @transform_5(%arg0: i32) -> (i32, i32) {
    %c0_i32 = arith.constant 0 : i32
    %c0_i32_0 = arith.constant 0 : i32
    %c0_i32_1 = arith.constant 0 : i32
    return %c0_i32, %c0_i32_0 : i32, i32
  }
  func.func @transform_6(%arg0: i32) -> (i32, i32) {
    %c0_i32 = arith.constant 0 : i32
    %c0_i32_0 = arith.constant 0 : i32
    %c0_i32_1 = arith.constant 0 : i32
    return %c0_i32, %c0_i32_0 : i32, i32
  }
  func.func @transform_7(%arg0: i32) -> (i32, i32, i32) {
    %c0_i32 = arith.constant 0 : i32
    %c0_i32_0 = arith.constant 0 : i32
    %c0_i32_1 = arith.constant 0 : i32
    return %arg0, %c0_i32, %c0_i32_0 : i32, i32, i32
  }
}

module attributes {stable_mosaic.version = 11 : i64} {
  func.func @_mean_classify_kernel(%arg0: i32, %arg1: memref<2x7x16xf32, #tpu.memory_space<vmem>>, %arg2: memref<16x5xf32, #tpu.memory_space<vmem>>, %arg3: memref<2x16xf32, #tpu.memory_space<vmem>>, %arg4: memref<2x5xf32, #tpu.memory_space<vmem>>) attributes {dimension_semantics = [#tpu.dimension_semantics<arbitrary>], iteration_bounds = array<i64: 1>, scalar_prefetch = 0 : i64, scratch_operands = 0 : i64, tpu.core_type = #tpu.core_type<tc>, window_params = [{pipeline_mode = #tpu.pipeline_mode<synchronous>, transform_indices = @transform_0, window_bounds = array<i64: 2, 7, 16>}, {pipeline_mode = #tpu.pipeline_mode<synchronous>, transform_indices = @transform_1, window_bounds = array<i64: 16, 5>}, {pipeline_mode = #tpu.pipeline_mode<synchronous>, transform_indices = @transform_2, window_bounds = array<i64: 2, 16>}, {pipeline_mode = #tpu.pipeline_mode<synchronous>, transform_indices = @transform_3, window_bounds = array<i64: 2, 5>}]} {
    %c0 = arith.constant 0 : index
    %c0_0 = arith.constant 0 : index
    %c0_1 = arith.constant 0 : index
    %0 = vector.load %arg1[%c0, %c0_0, %c0_1] : memref<2x7x16xf32, #tpu.memory_space<vmem>>, vector<2x7x16xf32>
    %cst = arith.constant dense<0.000000e+00> : vector<2x16xf32>
    %1 = vector.multi_reduction <add>, %0, %cst [1] : vector<2x7x16xf32> to vector<2x16xf32>
    %cst_2 = arith.constant 7.000000e+00 : f32
    %2 = vector.broadcast %cst_2 : f32 to vector<2x16xf32>
    %3 = arith.divf %1, %2 : vector<2x16xf32>
    %c0_3 = arith.constant 0 : index
    %c0_4 = arith.constant 0 : index
    %4 = vector.load %arg3[%c0_3, %c0_4] : memref<2x16xf32, #tpu.memory_space<vmem>>, vector<2x16xf32>
    tpu.vector_store %arg3[%c0_3, %c0_4], %3 {strides = array<i32>} : memref<2x16xf32, #tpu.memory_space<vmem>>, vector<2x16xf32>,
    %c0_5 = arith.constant 0 : index
    %c0_6 = arith.constant 0 : index
    %5 = vector.load %arg2[%c0_5, %c0_6] : memref<16x5xf32, #tpu.memory_space<vmem>>, vector<16x5xf32>
    %cst_7 = arith.constant dense<0.000000e+00> : vector<2x5xf32>
    %6 = tpu.matmul %3, %5, %cst_7 {dimension_numbers = #tpu.dot_dimension_numbers<[1], [0], [0], [1], [0, 0, 1, 1], [], []>} : vector<2x16xf32>, vector<16x5xf32>, vector<2x5xf32> -> vector<2x5xf32>
    %c0_8 = arith.constant 0 : index
    %c0_9 = arith.constant 0 : index
    %7 = vector.load %arg4[%c0_8, %c0_9] : memref<2x5xf32, #tpu.memory_space<vmem>>, vector<2x5xf32>
    tpu.vector_store %arg4[%c0_8, %c0_9], %6 {strides = array<i32>} : memref<2x5xf32, #tpu.memory_space<vmem>>, vector<2x5xf32>,
    return
  }
  func.func @transform_0(%arg0: i32) -> (i32, i32, i32) {
    %c0_i32 = arith.constant 0 : i32
    %c0_i32_0 = arith.constant 0 : i32
    %c0_i32_1 = arith.constant 0 : i32
    %c0_i32_2 = arith.constant 0 : i32
    return %c0_i32, %c0_i32_0, %c0_i32_1 : i32, i32, i32
  }
  func.func @transform_1(%arg0: i32) -> (i32, i32) {
    %c0_i32 = arith.constant 0 : i32
    %c0_i32_0 = arith.constant 0 : i32
    %c0_i32_1 = arith.constant 0 : i32
    return %c0_i32, %c0_i32_0 : i32, i32
  }
  func.func @transform_2(%arg0: i32) -> (i32, i32) {
    %c0_i32 = arith.constant 0 : i32
    %c0_i32_0 = arith.constant 0 : i32
    %c0_i32_1 = arith.constant 0 : i32
    return %c0_i32, %c0_i32_0 : i32, i32
  }
  func.func @transform_3(%arg0: i32) -> (i32, i32) {
    %c0_i32 = arith.constant 0 : i32
    %c0_i32_0 = arith.constant 0 : i32
    %c0_i32_1 = arith.constant 0 : i32
    return %c0_i32, %c0_i32_0 : i32, i32
  }
}

module attributes {stable_mosaic.version = 11 : i64} {
  func.func @_layernorm_kernel(%arg0: i32, %arg1: memref<14x16xf32, #tpu.memory_space<vmem>>, %arg2: memref<1x16xf32, #tpu.memory_space<vmem>>, %arg3: memref<1x16xf32, #tpu.memory_space<vmem>>, %arg4: memref<14x16xf32, #tpu.memory_space<vmem>>) attributes {dimension_semantics = [#tpu.dimension_semantics<parallel>], iteration_bounds = array<i64: 1>, scalar_prefetch = 0 : i64, scratch_operands = 0 : i64, tpu.core_type = #tpu.core_type<tc>, window_params = [{transform_indices = @transform_0, window_bounds = array<i64: 14, 16>}, {pipeline_mode = #tpu.pipeline_mode<synchronous>, transform_indices = @transform_1, window_bounds = array<i64: 1, 16>}, {pipeline_mode = #tpu.pipeline_mode<synchronous>, transform_indices = @transform_2, window_bounds = array<i64: 1, 16>}, {transform_indices = @transform_3, window_bounds = array<i64: 14, 16>}]} {
    %c0 = arith.constant 0 : index
    %c0_0 = arith.constant 0 : index
    %0 = vector.load %arg1[%c0, %c0_0] : memref<14x16xf32, #tpu.memory_space<vmem>>, vector<14x16xf32>
    %c0_1 = arith.constant 0 : index
    %c0_2 = arith.constant 0 : index
    %1 = vector.load %arg2[%c0_1, %c0_2] : memref<1x16xf32, #tpu.memory_space<vmem>>, vector<1x16xf32>
    %c0_3 = arith.constant 0 : index
    %c0_4 = arith.constant 0 : index
    %2 = vector.load %arg3[%c0_3, %c0_4] : memref<1x16xf32, #tpu.memory_space<vmem>>, vector<1x16xf32>
    %cst = arith.constant dense<0.000000e+00> : vector<14xf32>
    %3 = vector.multi_reduction <add>, %0, %cst [1] : vector<14x16xf32> to vector<14xf32>
    %4 = vector.shape_cast %3 : vector<14xf32> to vector<14x1xf32>
    %cst_5 = arith.constant 1.600000e+01 : f32
    %5 = vector.broadcast %cst_5 : f32 to vector<14x1xf32>
    %6 = arith.divf %4, %5 : vector<14x1xf32>
    %7 = vector.broadcast %6 : vector<14x1xf32> to vector<14x16xf32>
    %8 = arith.subf %0, %7 : vector<14x16xf32>
    %9 = arith.mulf %8, %8 : vector<14x16xf32>
    %cst_6 = arith.constant dense<0.000000e+00> : vector<14xf32>
    %10 = vector.multi_reduction <add>, %9, %cst_6 [1] : vector<14x16xf32> to vector<14xf32>
    %11 = vector.shape_cast %10 : vector<14xf32> to vector<14x1xf32>
    %cst_7 = arith.constant 1.600000e+01 : f32
    %12 = vector.broadcast %cst_7 : f32 to vector<14x1xf32>
    %13 = arith.divf %11, %12 : vector<14x1xf32>
    %14 = vector.broadcast %6 : vector<14x1xf32> to vector<14x16xf32>
    %15 = arith.subf %0, %14 : vector<14x16xf32>
    %cst_8 = arith.constant 9.99999974E-6 : f32
    %16 = vector.broadcast %cst_8 : f32 to vector<14x1xf32>
    %17 = arith.addf %13, %16 : vector<14x1xf32>
    %18 = math.rsqrt %17 : vector<14x1xf32>
    %19 = vector.broadcast %18 : vector<14x1xf32> to vector<14x16xf32>
    %20 = arith.mulf %15, %19 : vector<14x16xf32>
    %21 = vector.broadcast %1 : vector<1x16xf32> to vector<14x16xf32>
    %22 = arith.mulf %20, %21 : vector<14x16xf32>
    %23 = vector.broadcast %2 : vector<1x16xf32> to vector<14x16xf32>
    %24 = arith.addf %22, %23 : vector<14x16xf32>
    %c0_9 = arith.constant 0 : index
    %c0_10 = arith.constant 0 : index
    %25 = vector.load %arg4[%c0_9, %c0_10] : memref<14x16xf32, #tpu.memory_space<vmem>>, vector<14x16xf32>
    tpu.vector_store %arg4[%c0_9, %c0_10], %24 {strides = array<i32>} : memref<14x16xf32, #tpu.memory_space<vmem>>, vector<14x16xf32>,
    return
  }
  func.func @transform_0(%arg0: i32) -> (i32, i32) {
    %c0_i32 = arith.constant 0 : i32
    %c0_i32_0 = arith.constant 0 : i32
    return %arg0, %c0_i32 : i32, i32
  }
  func.func @transform_1(%arg0: i32) -> (i32, i32) {
    %c0_i32 = arith.constant 0 : i32
    %c0_i32_0 = arith.constant 0 : i32
    %c0_i32_1 = arith.constant 0 : i32
    return %c0_i32, %c0_i32_0 : i32, i32
  }
  func.func @transform_2(%arg0: i32) -> (i32, i32) {
    %c0_i32 = arith.constant 0 : i32
    %c0_i32_0 = arith.constant 0 : i32
    %c0_i32_1 = arith.constant 0 : i32
    return %c0_i32, %c0_i32_0 : i32, i32
  }
  func.func @transform_3(%arg0: i32) -> (i32, i32) {
    %c0_i32 = arith.constant 0 : i32
    %c0_i32_0 = arith.constant 0 : i32
    return %arg0, %c0_i32 : i32, i32
  }
}

</mosaic_0001>

<bundles_post_ra>
// kernel: conformer_forward.24
= control target key start
LH: loop header
LB: loop body
LE: loop exit
PB: predicated region body
PF: predicated region fallthrough
CT: control target
= control target key end

     0   :  { %vm113_vm0 = vcmask 1043456   ;;  %vm114_vm1 = vcmask 1044480   ;;  %v389_v1 = vmov 65535   ;;  %vm70_vm2 = vcmask 72704   ;;  %s647_s1 = inlined_call_operand.vmem [shape: bf16[9,16], index: 1, kind: input, shape index: {}]   ;;  %s648_s0 = inlined_call_operand.vmem [shape: f32[210,9], index: 0, kind: input, shape index: {}]   ;;  %s649_s2 = inlined_call_operand.vmem [shape: f32[1,16], index: 2, kind: input, shape index: {}]   ;;  %s650_s3 = inlined_call_operand.vmem [shape: f32[210,16], index: 3, kind: output, shape index: {}]  }
   0x1   :  { %v388_v0 = vld [vmem:[%s647_s1] sm:$0x1f]   ;;  %v115_v2 = vsel %vm113_vm0, 4294967295, %v389_v1  ;;  %v16_v4 = vld [vmem:[%s648_s0 + $0x8] sm:$0xff]  ;;  %v17_v5 = vld [vmem:[%s648_s0 + $0x10] sm:$0xff]  ;;  %vm291_vm3 = vcmask 130048  }
   0x2   :  { %v15_v3 = vld [vmem:[%s648_s0] sm:$0xff]  ;;  %v116_v6 = vsel %vm114_vm1, %v115_v2, 0  ;;  %v18_v8 = vld [vmem:[%s648_s0 + $0x18] sm:$0xff]  ;;  %v32_v10 = vld [vmem:[%s648_s0 + $0x88] sm:$0xff]  ;;  %vm318_vm4 = vcmask 123904  }
   0x3   :  { %v42_v7 = vpack.c.bf16 %v16_v4, %v15_v3  ;;  %v31_v9 = vld [vmem:[%s648_s0 + $0x80] sm:$0xff]  ;;  %v118_v11 = vand.u32 %v388_v0, %v116_v6  ;;  %v33_v13 = vld [vmem:[%s648_s0 + $0x90] sm:$0xff]  ;;  %v34_v14 = vld [vmem:[%s648_s0 + $0x98] sm:$0xff]  ;;  %v43_v17 = vpack.c.bf16 %v18_v8, %v17_v5 }
   0x4   :  { %v50_v12 = vpack.c.bf16 %v32_v10, %v31_v9  ;;  %v19_v15 = vld [vmem:[%s648_s0 + $0x20] sm:$0xff]  ;;  %v20_v16 = vld [vmem:[%s648_s0 + $0x28] sm:$0xff]  ;;  %v51_v18 = vpack.c.bf16 %v34_v14, %v33_v13  ;;  %v21_v23 = vld [vmem:[%s648_s0 + $0x30] sm:$0xff] }
   0x5   :  { %357 = vmatprep.mubr.msk.bf16.mxu0 %vm70_vm2, %v42_v7  ;;  %355 = vmatprep.subr.bf16.mxu0 %v118_v11  ;;  %v35_v19 = vld [vmem:[%s648_s0 + $0xa0] sm:$0xff]  ;;  %v36_v20 = vld [vmem:[%s648_s0 + $0xa8] sm:$0xff]  ;;  %v44_v21 = vpack.c.bf16 %v20_v16, %v19_v15  ;;  %v22_v24 = vld [vmem:[%s648_s0 + $0x38] sm:$0xff] }
   0x6   :  { %385 = vmatprep.subr.bf16.mxu1 %v118_v11  ;;  %356 = vmatpush3.bf16.msra.mxu0 %v118_v11  ;;  %v52_v22 = vpack.c.bf16 %v36_v20, %v35_v19  ;;  %v37_v25 = vld [vmem:[%s648_s0 + $0xb0] sm:$0xff]  ;;  %v38_v26 = vld [vmem:[%s648_s0 + $0xb8] sm:$0xff]  ;;  %v23_v27 = vld [vmem:[%s648_s0 + $0x40] sm:$0xff]  ;;  %v45_v31 = vpack.c.bf16 %v22_v24, %v21_v23 }
   0x7   :  { %386 = vmatpush3.bf16.msra.mxu1 %v118_v11  ;;  %373 = vmatprep.mubr.msk.bf16.mxu1 %vm70_vm2, %v50_v12  ;;  %v24_v28 = vld [vmem:[%s648_s0 + $0x48] sm:$0xff]  ;;  %v39_v29 = vld [vmem:[%s648_s0 + $0xc0] sm:$0xff]  ;;  %v53_v32 = vpack.c.bf16 %v38_v26, %v37_v25  ;;  %v25_v35 = vld [vmem:[%s648_s0 + $0x50] sm:$0xff] }
   0x8   :  { %v40_v30 = vld [vmem:[%s648_s0 + $0xc8] sm:$0xff]  ;;  %v46_v33 = vpack.c.bf16 %v24_v28, %v23_v27  ;;  %v26_v36 = vld [vmem:[%s648_s0 + $0x58] sm:$0xff]  ;;  %v41_v37 = vld [vmem:[%s648_s0 + $0xd0] sm:$0x3] }
   0x9   :  { %358 = vmatmul.mubr.msk.bf16.vlgmr.msra.gmra.mrb[0].mxu0 %vm70_vm2, %v43_v17  ;;  %v54_v34 = vpack.c.bf16 %v40_v30, %v39_v29  ;;  %v27_v38 = vld [vmem:[%s648_s0 + $0x60] sm:$0xff]  ;;  %v28_v39 = vld [vmem:[%s648_s0 + $0x68] sm:$0xff]  ;;  %v47_v40 = vpack.c.bf16 %v26_v36, %v25_v35  ;;  %v55_v41 = vpack.c.bf16 %v41_v37, %v41_v37  ;;  %v29_v43 = vld [vmem:[%s648_s0 + $0x70] sm:$0xff] }
   0xa   :  { %374 = vmatmul.mubr.msk.bf16.vlgmr.msra.gmra.mrb[0].mxu1 %vm70_vm2, %v51_v18  ;;  %361 = vmatprep.mubr.msk.bf16.mxu0 %vm70_vm2, %v44_v21  ;;  %v48_v42 = vpack.c.bf16 %v28_v39, %v27_v38  ;;  %v30_v44 = vld [vmem:[%s648_s0 + $0x78] sm:$0xff]  ;;  %v511_v46 = vld [vmem:[%s649_s2] ss:$0 sm:$0xff] }
   0xb   :  { %377 = vmatprep.mubr.msk.bf16.mxu1 %vm70_vm2, %v52_v22  ;;  %v49_v45 = vpack.c.bf16 %v30_v44, %v29_v43 }
  0x11   :  { %362 = vmatmul.mubr.msk.bf16.gmra.mrb[4].mxu0 %vm70_vm2, %v45_v31 }
  0x12   :  { %378 = vmatmul.mubr.msk.bf16.gmra.mrb[4].mxu1 %vm70_vm2, %v53_v32  ;;  %365 = vmatprep.mubr.msk.bf16.mxu0 %vm70_vm2, %v46_v33 }
  0x13   :  { %381 = vmatprep.mubr.msk.bf16.mxu1 %vm70_vm2, %v54_v34 }
  0x19   :  { %366 = vmatmul.mubr.msk.bf16.gmra.mrb[8].mxu0 %vm70_vm2, %v47_v40 }
  0x1a   :  { %382 = vmatmul.mubr.msk.bf16.gmra.mrb[8].mxu1 %vm70_vm2, %v55_v41  ;;  %369 = vmatprep.mubr.msk.bf16.mxu0 %vm70_vm2, %v48_v42 }
  0x21   :  { %370 = vmatmul.mubr.msk.bf16.gmra.mrb[12].mxu0 %vm70_vm2, %v49_v45 }
  0xdc   :  { %v359_v47 = vpop.f32.mrb[0].mxu0 }
  0xdd   :  { %v375_v48 = vpop.f32.mrb[0].mxu1  ;;  %v163_v49 = vadd.f32 %v359_v47, %v511_v46  ;;  %v154_v50 = vpop.f32.mrb[1].mxu0 }
  0xde   :  { %v227_v51 = vadd.f32 %v375_v48, %v511_v46  ;;  %v218_v52 = vpop.f32.mrb[1].mxu1  ;;  %v155_v53 = vadd.f32 %v511_v46, %v154_v50  ;;  %v360_v54 = vpop.f32.mrb[2].mxu0 }
  0xdf   :  { %v219_v55 = vadd.f32 %v511_v46, %v218_v52  ;;  %v376_v56 = vpop.f32.mrb[2].mxu1  ;;  %v266_v57 = vmax.f32 %v163_v49, 0.0  ;;  %v166_v58 = vadd.f32 %v360_v54, %v511_v46  ;;  %v157_v59 = vpop.f32.mrb[3].mxu0 }
  0xe0   :  { %v282_v60 = vmax.f32 %v227_v51, 0.0  ;;  %v230_v61 = vadd.f32 %v376_v56, %v511_v46  ;;  %v221_v62 = vpop.f32.mrb[3].mxu1  ;;  %v264_v63 = vmax.f32 %v155_v53, 0.0  ;;  %v158_v0 = vadd.f32 %v511_v46, %v157_v59 }
  0xe1   :  { %v280_v1 = vmax.f32 %v219_v55, 0.0  ;;  %v222_v2 = vadd.f32 %v511_v46, %v221_v62  ;;  %294 = vst.msk [vmem:[%s650_s3 + $0x10] sm:$0xff] %vm291_vm3, %v266_v57  ;;  %v267_v3 = vmax.f32 %v166_v58, 0.0 }
  0xe2   :  { %310 = vst.msk [vmem:[%s650_s3 + $0x90] sm:$0xff] %vm291_vm3, %v282_v60  ;;  %v283_v4 = vmax.f32 %v230_v61, 0.0  ;;  %292 = vst.msk [vmem:[%s650_s3] sm:$0xff] %vm291_vm3, %v264_v63  ;;  %v265_v5 = vmax.f32 %v158_v0, 0.0 }
  0xe3   :  { %308 = vst.msk [vmem:[%s650_s3 + $0x80] sm:$0xff] %vm291_vm3, %v280_v1  ;;  %v281_v6 = vmax.f32 %v222_v2, 0.0  ;;  %295 = vst.msk [vmem:[%s650_s3 + $0x18] sm:$0xff] %vm291_vm3, %v267_v3 }
  0xe4   :  { %311 = vst.msk [vmem:[%s650_s3 + $0x98] sm:$0xff] %vm291_vm3, %v283_v4  ;;  %293 = vst.msk [vmem:[%s650_s3 + $0x8] sm:$0xff] %vm291_vm3, %v265_v5  ;;  %v363_v7 = vpop.f32.mrb[4].mxu0 }
  0xe5   :  { %309 = vst.msk [vmem:[%s650_s3 + $0x88] sm:$0xff] %vm291_vm3, %v281_v6  ;;  %v379_v8 = vpop.f32.mrb[4].mxu1  ;;  %v179_v9 = vadd.f32 %v363_v7, %v511_v46  ;;  %v170_v10 = vpop.f32.mrb[5].mxu0 }
  0xe6   :  { %v243_v11 = vadd.f32 %v379_v8, %v511_v46  ;;  %v234_v12 = vpop.f32.mrb[5].mxu1  ;;  %v171_v13 = vadd.f32 %v511_v46, %v170_v10  ;;  %v364_v14 = vpop.f32.mrb[6].mxu0 }
  0xe7   :  { %v235_v15 = vadd.f32 %v511_v46, %v234_v12  ;;  %v380_v16 = vpop.f32.mrb[6].mxu1  ;;  %v270_v17 = vmax.f32 %v179_v9, 0.0  ;;  %v182_v18 = vadd.f32 %v364_v14, %v511_v46  ;;  %v173_v19 = vpop.f32.mrb[7].mxu0 }
  0xe8   :  { %v286_v20 = vmax.f32 %v243_v11, 0.0  ;;  %v246_v21 = vadd.f32 %v380_v16, %v511_v46  ;;  %v237_v22 = vpop.f32.mrb[7].mxu1  ;;  %v268_v23 = vmax.f32 %v171_v13, 0.0  ;;  %v174_v24 = vadd.f32 %v511_v46, %v173_v19 }
  0xe9   :  { %v284_v25 = vmax.f32 %v235_v15, 0.0  ;;  %v238_v26 = vadd.f32 %v511_v46, %v237_v22  ;;  %298 = vst.msk [vmem:[%s650_s3 + $0x30] sm:$0xff] %vm291_vm3, %v270_v17  ;;  %v271_v27 = vmax.f32 %v182_v18, 0.0 }
  0xea   :  { %314 = vst.msk [vmem:[%s650_s3 + $0xb0] sm:$0xff] %vm291_vm3, %v286_v20  ;;  %v287_v28 = vmax.f32 %v246_v21, 0.0  ;;  %296 = vst.msk [vmem:[%s650_s3 + $0x20] sm:$0xff] %vm291_vm3, %v268_v23  ;;  %v269_v29 = vmax.f32 %v174_v24, 0.0 }
  0xeb   :  { %312 = vst.msk [vmem:[%s650_s3 + $0xa0] sm:$0xff] %vm291_vm3, %v284_v25  ;;  %v285_v30 = vmax.f32 %v238_v26, 0.0  ;;  %299 = vst.msk [vmem:[%s650_s3 + $0x38] sm:$0xff] %vm291_vm3, %v271_v27 }
  0xec   :  { %315 = vst.msk [vmem:[%s650_s3 + $0xb8] sm:$0xff] %vm291_vm3, %v287_v28  ;;  %297 = vst.msk [vmem:[%s650_s3 + $0x28] sm:$0xff] %vm291_vm3, %v269_v29  ;;  %v367_v31 = vpop.f32.mrb[8].mxu0 }
  0xed   :  { %313 = vst.msk [vmem:[%s650_s3 + $0xa8] sm:$0xff] %vm291_vm3, %v285_v30  ;;  %v383_v32 = vpop.f32.mrb[8].mxu1  ;;  %v195_v33 = vadd.f32 %v367_v31, %v511_v46  ;;  %v186_v34 = vpop.f32.mrb[9].mxu0 }
  0xee   :  { %v259_v35 = vadd.f32 %v383_v32, %v511_v46  ;;  %v250_v36 = vpop.f32.mrb[9].mxu1  ;;  %v187_v37 = vadd.f32 %v511_v46, %v186_v34  ;;  %v368_v38 = vpop.f32.mrb[10].mxu0 }
  0xef   :  { %v251_v39 = vadd.f32 %v511_v46, %v250_v36  ;;  %v384_v40 = vpop.f32.mrb[10].mxu1  ;;  %v274_v41 = vmax.f32 %v195_v33, 0.0  ;;  %v198_v42 = vadd.f32 %v368_v38, %v511_v46  ;;  %v189_v43 = vpop.f32.mrb[11].mxu0 }
  0xf0   :  { %v290_v44 = vmax.f32 %v259_v35, 0.0  ;;  %v253_v45 = vpop.f32.mrb[11].mxu1  ;;  %v272_v47 = vmax.f32 %v187_v37, 0.0  ;;  %v190_v48 = vadd.f32 %v511_v46, %v189_v43 }
  0xf1   :  { %v288_v49 = vmax.f32 %v251_v39, 0.0  ;;  %v254_v50 = vadd.f32 %v511_v46, %v253_v45  ;;  %302 = vst.msk [vmem:[%s650_s3 + $0x50] sm:$0xff] %vm291_vm3, %v274_v41  ;;  %v275_v51 = vmax.f32 %v198_v42, 0.0 }
  0xf2   :  { %319 = vst.msk [vmem:[%s650_s3 + $0xd0] sm:$0x3] %vm318_vm4, %v290_v44  ;;  %v273_v52 = vmax.f32 %v190_v48, 0.0 }
  0xf3   :  { %300 = vst.msk [vmem:[%s650_s3 + $0x40] sm:$0xff] %vm291_vm3, %v272_v47  ;;  %316 = vst.msk [vmem:[%s650_s3 + $0xc0] sm:$0xff] %vm291_vm3, %v288_v49  ;;  %v289_v53 = vmax.f32 %v254_v50, 0.0 }
  0xf4   :  { %303 = vst.msk [vmem:[%s650_s3 + $0x58] sm:$0xff] %vm291_vm3, %v275_v51  ;;  %301 = vst.msk [vmem:[%s650_s3 + $0x48] sm:$0xff] %vm291_vm3, %v273_v52  ;;  %v371_v54 = vpop.f32.mrb[12].mxu0 }
  0xf5   :  { %317 = vst.msk [vmem:[%s650_s3 + $0xc8] sm:$0xff] %vm291_vm3, %v289_v53  ;;  %v211_v55 = vadd.f32 %v371_v54, %v511_v46  ;;  %v202_v56 = vpop.f32.mrb[13].mxu0 }
  0xf6   :  { %v203_v57 = vadd.f32 %v511_v46, %v202_v56  ;;  %v372_v58 = vpop.f32.mrb[14].mxu0 }
  0xf7   :  { %v278_v59 = vmax.f32 %v211_v55, 0.0  ;;  %v214_v60 = vadd.f32 %v372_v58, %v511_v46  ;;  %v205_v61 = vpop.f32.mrb[15].mxu0 }
  0xf8   :  { %v276_v62 = vmax.f32 %v203_v57, 0.0  ;;  %v206_v63 = vadd.f32 %v511_v46, %v205_v61 }
  0xf9   :  { %306 = vst.msk [vmem:[%s650_s3 + $0x70] sm:$0xff] %vm291_vm3, %v278_v59  ;;  %v279_v0 = vmax.f32 %v214_v60, 0.0 }
  0xfa   :  { %304 = vst.msk [vmem:[%s650_s3 + $0x60] sm:$0xff] %vm291_vm3, %v276_v62  ;;  %v277_v1 = vmax.f32 %v206_v63, 0.0 }
  0xfb   :  { %307 = vst.msk [vmem:[%s650_s3 + $0x78] sm:$0xff] %vm291_vm3, %v279_v0 }
  0xfc   :  { %305 = vst.msk [vmem:[%s650_s3 + $0x68] sm:$0xff] %vm291_vm3, %v277_v1 }

// kernel: conformer_forward.25
= control target key start
LH: loop header
LB: loop body
LE: loop exit
PB: predicated region body
PF: predicated region fallthrough
CT: control target
= control target key end

     0   :  { %v237_v0 = vmov 0   ;;  %vm112_vm0 = vcmask 130048   ;;  %vm190_vm1 = vcmask 123904   ;;  %s350_s1 = inlined_call_operand.vmem [shape: bf16[144,16], index: 1, kind: input, shape index: {}]   ;;  %s351_s0 = inlined_call_operand.vmem [shape: f32[42,144], index: 0, kind: input, shape index: {}]   ;;  %s352_s2 = inlined_call_operand.vmem [shape: f32[1,16], index: 2, kind: input, shape index: {}]   ;;  %s353_s3 = inlined_call_operand.vmem [shape: f32[42,16], index: 3, kind: output, shape index: {}]  }
   0x1   :  { %209 = vmatprep.subr.bf16.mxu1 %v237_v0  ;;  %v228_v1 = vld [vmem:[%s350_s1] sm:$0xff]   ;;  %122 = vmatprep.subr.bf16.mxu0 %v237_v0  ;;  %v229_v2 = vld [vmem:[%s350_s1 + $0x8] sm:$0xff]   ;;  %v230_v3 = vld [vmem:[%s350_s1 + $0x10] sm:$0xff]  }
   0x2   :  { %218 = vmatpush1.bf16.msra.mxu1 %v228_v1  ;;  %123 = vmatpush1.bf16.msra.mxu0 %v228_v1  ;;  %v20_v4 = vld [vmem:[%s351_s0 + $0x28] sm:$0xff]  ;;  %v22_v5 = vld [vmem:[%s351_s0 + $0x38] sm:$0xff]  ;;  %v232_v11 = vld [vmem:[%s350_s1 + $0x20] sm:$0xff]  }
   0x3   :  { %210 = vmatprep.subr.bf16.mxu1 %v237_v0  ;;  %124 = vmatprep.subr.bf16.mxu0 %v237_v0  ;;  %v231_v6 = vld [vmem:[%s350_s1 + $0x18] sm:$0xff]   ;;  %v30_v7 = vpack.c.bf16 %v22_v5, %v20_v4  ;;  %v16_v8 = vld [vmem:[%s351_s0 + $0x8] sm:$0xff]  ;;  %v234_v13 = vld [vmem:[%s350_s1 + $0x30] sm:$0xff]  }
   0x4   :  { %v18_v9 = vld [vmem:[%s351_s0 + $0x18] sm:$0xff]  ;;  %v233_v12 = vld [vmem:[%s350_s1 + $0x28] sm:$0xff]   ;;  %v236_v15 = vld [vmem:[%s350_s1 + $0x40] sm:$0xff]  }
   0x5   :  { %v28_v10 = vpack.c.bf16 %v18_v9, %v16_v8  ;;  %207 = vmatprep.mubr.msk.bf16.mxu1 %vm112_vm0, %v30_v7  ;;  %v235_v14 = vld [vmem:[%s350_s1 + $0x38] sm:$0xff]   ;;  %v19_v16 = vld [vmem:[%s351_s0 + $0x20] sm:$0xff]  ;;  %v21_v17 = vld [vmem:[%s351_s0 + $0x30] sm:$0xff] }
   0x6   :  { %219 = vmatpush1.bf16.msra.mxu1 %v229_v2  ;;  %125 = vmatpush1.bf16.msra.mxu0 %v229_v2  ;;  %v15_v18 = vld [vmem:[%s351_s0] sm:$0xff]  ;;  %v17_v19 = vld [vmem:[%s351_s0 + $0x10] sm:$0xff]  ;;  %v24_v20 = vld [vmem:[%s351_s0 + $0x48] sm:$0xff]  ;;  %v29_v22 = vpack.c.bf16 %v21_v17, %v19_v16 }
   0x7   :  { %211 = vmatprep.subr.bf16.mxu1 %v237_v0  ;;  %126 = vmatprep.subr.bf16.mxu0 %v237_v0  ;;  %v26_v21 = vld [vmem:[%s351_s0 + $0x58] sm:$0x3]  ;;  %v27_v23 = vpack.c.bf16 %v17_v19, %v15_v18  ;;  %v23_v25 = vld [vmem:[%s351_s0 + $0x40] sm:$0xff]  ;;  %v25_v26 = vld [vmem:[%s351_s0 + $0x50] sm:$0x3] }
   0x8   :  { %206 = vmatprep.mubr.msk.bf16.mxu0 %vm112_vm0, %v28_v10  ;;  %v32_v24 = vpack.c.bf16 %v26_v21, %v24_v20  ;;  %v31_v27 = vpack.c.bf16 %v25_v26, %v23_v25  ;;  %v196_v28 = vld [vmem:[%s352_s2] ss:$0 sm:$0xff] }
   0xa   :  { %220 = vmatpush1.bf16.msra.mxu1 %v230_v3  ;;  %127 = vmatpush1.bf16.msra.mxu0 %v230_v3 }
   0xb   :  { %212 = vmatprep.subr.bf16.mxu1 %v237_v0  ;;  %128 = vmatprep.subr.bf16.mxu0 %v237_v0 }
   0xe   :  { %221 = vmatpush1.bf16.msra.mxu1 %v231_v6  ;;  %129 = vmatpush1.bf16.msra.mxu0 %v231_v6 }
   0xf   :  { %213 = vmatprep.subr.bf16.mxu1 %v237_v0  ;;  %130 = vmatprep.subr.bf16.mxu0 %v237_v0 }
  0x12   :  { %222 = vmatpush1.bf16.msra.mxu1 %v232_v11  ;;  %131 = vmatpush1.bf16.msra.mxu0 %v232_v11 }
  0x13   :  { %214 = vmatprep.subr.bf16.mxu1 %v237_v0  ;;  %132 = vmatprep.subr.bf16.mxu0 %v237_v0 }
  0x16   :  { %223 = vmatpush1.bf16.msra.mxu1 %v233_v12  ;;  %133 = vmatpush1.bf16.msra.mxu0 %v233_v12 }
  0x17   :  { %215 = vmatprep.subr.bf16.mxu1 %v237_v0  ;;  %134 = vmatprep.subr.bf16.mxu0 %v237_v0 }
  0x1a   :  { %224 = vmatpush1.bf16.msra.mxu1 %v234_v13  ;;  %135 = vmatpush1.bf16.msra.mxu0 %v234_v13 }
  0x1b   :  { %216 = vmatprep.subr.bf16.mxu1 %v237_v0  ;;  %136 = vmatprep.subr.bf16.mxu0 %v237_v0 }
  0x1e   :  { %225 = vmatpush1.bf16.msra.mxu1 %v235_v14  ;;  %137 = vmatpush1.bf16.msra.mxu0 %v235_v14 }
  0x1f   :  { %217 = vmatprep.subr.bf16.mxu1 %v237_v0  ;;  %138 = vmatprep.subr.bf16.mxu0 %v237_v0 }
  0x22   :  { %226 = vmatpush1.bf16.msra.mxu1 %v236_v15  ;;  %139 = vmatpush1.bf16.msra.mxu0 %v236_v15 }
  0x25   :  { %163 = vmatmul.mubr.bf16.vlgmr.msra.gmra.mrb[0].mxu1 %v29_v22  ;;  %155 = vmatmul.mubr.bf16.vlgmr.msra.gmra.mrb[0].mxu0 %v27_v23 }
  0x26   :  { %208 = vmatprep.mubr.msk.bf16.mxu1 %vm112_vm0, %v32_v24 }
  0x2d   :  { %171 = vmatmul.mubr.bf16.gmra.mrb[4].mxu1 %v31_v27 }
  0xf8   :  { %v164_v29 = vpop.f32.mrb[0].mxu1  ;;  %v156_v30 = vpop.f32.mrb[0].mxu0 }
  0xf9   :  { %v165_v31 = vadd.f32 %v196_v28, %v164_v29  ;;  %v166_v32 = vpop.f32.mrb[1].mxu1  ;;  %v157_v33 = vadd.f32 %v196_v28, %v156_v30  ;;  %v158_v34 = vpop.f32.mrb[1].mxu0 }
  0xfa   :  { %v167_v35 = vpop.f32.mrb[2].mxu1  ;;  %v159_v36 = vpop.f32.mrb[2].mxu0 }
  0xfb   :  { %v181_v37 = vmax.f32 %v165_v31, 0.0  ;;  %v168_v38 = vadd.f32 %v196_v28, %v167_v35  ;;  %v169_v39 = vpop.f32.mrb[3].mxu1  ;;  %v179_v40 = vmax.f32 %v157_v33, 0.0  ;;  %v160_v41 = vadd.f32 %v196_v28, %v159_v36  ;;  %v161_v42 = vpop.f32.mrb[3].mxu0 }
  0xfd   :  { %187 = vst.msk [vmem:[%s353_s3 + $0x10] sm:$0xff] %vm112_vm0, %v181_v37  ;;  %v182_v43 = vmax.f32 %v168_v38, 0.0  ;;  %185 = vst.msk [vmem:[%s353_s3] sm:$0xff] %vm112_vm0, %v179_v40  ;;  %v180_v44 = vmax.f32 %v160_v41, 0.0 }
  0xff   :  { %188 = vst.msk [vmem:[%s353_s3 + $0x18] sm:$0xff] %vm112_vm0, %v182_v43  ;;  %186 = vst.msk [vmem:[%s353_s3 + $0x8] sm:$0xff] %vm112_vm0, %v180_v44 }
 0x100   :  { %v172_v45 = vpop.f32.mrb[4].mxu1 }
 0x101   :  { %v173_v46 = vadd.f32 %v196_v28, %v172_v45  ;;  %v174_v47 = vpop.f32.mrb[5].mxu1 }
 0x102   :  { %v175_v48 = vpop.f32.mrb[6].mxu1 }
 0x103   :  { %v183_v49 = vmax.f32 %v173_v46, 0.0  ;;  %v176_v50 = vadd.f32 %v196_v28, %v175_v48  ;;  %v177_v51 = vpop.f32.mrb[7].mxu1 }
 0x105   :  { %189 = vst.msk [vmem:[%s353_s3 + $0x20] sm:$0xff] %vm112_vm0, %v183_v49  ;;  %v184_v52 = vmax.f32 %v176_v50, 0.0 }
 0x107   :  { %191 = vst.msk [vmem:[%s353_s3 + $0x28] sm:$0x3] %vm190_vm1, %v184_v52 }

// kernel: conformer_forward.26
= control target key start
LH: loop header
LB: loop body
LE: loop exit
PB: predicated region body
PF: predicated region fallthrough
CT: control target
= control target key end

     0   :  { %v126_v0 = vmov 0.0   ;;  %vm127_vm0 = vmmov 0   ;;  %vm49_vm1 = vcmask 392192   ;;  %vm94_vm2 = vcmask 130048   ;;  %s172_s1 = inlined_call_operand.vmem [shape: bf16[48,16], index: 1, kind: input, shape index: {}]   ;;  %s173_s0 = inlined_call_operand.vmem [shape: f32[14,48], index: 0, kind: input, shape index: {}]   ;;  %s174_s2 = inlined_call_operand.vmem [shape: f32[1,16], index: 2, kind: input, shape index: {}]   ;;  %s175_s3 = inlined_call_operand.vmem [shape: f32[14,16], index: 3, kind: output, shape index: {}]  }
   0x1   :  { %111 = vmatprep.subr.bf16.mxu0 %v126_v0  ;;  %v123_v1 = vld [vmem:[%s172_s1] sm:$0xff]   ;;  %117 = vmatprep.mubr.msk.bf16.mxu0 %vm127_vm0, %v126_v0  ;;  %v124_v2 = vld [vmem:[%s172_s1 + $0x8] sm:$0xff]   ;;  %v125_v3 = vld [vmem:[%s172_s1 + $0x10] sm:$0xff]   ;;  %vm96_vm3 = vcmask 128000  }
   0x2   :  { %112 = vmatpush3.bf16.msra.mxu0 %v123_v1  ;;  %v15_v4 = vld [vmem:[%s173_s0] sm:$0xff]  ;;  %v16_v5 = vld [vmem:[%s173_s0 + $0x8] sm:$0x3f] }
   0x3   :  { %113 = vmatprep.subr.bf16.mxu0 %v126_v0  ;;  %v17_v6 = vpack.c.bf16 %v16_v5, %v15_v4  ;;  %v102_v7 = vld [vmem:[%s174_s2] ss:$0 sm:$0xff] }
   0x6   :  { %114 = vmatpush3.bf16.msra.mxu0 %v124_v2 }
   0x7   :  { %115 = vmatprep.subr.bf16.mxu0 %v126_v0 }
   0xa   :  { %116 = vmatpush3.bf16.msra.mxu0 %v125_v3 }
   0xd   :  { %118 = vmatmul.mubr.msk.bf16.vlgmr.msra.gmra.mrb[0].mxu0 %vm49_vm1, %v17_v6 }
  0xe0   :  { %v87_v8 = vpop.f32.mrb[0].mxu0 }
  0xe1   :  { %v88_v9 = vadd.f32 %v102_v7, %v87_v8  ;;  %v119_v10 = vpop.f32.mrb[1].mxu0 }
  0xe2   :  { %v90_v11 = vpop.f32.mrb[2].mxu0 }
  0xe3   :  { %95 = vst.msk [vmem:[%s175_s3] sm:$0xff] %vm94_vm2, %v88_v9  ;;  %v91_v12 = vadd.f32 %v102_v7, %v90_v11  ;;  %v120_v13 = vpop.f32.mrb[3].mxu0 }
  0xe5   :  { %97 = vst.msk [vmem:[%s175_s3 + $0x8] sm:$0x3f] %vm96_vm3, %v91_v12 }

// kernel: conformer_forward.28
= control target key start
LH: loop header
LB: loop body
LE: loop exit
PB: predicated region body
PF: predicated region fallthrough
CT: control target
= control target key end

     0   :  { %vm25_vm0 = vcmask 130048   ;;  %vm29_vm1 = vcmask 128000   ;;  %v158_v14 = vmov 0.0   ;;  %vm159_vm2 = vmmov 0   ;;  %s217_s0 = inlined_call_operand.vmem [shape: f32[14,16], index: 0, kind: input, shape index: {}]   ;;  %s218_s3 = inlined_call_operand.vmem [shape: bf16[16,48], index: 3, kind: input, shape index: {}]   ;;  %s219_s1 = inlined_call_operand.vmem [shape: f32[1,16], index: 1, kind: input, shape index: {}]   ;;  %s220_s2 = inlined_call_operand.vmem [shape: f32[1,16], index: 2, kind: input, shape index: {}]   ;;  %s221_s4 = inlined_call_operand.vmem [shape: f32[1,48], index: 4, kind: input, shape index: {}]   ;;  %s222_s5 = inlined_call_operand.vmem [shape: f32[14,48], index: 5, kind: output, shape index: {}]  }
   0x1   :  { %v21_v0 = vld [vmem:[%s217_s0] sm:$0xff]  ;;  %v22_v1 = vld [vmem:[%s217_s0 + $0x8] sm:$0x3f]  ;;  %145 = vmatprep.subr.bf16.mxu0 %v158_v14  ;;  %147 = vmatprep.mubr.msk.bf16.mxu0 %vm159_vm2, %v158_v14  ;;  %vm130_vm3 = vcmask 392192   ;;  %vm132_vm4 = vcmask 390144  }
   0x2   :  { %v26_v2 = vsel %vm25_vm0, %v21_v0, 0.0  ;;  %v30_v3 = vsel %vm29_vm1, %v22_v1, 0.0  ;;  %v153_v15 = vld [vmem:[%s218_s3] sm:$0xff]  }
   0x3   :  { %27 = vadd.xlane.f32.xlu0 %v26_v2  ;;  %146 = vmatpush3.bf16.msra.mxu0 %v153_v15  ;;  %v138_v24 = vld [vmem:[%s219_s1] ss:$0 sm:$0xff] }
   0x4   :  { %v139_v28 = vld [vmem:[%s220_s2] ss:$0 sm:$0xff] }
   0x5   :  { %v140_v33 = vld [vmem:[%s221_s4] ss:$0 sm:$0xff] }
   0x7   :  { %31 = vadd.xlane.f32.xlu0 %v30_v3 }
  0x90   :  { %v28_v4 = vpop.xlane.xlu0 %27 }
  0x91   :  { %v34_v5 = vmul.f32 0.0625, %v28_v4 }
  0x93   :  { %v36_v6 = vsub.f32 %v21_v0, %v34_v5 }
  0x94   :  { %v32_v7 = vpop.xlane.xlu0 %31 }
  0x95   :  { %v35_v8 = vmul.f32 0.0625, %v32_v7  ;;  %v38_v9 = vmul.f32 %v36_v6, %v36_v6 }
  0x97   :  { %v37_v10 = vsub.f32 %v22_v1, %v35_v8  ;;  %v40_v11 = vsel %vm25_vm0, %v38_v9, 0.0 }
  0x98   :  { %41 = vadd.xlane.f32.xlu1 %v40_v11 }
  0x99   :  { %v39_v12 = vmul.f32 %v37_v10, %v37_v10 }
  0x9b   :  { %v43_v13 = vsel %vm29_vm1, %v39_v12, 0.0 }
  0x9c   :  { %44 = vadd.xlane.f32.xlu1 %v43_v13 }
 0x125   :  { %v42_v16 = vpop.xlane.xlu1 %41 }
 0x126   :  { %v46_v17 = vmul.f32 0.0625, %v42_v16 }
 0x128   :  { %v48_v18 = vadd.f32 1e-05, %v46_v17 }
 0x129   :  { %v45_v19 = vpop.xlane.xlu1 %44 }
 0x12a   :  { %154 = vrsqrt.f32 %v48_v18  ;;  %v47_v20 = vmul.f32 0.0625, %v45_v19 }
 0x12c   :  { %v49_v21 = vadd.f32 1e-05, %v47_v20 }
 0x12e   :  { %156 = vrsqrt.f32 %v49_v21 }
 0x134   :  { %v155_v22 = vpop.eup %154 }
 0x135   :  { %v52_v23 = vmul.f32 %v155_v22, %v36_v6 }
 0x137   :  { %v60_v27 = vmul.f32 %v138_v24, %v52_v23 }
 0x138   :  { %v157_v25 = vpop.eup %156 }
 0x139   :  { %v53_v26 = vmul.f32 %v157_v25, %v37_v10  ;;  %v68_v30 = vadd.f32 %v139_v28, %v60_v27 }
 0x13b   :  { %v61_v29 = vmul.f32 %v138_v24, %v53_v26 }
 0x13d   :  { %v69_v31 = vadd.f32 %v139_v28, %v61_v29 }
 0x13f   :  { %v70_v32 = vpack.c.bf16 %v69_v31, %v68_v30 }
 0x141   :  { %148 = vmatmul.mubr.msk.bf16.vlgmr.msra.gmra.mrb[0].mxu0 %vm25_vm0, %v70_v32 }
 0x214   :  { %v123_v34 = vpop.f32.mrb[0].mxu0 }
 0x215   :  { %v124_v35 = vadd.f32 %v140_v33, %v123_v34  ;;  %v149_v36 = vpop.f32.mrb[1].mxu0 }
 0x216   :  { %v126_v37 = vpop.f32.mrb[2].mxu0 }
 0x217   :  { %131 = vst.msk [vmem:[%s222_s5] sm:$0xff] %vm130_vm3, %v124_v35  ;;  %v127_v38 = vadd.f32 %v140_v33, %v126_v37  ;;  %v150_v39 = vpop.f32.mrb[3].mxu0 }
 0x219   :  { %133 = vst.msk [vmem:[%s222_s5 + $0x8] sm:$0x3f] %vm132_vm4, %v127_v38 }

// kernel: conformer_forward.27
= control target key start
LH: loop header
LB: loop body
LE: loop exit
PB: predicated region body
PF: predicated region fallthrough
CT: control target
= control target key end

     0   :  { %vm31_vm0 = vcmask 130048   ;;  %vm35_vm1 = vcmask 128000   ;;  %v294_v14 = vmov 0.0   ;;  %vm295_vm2 = vmmov 0   ;;  %s382_s0 = inlined_call_operand.vmem [shape: f32[14,16], index: 0, kind: input, shape index: {}]   ;;  %s383_s3 = inlined_call_operand.vmem [shape: bf16[16,64], index: 3, kind: input, shape index: {}]   ;;  %s384_s1 = inlined_call_operand.vmem [shape: f32[1,16], index: 1, kind: input, shape index: {}]   ;;  %s385_s2 = inlined_call_operand.vmem [shape: f32[1,16], index: 2, kind: input, shape index: {}]   ;;  %s386_s5 = inlined_call_operand.vmem [shape: bf16[64,16], index: 5, kind: input, shape index: {}]   ;;  %s387_s4 = inlined_call_operand.vmem [shape: f32[1,64], index: 4, kind: input, shape index: {}]   ;;  %s388_s6 = inlined_call_operand.vmem [shape: f32[1,16], index: 6, kind: input, shape index: {}]   ;;  %s389_s7 = inlined_call_operand.vmem [shape: f32[14,16], index: 7, kind: output, shape index: {}]  }
   0x1   :  { %v27_v0 = vld [vmem:[%s382_s0] sm:$0xff]  ;;  %v28_v1 = vld [vmem:[%s382_s0 + $0x8] sm:$0x3f]  ;;  %257 = vmatprep.subr.bf16.mxu0 %v294_v14  ;;  %259 = vmatprep.mubr.msk.bf16.mxu0 %vm295_vm2, %v294_v14  ;;  %v280_v35 = vld [vmem:[%s386_s5 + $0x10] sm:$0xff]   ;;  %vm188_vm3 = vcmask 523264  }
   0x2   :  { %v32_v2 = vsel %vm31_vm0, %v27_v0, 0.0  ;;  %v36_v3 = vsel %vm35_vm1, %v28_v1, 0.0  ;;  %v277_v15 = vld [vmem:[%s383_s3] sm:$0xff]   ;;  %263 = vmatprep.subr.bf16.mxu1 %v294_v14  ;;  %271 = vmatprep.mubr.msk.bf16.mxu1 %vm295_vm2, %v294_v14  ;;  %v279_v34 = vld [vmem:[%s386_s5 + $0x8] sm:$0xff]   ;;  %v281_v36 = vld [vmem:[%s386_s5 + $0x18] sm:$0xff]  }
   0x3   :  { %33 = vadd.xlane.f32.xlu0 %v32_v2  ;;  %258 = vmatpush3.bf16.msra.mxu0 %v277_v15  ;;  %v239_v24 = vld [vmem:[%s384_s1] ss:$0 sm:$0xff] }
   0x4   :  { %v240_v28 = vld [vmem:[%s385_s2] ss:$0 sm:$0xff] }
   0x5   :  { %v278_v33 = vld [vmem:[%s386_s5] sm:$0xff]  }
   0x6   :  { %264 = vmatpush3.bf16.msra.mxu1 %v278_v33  ;;  %v241_v37 = vld [vmem:[%s387_s4] ss:$0 sm:$0xff] }
   0x7   :  { %37 = vadd.xlane.f32.xlu0 %v36_v3  ;;  %265 = vmatprep.subr.bf16.mxu1 %v294_v14  ;;  %v244_v57 = vld [vmem:[%s388_s6] ss:$0 sm:$0xff] }
   0xa   :  { %266 = vmatpush3.bf16.msra.mxu1 %v279_v34 }
   0xb   :  { %267 = vmatprep.subr.bf16.mxu1 %v294_v14 }
   0xe   :  { %268 = vmatpush3.bf16.msra.mxu1 %v280_v35 }
   0xf   :  { %269 = vmatprep.subr.bf16.mxu1 %v294_v14 }
  0x12   :  { %270 = vmatpush3.bf16.msra.mxu1 %v281_v36 }
  0x90   :  { %v34_v4 = vpop.xlane.xlu0 %33 }
  0x91   :  { %v40_v5 = vmul.f32 0.0625, %v34_v4 }
  0x93   :  { %v42_v6 = vsub.f32 %v27_v0, %v40_v5 }
  0x94   :  { %v38_v7 = vpop.xlane.xlu0 %37 }
  0x95   :  { %v41_v8 = vmul.f32 0.0625, %v38_v7  ;;  %v44_v9 = vmul.f32 %v42_v6, %v42_v6 }
  0x97   :  { %v43_v10 = vsub.f32 %v28_v1, %v41_v8  ;;  %v46_v11 = vsel %vm31_vm0, %v44_v9, 0.0 }
  0x98   :  { %47 = vadd.xlane.f32.xlu1 %v46_v11 }
  0x99   :  { %v45_v12 = vmul.f32 %v43_v10, %v43_v10 }
  0x9b   :  { %v49_v13 = vsel %vm35_vm1, %v45_v12, 0.0 }
  0x9c   :  { %50 = vadd.xlane.f32.xlu1 %v49_v13 }
 0x125   :  { %v48_v16 = vpop.xlane.xlu1 %47 }
 0x126   :  { %v52_v17 = vmul.f32 0.0625, %v48_v16 }
 0x128   :  { %v54_v18 = vadd.f32 1e-05, %v52_v17 }
 0x129   :  { %v51_v19 = vpop.xlane.xlu1 %50 }
 0x12a   :  { %282 = vrsqrt.f32 %v54_v18  ;;  %v53_v20 = vmul.f32 0.0625, %v51_v19 }
 0x12c   :  { %v55_v21 = vadd.f32 1e-05, %v53_v20 }
 0x12e   :  { %284 = vrsqrt.f32 %v55_v21 }
 0x134   :  { %v283_v22 = vpop.eup %282 }
 0x135   :  { %v58_v23 = vmul.f32 %v283_v22, %v42_v6 }
 0x137   :  { %v66_v27 = vmul.f32 %v239_v24, %v58_v23 }
 0x138   :  { %v285_v25 = vpop.eup %284 }
 0x139   :  { %v59_v26 = vmul.f32 %v285_v25, %v43_v10  ;;  %v74_v30 = vadd.f32 %v240_v28, %v66_v27 }
 0x13b   :  { %v67_v29 = vmul.f32 %v239_v24, %v59_v26 }
 0x13d   :  { %v75_v31 = vadd.f32 %v240_v28, %v67_v29 }
 0x13f   :  { %v76_v32 = vpack.c.bf16 %v75_v31, %v74_v30 }
 0x141   :  { %260 = vmatmul.mubr.msk.bf16.vlgmr.msra.gmra.mrb[0].mxu0 %vm31_vm0, %v76_v32 }
 0x214   :  { %v129_v38 = vpop.f32.mrb[0].mxu0 }
 0x215   :  { %v130_v39 = vadd.f32 %v241_v37, %v129_v38  ;;  %v261_v40 = vpop.f32.mrb[1].mxu0 }
 0x216   :  { %v132_v41 = vpop.f32.mrb[2].mxu0 }
 0x217   :  { %v136_v42 = vsub.f32 0.0, %v130_v39  ;;  %v133_v43 = vadd.f32 %v241_v37, %v132_v41  ;;  %v262_v44 = vpop.f32.mrb[3].mxu0 }
 0x219   :  { %v138_v45 = vmul.f32 1.442695, %v136_v42  ;;  %v137_v46 = vsub.f32 0.0, %v133_v43 }
 0x21b   :  { %286 = vpow2.f32 %v138_v45  ;;  %v140_v47 = vmul.f32 1.442695, %v137_v46 }
 0x21d   :  { %288 = vpow2.f32 %v140_v47 }
 0x225   :  { %v287_v48 = vpop.eup %286 }
 0x226   :  { %v142_v49 = vadd.f32 1.0, %v287_v48 }
 0x227   :  { %v289_v50 = vpop.eup %288 }
 0x228   :  { %290 = vrcp.f32 %v142_v49  ;;  %v143_v51 = vadd.f32 1.0, %v289_v50 }
 0x22a   :  { %292 = vrcp.f32 %v143_v51 }
 0x232   :  { %v291_v52 = vpop.eup %290 }
 0x233   :  { %v146_v54 = vmul.f32 %v291_v52, %v130_v39 }
 0x234   :  { %v293_v53 = vpop.eup %292 }
 0x235   :  { %v147_v55 = vmul.f32 %v293_v53, %v133_v43 }
 0x237   :  { %v148_v56 = vpack.c.bf16 %v147_v55, %v146_v54 }
 0x239   :  { %272 = vmatmul.mubr.msk.bf16.vlgmr.msra.gmra.mrb[0].mxu1 %vm188_vm3, %v148_v56 }
 0x30c   :  { %v226_v58 = vpop.f32.mrb[0].mxu1 }
 0x30d   :  { %v227_v59 = vadd.f32 %v244_v57, %v226_v58  ;;  %v273_v60 = vpop.f32.mrb[1].mxu1 }
 0x30e   :  { %v229_v61 = vpop.f32.mrb[2].mxu1 }
 0x30f   :  { %233 = vst.msk [vmem:[%s389_s7] sm:$0xff] %vm31_vm0, %v227_v59  ;;  %v230_v62 = vadd.f32 %v244_v57, %v229_v61  ;;  %v274_v63 = vpop.f32.mrb[3].mxu1 }
 0x311   :  { %234 = vst.msk [vmem:[%s389_s7 + $0x8] sm:$0x3f] %vm35_vm1, %v230_v62 }

// kernel: conformer_forward.29
= control target key start
LH: loop header
LB: loop body
LE: loop exit
PB: predicated region body
PF: predicated region fallthrough
CT: control target
= control target key end

     0   :  { %v96_v0 = vmov 0.0   ;;  %vm97_vm0 = vmmov 0   ;;  %vm32_vm1 = vcmask 130048   ;;  %vm76_vm2 = vcmask 129024   ;;  %s130_s1 = inlined_call_operand.vmem [shape: bf16[16,16], index: 1, kind: input, shape index: {}]   ;;  %s131_s0 = inlined_call_operand.vmem [shape: f32[7,16], index: 0, kind: input, shape index: {}]   ;;  %s132_s2 = inlined_call_operand.vmem [shape: f32[1,16], index: 2, kind: input, shape index: {}]   ;;  %s133_s3 = inlined_call_operand.vmem [shape: f32[7,16], index: 3, kind: output, shape index: {}]  }
   0x1   :  { %87 = vmatprep.subr.bf16.mxu0 %v96_v0  ;;  %v95_v1 = vld [vmem:[%s130_s1] sm:$0xff]   ;;  %89 = vmatprep.mubr.msk.bf16.mxu0 %vm97_vm0, %v96_v0 }
   0x2   :  { %v15_v2 = vld [vmem:[%s131_s0] sm:$0x7f]  ;;  %88 = vmatpush3.bf16.msra.mxu0 %v95_v1 }
   0x3   :  { %v16_v3 = vpack.c.bf16 %v15_v2, %v15_v2  ;;  %v82_v4 = vld [vmem:[%s132_s2] ss:$0 sm:$0xff] }
   0x5   :  { %90 = vmatmul.mubr.msk.bf16.vlgmr.msra.gmra.mrb[0].mxu0 %vm32_vm1, %v16_v3 }
  0xd8   :  { %v70_v5 = vpop.f32.mrb[0].mxu0 }
  0xd9   :  { %v71_v6 = vadd.f32 %v82_v4, %v70_v5  ;;  %v91_v7 = vpop.f32.mrb[1].mxu0 }
  0xda   :  { %v73_v8 = vpop.f32.mrb[2].mxu0 }
  0xdb   :  { %77 = vst.msk [vmem:[%s133_s3] sm:$0x7f] %vm76_vm2, %v71_v6  ;;  %v92_v9 = vpop.f32.mrb[3].mxu0 }

// kernel: conformer_forward.30
= control target key start
LH: loop header
LB: loop body
LE: loop exit
PB: predicated region body
PF: predicated region fallthrough
CT: control target
= control target key end

     0   :  { %s511_s12 = smov 0   ;;  %s513_s13 = smov 0   ;;  %s560_s0 = inlined_call_operand.vmem [shape: f32[2,2,7,8], index: 0, kind: input, shape index: {}]   ;;  %s561_s1 = inlined_call_operand.vmem [shape: f32[2,7,8], index: 1, kind: input, shape index: {}]   ;;  %s562_s2 = inlined_call_operand.vmem [shape: f32[2,1,8], index: 2, kind: input, shape index: {}]   ;;  %s563_s3 = inlined_call_operand.vmem [shape: f32[2,2,7,7], index: 3, kind: output, shape index: {}]  }
   0x1   :  { %s515_s14 = smov 0  }
   0x2 LB: > { %s25_s15 = sadd.s32 1, %s483_s13  ;;  %p410_p0 = scmp.ge.s32.totalorder %s487_s14, 1  ;;  %s487_s14 = sphi %s515_s14, %s13_s14   ;;  %s483_s13 = sphi %s513_s13, %s565_s13   ;;  %s479_s12 = sphi %s511_s12, %s564_s12  }
   0x3   : > { %p27_p1 = scmp.ge.s32.totalorder %s25_s15, 2  ;;  %p156_p2 = scmp.lt.s32.totalorder %s487_s14, 3 }
   0x5   : > { %s567_s15 = smov (%p27_p1, %s25_s15), 0  ;;  %p157_p3 = pnand %p410_p0, %p156_p2 }
   0x6   : > { %v223_v0 = vld [vmem:[%s561_s1] sm:$0x7f] (!%p157_p3)  ;;  %vm227_vm0 = vcmask (!%p157_p3), 64512   ;;  %v224_v1 = vld [vmem:[%s561_s1 + $0x8] sm:$0x7f] (!%p157_p3)  ;;  %v489_v2 = vmov (!%p157_p3), 0.0  }
   0x7   : > { %160 = sbr.rel (%p157_p3) target bundleno = 237 (0xed), region = 32  ;;  %427 = vmatprep.subr.bf16.mxu0 (!%p157_p3), %v489_v2  ;;  %433 = vmatprep.subr.bf16.mxu1 (!%p157_p3), %v489_v2  ;;  %v225_v3 = vpack.c.bf16 (!%p157_p3), %v223_v0, %v223_v0  ;;  %v226_v4 = vpack.c.bf16 (!%p157_p3), %v224_v1, %v224_v1  ;;  %p186_p4 = scmp.lt.s32.totalorder (!%p157_p3), %s479_s12, 1  ;;  %vm490_vm1 = vmmov (!%p157_p3), 0   ;;  %v415_v7 = vld [vmem:[%s562_s2] ss:$0 sm:$0xff] (!%p157_p3)  ;;  %vm320_vm2 = vcmask (!%p157_p3), 55296  }
   0x8   : > { %429 = vmatprep.mubr.msk.bf16.mxu0 (!%p157_p3), %vm490_vm1, %v489_v2  ;;  %435 = vmatprep.mubr.msk.bf16.mxu1 (!%p157_p3), %vm490_vm1, %v489_v2  ;;  %v416_v8 = vld [vmem:[%s562_s2 + $0x1] ss:$0 sm:$0xff] (!%p157_p3) }
   0x9   : > { %v232_v5 = vsel (!%p157_p3), %vm227_vm0, %v225_v3, 0  ;;  %v278_v6 = vsel (!%p157_p3), %vm227_vm0, %v226_v4, 0 }
   0xa   : > { %428 = vmatpush3.bf16.xpose.msra.mxu0 (!%p157_p3), %v232_v5  ;;  %434 = vmatpush3.bf16.xpose.msra.mxu1 (!%p157_p3), %v278_v6 }
   0xe   : > { %s569_s12 = smov (!%p186_p4, %s479_s12), 1 }
   0xf   : > { %s421_s20 = sshll.u32 %s569_s12, 4 }
  0x10   : > { %s193_s27 = scalar_lea.vmem %s560_s0, %s421_s20  ;;  %s201_s30 = scalar_lea.vmem %s563_s3, %s421_s20 }
  0x11   : > { %v203_v9 = vld [vmem:[%s193_s27] sm:$0x7f]  ;;  %v204_v10 = vld [vmem:[%s193_s27 + $0x8] sm:$0x7f] }
  0x12   : > { %v219_v11 = vadd.f32 %v415_v7, %v203_v9  ;;  %v220_v12 = vadd.f32 %v416_v8, %v204_v10 }
  0x14   : > { %v221_v13 = vpack.c.bf16 %v219_v11, %v219_v11  ;;  %v222_v14 = vpack.c.bf16 %v220_v12, %v220_v12 }
  0x16   : > { %430 = vmatmul.mubr.msk.bf16.vlgmr.msra.gmra.mrb[0].mxu0 %vm227_vm0, %v221_v13  ;;  %436 = vmatmul.mubr.msk.bf16.vlgmr.msra.gmra.mrb[0].mxu1 %vm227_vm0, %v222_v14 }
  0xe9   : > { %v268_v15 = vpop.f32.mrb[0].mxu0  ;;  %v314_v16 = vpop.f32.mrb[0].mxu1 }
  0xea   : > { %321 = vst.msk [vmem:[%s201_s30] sm:$0x7f] %vm320_vm2, %v268_v15  ;;  %322 = vst.msk [vmem:[%s201_s30 + $0x8] sm:$0x7f] %vm320_vm2, %v314_v16  ;;  %v431_v17 = vpop.f32.mrb[1].mxu0  ;;  %v437_v18 = vpop.f32.mrb[1].mxu1 }
  0xeb   : > { %v271_v19 = vpop.f32.mrb[2].mxu0  ;;  %v317_v20 = vpop.f32.mrb[2].mxu1 }
  0xec   : > { %v432_v21 = vpop.f32.mrb[3].mxu0  ;;  %v438_v22 = vpop.f32.mrb[3].mxu1 }
  0xed PF: > { %s13_s14 = sadd.s32 1, %s487_s14   ;;  %s564_s12 = smov %s483_s13 }
  0xee   : > { %p10_p5 = scmp.ge.s32.totalorder %s13_s14, 4   ;;  %s565_s13 = smov %s567_s15 }
  0xf0   :  { %12 = sbr.rel (!%p10_p5) target bundleno = 2 (0x2), region = 62 }

// kernel: conformer_forward.32
= control target key start
LH: loop header
LB: loop body
LE: loop exit
PB: predicated region body
PF: predicated region fallthrough
CT: control target
= control target key end

     0   :  { %v99_v0 = vmov 0.0   ;;  %vm100_vm0 = vmmov 0   ;;  %vm33_vm1 = vcmask 130048   ;;  %vm79_vm2 = vcmask 128000   ;;  %s139_s1 = inlined_call_operand.vmem [shape: bf16[16,16], index: 1, kind: input, shape index: {}]   ;;  %s140_s0 = inlined_call_operand.vmem [shape: f32[14,16], index: 0, kind: input, shape index: {}]   ;;  %s141_s2 = inlined_call_operand.vmem [shape: f32[1,16], index: 2, kind: input, shape index: {}]   ;;  %s142_s3 = inlined_call_operand.vmem [shape: f32[14,16], index: 3, kind: output, shape index: {}]  }
   0x1   :  { %90 = vmatprep.subr.bf16.mxu0 %v99_v0  ;;  %v98_v1 = vld [vmem:[%s139_s1] sm:$0xff]   ;;  %92 = vmatprep.mubr.msk.bf16.mxu0 %vm100_vm0, %v99_v0  ;;  %v16_v3 = vld [vmem:[%s140_s0 + $0x8] sm:$0x3f] }
   0x2   :  { %v15_v2 = vld [vmem:[%s140_s0] sm:$0xff]  ;;  %91 = vmatpush3.bf16.msra.mxu0 %v98_v1 }
   0x3   :  { %v17_v4 = vpack.c.bf16 %v16_v3, %v15_v2  ;;  %v85_v5 = vld [vmem:[%s141_s2] ss:$0 sm:$0xff] }
   0x5   :  { %93 = vmatmul.mubr.msk.bf16.vlgmr.msra.gmra.mrb[0].mxu0 %vm33_vm1, %v17_v4 }
  0xd8   :  { %v71_v6 = vpop.f32.mrb[0].mxu0 }
  0xd9   :  { %v72_v7 = vadd.f32 %v85_v5, %v71_v6  ;;  %v94_v8 = vpop.f32.mrb[1].mxu0 }
  0xda   :  { %v74_v9 = vpop.f32.mrb[2].mxu0 }
  0xdb   :  { %78 = vst.msk [vmem:[%s142_s3] sm:$0xff] %vm33_vm1, %v72_v7  ;;  %v75_v10 = vadd.f32 %v85_v5, %v74_v9  ;;  %v95_v11 = vpop.f32.mrb[3].mxu0 }
  0xdd   :  { %80 = vst.msk [vmem:[%s142_s3 + $0x8] sm:$0x3f] %vm79_vm2, %v75_v10 }

// kernel: conformer_forward.31
= control target key start
LH: loop header
LB: loop body
LE: loop exit
PB: predicated region body
PF: predicated region fallthrough
CT: control target
= control target key end

     0   :  { %s855_s18 = smov 0   ;;  %s857_s19 = smov 0   ;;  %s922_s0 = inlined_call_operand.vmem [shape: f32[2,2,7,8], index: 0, kind: input, shape index: {}]   ;;  %s923_s1 = inlined_call_operand.vmem [shape: f32[2,2,7,8], index: 1, kind: input, shape index: {}]   ;;  %s924_s2 = inlined_call_operand.vmem [shape: f32[2,2,7,8], index: 2, kind: input, shape index: {}]   ;;  %s925_s3 = inlined_call_operand.vmem [shape: f32[2,2,7,7], index: 3, kind: input, shape index: {}]   ;;  %s926_s4 = inlined_call_operand.vmem [shape: f32[2,1,8], index: 4, kind: input, shape index: {}]   ;;  %s927_s5 = inlined_call_operand.vmem [shape: f32[2,2,7,8], index: 5, kind: output, shape index: {}]  }
   0x1   :  { %s859_s20 = smov 0  }
   0x2 LB: > { %s27_s21 = sadd.s32 1, %s816_s19  ;;  %p707_p0 = scmp.ge.s32.totalorder %s820_s20, 1  ;;  %s820_s20 = sphi %s859_s20, %s15_s20   ;;  %s816_s19 = sphi %s857_s19, %s929_s19   ;;  %s812_s18 = sphi %s855_s18, %s928_s18  }
   0x3   : > { %p29_p1 = scmp.ge.s32.totalorder %s27_s21, 2  ;;  %p241_p2 = scmp.lt.s32.totalorder %s820_s20, 3 }
   0x5   : > { %s931_s21 = smov (%p29_p1, %s27_s21), 0  ;;  %p242_p3 = pnand %p707_p0, %p241_p2 }
   0x6   : > { %p293_p4 = scmp.lt.s32.totalorder (!%p242_p3), %s812_s18, 1  ;;  %v822_v0 = vmov (!%p242_p3), 0.0   ;;  %vm823_vm0 = vmmov (!%p242_p3), 0   ;;  %vm354_vm1 = vcmask (!%p242_p3), 64512   ;;  %v718_v1 = vld [vmem:[%s926_s4] ss:$0 sm:$0xff] (!%p242_p3) }
   0x7   : > { %245 = sbr.rel (%p242_p3) target bundleno = 779 (0x30b), region = 40  ;;  %739 = vmatprep.subr.bf16.mxu0 (!%p242_p3), %v822_v0  ;;  %745 = vmatprep.subr.bf16.mxu1 (!%p242_p3), %v822_v0  ;;  %v719_v2 = vld [vmem:[%s926_s4 + $0x1] ss:$0 sm:$0xff] (!%p242_p3)  ;;  %vm449_vm2 = vcmask (!%p242_p3), 55296   ;;  %vm482_vm3 = vcmask (!%p242_p3), 1042432   ;;  %vm483_vm4 = vcmask (!%p242_p3), 1043456  }
   0x8   : > { %741 = vmatprep.mubr.msk.bf16.mxu0 (!%p242_p3), %vm823_vm0, %v822_v0  ;;  %747 = vmatprep.mubr.msk.bf16.mxu1 (!%p242_p3), %vm823_vm0, %v822_v0  ;;  %v824_v43 = vmov (!%p242_p3), 65535   ;;  %vm478_vm5 = vcmask (!%p242_p3), 56320   ;;  %vm575_vm6 = vcmask (!%p242_p3), 63488  }
   0x9   : > { %v484_v44 = vsel (!%p242_p3), %vm482_vm3, 4294967295, %v824_v43 }
   0xa   : > { %v485_v45 = vsel (!%p242_p3), %vm483_vm4, %v484_v44, 0 }
   0xe   : > { %s933_s18 = smov (!%p293_p4, %s812_s18), 1 }
   0xf   : > { %s875_s22 = sshll.u32 %s933_s18, 4 }
  0x10   : > { %s305_s25 = scalar_lea.vmem %s923_s1, %s875_s22  ;;  %s300_s28 = scalar_lea.vmem %s922_s0, %s875_s22 }
  0x11   : > { %v348_v3 = vld [vmem:[%s305_s25] sm:$0x7f]  ;;  %v349_v4 = vld [vmem:[%s305_s25 + $0x8] sm:$0x7f]  ;;  %s318_s10 = scalar_lea.vmem %s925_s3, %s875_s22  ;;  %s310_s13 = scalar_lea.vmem %s924_s2, %s875_s22 }
  0x12   : > { %v328_v5 = vld [vmem:[%s300_s28] sm:$0x7f]  ;;  %v350_v6 = vpack.c.bf16 %v348_v3, %v348_v3  ;;  %v351_v7 = vpack.c.bf16 %v349_v4, %v349_v4  ;;  %v329_v8 = vld [vmem:[%s300_s28 + $0x8] sm:$0x7f]  ;;  %s326_s16 = scalar_lea.vmem %s927_s5, %s875_s22 }
  0x13   : > { %v344_v11 = vadd.f32 %v718_v1, %v328_v5  ;;  %v345_v12 = vadd.f32 %v719_v2, %v329_v8  ;;  %v352_v15 = vld [vmem:[%s318_s10] sm:$0x7f]  ;;  %v353_v16 = vld [vmem:[%s318_s10 + $0x8] sm:$0x7f] }
  0x14   : > { %v359_v9 = vsel %vm354_vm1, %v350_v6, 0  ;;  %v405_v10 = vsel %vm354_vm1, %v351_v7, 0  ;;  %v474_v41 = vld [vmem:[%s310_s13] sm:$0x7f]  ;;  %v475_v47 = vld [vmem:[%s310_s13 + $0x8] sm:$0x7f] }
  0x15   : > { %740 = vmatpush3.bf16.xpose.msra.mxu0 %v359_v9  ;;  %746 = vmatpush3.bf16.xpose.msra.mxu1 %v405_v10  ;;  %v346_v13 = vpack.c.bf16 %v344_v11, %v344_v11  ;;  %v347_v14 = vpack.c.bf16 %v345_v12, %v345_v12  ;;  %v476_v42 = vpack.c.bf16 %v474_v41, %v474_v41 }
  0x16   : > { %751 = vmatprep.subr.bf16.mxu0 %v822_v0  ;;  %757 = vmatprep.subr.bf16.mxu1 %v822_v0  ;;  %v477_v48 = vpack.c.bf16 %v475_v47, %v475_v47 }
  0x17   : > { %v487_v46 = vand.u32 %v485_v45, %v476_v42 }
  0x18   : > { %v533_v49 = vand.u32 %v485_v45, %v477_v48 }
  0x1c   : > { %742 = vmatmul.mubr.msk.bf16.vlgmr.msra.gmra.mrb[0].mxu0 %vm354_vm1, %v346_v13  ;;  %748 = vmatmul.mubr.msk.bf16.vlgmr.msra.gmra.mrb[0].mxu1 %vm354_vm1, %v347_v14 }
  0x1d   : > { %753 = vmatprep.mubr.msk.bf16.mxu0 %vm823_vm0, %v822_v0  ;;  %759 = vmatprep.mubr.msk.bf16.mxu1 %vm823_vm0, %v822_v0 }
  0x1e   : > { %752 = vmatpush3.bf16.msra.mxu0 %v487_v46  ;;  %758 = vmatpush3.bf16.msra.mxu1 %v533_v49 }
  0xef   : > { %v395_v17 = vpop.f32.mrb[0].mxu0  ;;  %v441_v18 = vpop.f32.mrb[0].mxu1 }
  0xf0   : > { %v396_v19 = vadd.f32 %v395_v17, %v352_v15  ;;  %v743_v20 = vpop.f32.mrb[1].mxu0  ;;  %v442_v21 = vadd.f32 %v441_v18, %v353_v16  ;;  %v749_v22 = vpop.f32.mrb[1].mxu1 }
  0xf1   : > { %v398_v23 = vpop.f32.mrb[2].mxu0  ;;  %v444_v24 = vpop.f32.mrb[2].mxu1 }
  0xf2   : > { %v447_v25 = vmul.f32 0.25, %v396_v19  ;;  %v448_v26 = vmul.f32 0.25, %v442_v21  ;;  %v744_v27 = vpop.f32.mrb[3].mxu0  ;;  %v750_v28 = vpop.f32.mrb[3].mxu1 }
  0xf4   : > { %v450_v29 = vsel %vm449_vm2, %v447_v25, -inf  ;;  %v453_v30 = vsel %vm449_vm2, %v448_v26, -inf }
  0xf5   : > { %451 = vmax.xlane.f32.xlu0 %v450_v29 }
  0xf9   : > { %454 = vmax.xlane.f32.xlu0 %v453_v30 }
 0x182   : > { %v452_v31 = vpop.xlane.xlu0 %451 }
 0x183   : > { %v456_v32 = vsub.f32 %v447_v25, %v452_v31 }
 0x185   : > { %v458_v33 = vmul.f32 1.442695, %v456_v32 }
 0x186   : > { %v455_v34 = vpop.xlane.xlu0 %454 }
 0x187   : > { %790 = vpow2.f32 %v458_v33  ;;  %v457_v35 = vsub.f32 %v448_v26, %v455_v34 }
 0x189   : > { %v460_v36 = vmul.f32 1.442695, %v457_v35 }
 0x18b   : > { %792 = vpow2.f32 %v460_v36 }
 0x191   : > { %v791_v37 = vpop.eup %790 }
 0x192   : > { %v462_v38 = vsel %vm449_vm2, %v791_v37, 0.0 }
 0x193   : > { %463 = vadd.xlane.f32.xlu1 %v462_v38 }
 0x195   : > { %v793_v39 = vpop.eup %792 }
 0x196   : > { %v465_v40 = vsel %vm449_vm2, %v793_v39, 0.0 }
 0x197   : > { %466 = vadd.xlane.f32.xlu1 %v465_v40 }
 0x220   : > { %v464_v50 = vpop.xlane.xlu1 %463 }
 0x221   : > { %794 = vrcp.f32 %v464_v50 }
 0x224   : > { %v467_v51 = vpop.xlane.xlu1 %466 }
 0x225   : > { %796 = vrcp.f32 %v467_v51 }
 0x22b   : > { %v795_v52 = vpop.eup %794 }
 0x22c   : > { %v470_v53 = vmul.f32 %v795_v52, %v791_v37 }
 0x22e   : > { %v472_v54 = vpack.c.bf16 %v470_v53, %v470_v53 }
 0x22f   : > { %v797_v55 = vpop.eup %796 }
 0x230   : > { %v471_v56 = vmul.f32 %v797_v55, %v793_v39  ;;  %754 = vmatmul.mubr.msk.bf16.vlgmr.msra.gmra.mrb[4].mxu0 %vm478_vm5, %v472_v54 }
 0x232   : > { %v473_v57 = vpack.c.bf16 %v471_v56, %v471_v56 }
 0x234   : > { %760 = vmatmul.mubr.msk.bf16.vlgmr.msra.gmra.mrb[4].mxu1 %vm478_vm5, %v473_v57 }
 0x303   : > { %v523_v58 = vpop.f32.mrb[4].mxu0 }
 0x304   : > { %576 = vst.msk [vmem:[%s326_s16] sm:$0x7f] %vm575_vm6, %v523_v58  ;;  %v755_v59 = vpop.f32.mrb[5].mxu0 }
 0x305   : > { %v526_v60 = vpop.f32.mrb[6].mxu0 }
 0x306   : > { %v756_v61 = vpop.f32.mrb[7].mxu0 }
 0x307   : > { %v569_v62 = vpop.f32.mrb[4].mxu1 }
 0x308   : > { %577 = vst.msk [vmem:[%s326_s16 + $0x8] sm:$0x7f] %vm575_vm6, %v569_v62  ;;  %v761_v63 = vpop.f32.mrb[5].mxu1 }
 0x309   : > { %v572_v0 = vpop.f32.mrb[6].mxu1 }
 0x30a   : > { %v762_v1 = vpop.f32.mrb[7].mxu1 }
 0x30b PF: > { %s15_s20 = sadd.s32 1, %s820_s20   ;;  %s928_s18 = smov %s816_s19 }
 0x30c   : > { %p12_p5 = scmp.ge.s32.totalorder %s15_s20, 4   ;;  %s929_s19 = smov %s931_s21 }
 0x30e   :  { %14 = sbr.rel (!%p12_p5) target bundleno = 2 (0x2), region = 79 }

// kernel: conformer_forward.33
= control target key start
LH: loop header
LB: loop body
LE: loop exit
PB: predicated region body
PF: predicated region fallthrough
CT: control target
= control target key end

     0   :  { %vm31_vm0 = vcmask 130048   ;;  %vm35_vm1 = vcmask 128000   ;;  %v250_v14 = vmov 0.0   ;;  %vm251_vm2 = vmmov 0   ;;  %s330_s0 = inlined_call_operand.vmem [shape: f32[14,16], index: 0, kind: input, shape index: {}]   ;;  %s331_s3 = inlined_call_operand.vmem [shape: bf16[16,16], index: 3, kind: input, shape index: {}]   ;;  %s332_s5 = inlined_call_operand.vmem [shape: bf16[16,16], index: 5, kind: input, shape index: {}]   ;;  %s333_s1 = inlined_call_operand.vmem [shape: f32[1,16], index: 1, kind: input, shape index: {}]   ;;  %s334_s2 = inlined_call_operand.vmem [shape: f32[1,16], index: 2, kind: input, shape index: {}]   ;;  %s335_s6 = inlined_call_operand.vmem [shape: f32[1,16], index: 6, kind: input, shape index: {}]   ;;  %s336_s4 = inlined_call_operand.vmem [shape: f32[1,16], index: 4, kind: input, shape index: {}]   ;;  %s337_s7 = inlined_call_operand.vmem [shape: f32[14,16], index: 7, kind: output, shape index: {}]  }
   0x1   :  { %v27_v0 = vld [vmem:[%s330_s0] sm:$0xff]  ;;  %v28_v1 = vld [vmem:[%s330_s0 + $0x8] sm:$0x3f]  ;;  %222 = vmatprep.subr.bf16.mxu0 %v250_v14  ;;  %228 = vmatprep.subr.bf16.mxu1 %v250_v14 }
   0x2   :  { %v32_v2 = vsel %vm31_vm0, %v27_v0, 0.0  ;;  %v36_v3 = vsel %vm35_vm1, %v28_v1, 0.0  ;;  %v236_v15 = vld [vmem:[%s331_s3] sm:$0xff]   ;;  %224 = vmatprep.mubr.msk.bf16.mxu0 %vm251_vm2, %v250_v14  ;;  %230 = vmatprep.mubr.msk.bf16.mxu1 %vm251_vm2, %v250_v14 }
   0x3   :  { %33 = vadd.xlane.f32.xlu0 %v32_v2  ;;  %v237_v16 = vld [vmem:[%s332_s5] sm:$0xff]   ;;  %223 = vmatpush3.bf16.msra.mxu0 %v236_v15 }
   0x4   :  { %229 = vmatpush3.bf16.msra.mxu1 %v237_v16  ;;  %v210_v25 = vld [vmem:[%s333_s1] ss:$0 sm:$0xff] }
   0x5   :  { %v211_v29 = vld [vmem:[%s334_s2] ss:$0 sm:$0xff] }
   0x6   :  { %v215_v34 = vld [vmem:[%s335_s6] ss:$0 sm:$0xff] }
   0x7   :  { %37 = vadd.xlane.f32.xlu0 %v36_v3  ;;  %v212_v53 = vld [vmem:[%s336_s4] ss:$0 sm:$0xff] }
  0x90   :  { %v34_v4 = vpop.xlane.xlu0 %33 }
  0x91   :  { %v40_v5 = vmul.f32 0.0625, %v34_v4 }
  0x93   :  { %v42_v6 = vsub.f32 %v27_v0, %v40_v5 }
  0x94   :  { %v38_v7 = vpop.xlane.xlu0 %37 }
  0x95   :  { %v41_v8 = vmul.f32 0.0625, %v38_v7  ;;  %v44_v9 = vmul.f32 %v42_v6, %v42_v6 }
  0x97   :  { %v43_v10 = vsub.f32 %v28_v1, %v41_v8  ;;  %v46_v11 = vsel %vm31_vm0, %v44_v9, 0.0 }
  0x98   :  { %47 = vadd.xlane.f32.xlu1 %v46_v11 }
  0x99   :  { %v45_v12 = vmul.f32 %v43_v10, %v43_v10 }
  0x9b   :  { %v49_v13 = vsel %vm35_vm1, %v45_v12, 0.0 }
  0x9c   :  { %50 = vadd.xlane.f32.xlu1 %v49_v13 }
 0x125   :  { %v48_v17 = vpop.xlane.xlu1 %47 }
 0x126   :  { %v52_v18 = vmul.f32 0.0625, %v48_v17 }
 0x128   :  { %v54_v19 = vadd.f32 1e-05, %v52_v18 }
 0x129   :  { %v51_v20 = vpop.xlane.xlu1 %50 }
 0x12a   :  { %238 = vrsqrt.f32 %v54_v19  ;;  %v53_v21 = vmul.f32 0.0625, %v51_v20 }
 0x12c   :  { %v55_v22 = vadd.f32 1e-05, %v53_v21 }
 0x12e   :  { %240 = vrsqrt.f32 %v55_v22 }
 0x134   :  { %v239_v23 = vpop.eup %238 }
 0x135   :  { %v58_v24 = vmul.f32 %v239_v23, %v42_v6 }
 0x137   :  { %v66_v28 = vmul.f32 %v210_v25, %v58_v24 }
 0x138   :  { %v241_v26 = vpop.eup %240 }
 0x139   :  { %v59_v27 = vmul.f32 %v241_v26, %v43_v10  ;;  %v74_v31 = vadd.f32 %v211_v29, %v66_v28 }
 0x13b   :  { %v67_v30 = vmul.f32 %v210_v25, %v59_v27 }
 0x13d   :  { %v75_v32 = vadd.f32 %v211_v29, %v67_v30 }
 0x13f   :  { %v76_v33 = vpack.c.bf16 %v75_v32, %v74_v31 }
 0x141   :  { %225 = vmatmul.mubr.msk.bf16.vlgmr.msra.gmra.mrb[0].mxu0 %vm31_vm0, %v76_v33  ;;  %231 = vmatmul.mubr.msk.bf16.vlgmr.msra.gmra.mrb[0].mxu1 %vm31_vm0, %v76_v33 }
 0x214   :  { %v129_v35 = vpop.f32.mrb[0].mxu0  ;;  %v185_v36 = vpop.f32.mrb[0].mxu1 }
 0x215   :  { %v186_v37 = vadd.f32 %v215_v34, %v185_v36  ;;  %v226_v38 = vpop.f32.mrb[1].mxu0  ;;  %v232_v39 = vpop.f32.mrb[1].mxu1  ;;  %v130_v54 = vadd.f32 %v212_v53, %v129_v35 }
 0x216   :  { %v132_v40 = vpop.f32.mrb[2].mxu0  ;;  %v188_v41 = vpop.f32.mrb[2].mxu1 }
 0x217   :  { %v192_v42 = vsub.f32 0.0, %v186_v37  ;;  %v189_v43 = vadd.f32 %v215_v34, %v188_v41  ;;  %v227_v44 = vpop.f32.mrb[3].mxu0  ;;  %v233_v45 = vpop.f32.mrb[3].mxu1  ;;  %v133_v57 = vadd.f32 %v212_v53, %v132_v40 }
 0x219   :  { %v194_v46 = vmul.f32 1.442695, %v192_v42  ;;  %v193_v47 = vsub.f32 0.0, %v189_v43 }
 0x21b   :  { %242 = vpow2.f32 %v194_v46  ;;  %v196_v48 = vmul.f32 1.442695, %v193_v47 }
 0x21d   :  { %244 = vpow2.f32 %v196_v48 }
 0x225   :  { %v243_v49 = vpop.eup %242 }
 0x226   :  { %v198_v50 = vadd.f32 1.0, %v243_v49 }
 0x227   :  { %v245_v51 = vpop.eup %244 }
 0x228   :  { %246 = vrcp.f32 %v198_v50  ;;  %v199_v52 = vadd.f32 1.0, %v245_v51 }
 0x22a   :  { %248 = vrcp.f32 %v199_v52 }
 0x232   :  { %v247_v55 = vpop.eup %246 }
 0x233   :  { %v202_v56 = vmul.f32 %v247_v55, %v130_v54 }
 0x234   :  { %v249_v58 = vpop.eup %248 }
 0x235   :  { %204 = vst.msk [vmem:[%s337_s7] sm:$0xff] %vm31_vm0, %v202_v56  ;;  %v203_v59 = vmul.f32 %v249_v58, %v133_v57 }
 0x237   :  { %205 = vst.msk [vmem:[%s337_s7 + $0x8] sm:$0x3f] %vm35_vm1, %v203_v59 }

// kernel: conformer_forward.36
= control target key start
LH: loop header
LB: loop body
LE: loop exit
PB: predicated region body
PF: predicated region fallthrough
CT: control target
= control target key end

     0   :  { %vm18_vm0 = vcmask 130048   ;;  %vm22_vm1 = vcmask 128000   ;;  %s119_s0 = inlined_call_operand.vmem [shape: f32[14,16], index: 0, kind: input, shape index: {}]   ;;  %s120_s1 = inlined_call_operand.vmem [shape: f32[1,16], index: 1, kind: input, shape index: {}]   ;;  %s121_s2 = inlined_call_operand.vmem [shape: f32[1,16], index: 2, kind: input, shape index: {}]   ;;  %s122_s3 = inlined_call_operand.vmem [shape: f32[14,16], index: 3, kind: output, shape index: {}]  }
   0x1   :  { %v14_v0 = vld [vmem:[%s119_s0] sm:$0xff]  ;;  %v15_v1 = vld [vmem:[%s119_s0 + $0x8] sm:$0x3f] }
   0x2   :  { %v19_v2 = vsel %vm18_vm0, %v14_v0, 0.0  ;;  %v23_v3 = vsel %vm22_vm1, %v15_v1, 0.0  ;;  %v69_v21 = vld [vmem:[%s120_s1] ss:$0 sm:$0xff] }
   0x3   :  { %20 = vadd.xlane.f32.xlu0 %v19_v2  ;;  %v70_v23 = vld [vmem:[%s121_s2] ss:$0 sm:$0xff] }
   0x7   :  { %24 = vadd.xlane.f32.xlu0 %v23_v3 }
  0x90   :  { %v21_v4 = vpop.xlane.xlu0 %20 }
  0x91   :  { %v27_v5 = vmul.f32 0.0625, %v21_v4 }
  0x93   :  { %v29_v6 = vsub.f32 %v14_v0, %v27_v5 }
  0x94   :  { %v25_v7 = vpop.xlane.xlu0 %24 }
  0x95   :  { %v28_v8 = vmul.f32 0.0625, %v25_v7  ;;  %v31_v9 = vmul.f32 %v29_v6, %v29_v6 }
  0x97   :  { %v30_v10 = vsub.f32 %v15_v1, %v28_v8  ;;  %v33_v11 = vsel %vm18_vm0, %v31_v9, 0.0 }
  0x98   :  { %34 = vadd.xlane.f32.xlu1 %v33_v11 }
  0x99   :  { %v32_v12 = vmul.f32 %v30_v10, %v30_v10 }
  0x9b   :  { %v36_v13 = vsel %vm22_vm1, %v32_v12, 0.0 }
  0x9c   :  { %37 = vadd.xlane.f32.xlu1 %v36_v13 }
 0x125   :  { %v35_v14 = vpop.xlane.xlu1 %34 }
 0x126   :  { %v39_v15 = vmul.f32 0.0625, %v35_v14 }
 0x128   :  { %v41_v16 = vadd.f32 1e-05, %v39_v15 }
 0x129   :  { %v38_v17 = vpop.xlane.xlu1 %37 }
 0x12a   :  { %71 = vrsqrt.f32 %v41_v16  ;;  %v40_v18 = vmul.f32 0.0625, %v38_v17 }
 0x12c   :  { %v42_v19 = vadd.f32 1e-05, %v40_v18 }
 0x12e   :  { %73 = vrsqrt.f32 %v42_v19 }
 0x134   :  { %v72_v20 = vpop.eup %71 }
 0x135   :  { %v45_v22 = vmul.f32 %v72_v20, %v29_v6 }
 0x137   :  { %v53_v24 = vmul.f32 %v69_v21, %v45_v22 }
 0x138   :  { %v74_v25 = vpop.eup %73 }
 0x139   :  { %v61_v26 = vadd.f32 %v70_v23, %v53_v24  ;;  %v46_v27 = vmul.f32 %v74_v25, %v30_v10 }
 0x13b   :  { %63 = vst.msk [vmem:[%s122_s3] sm:$0xff] %vm18_vm0, %v61_v26  ;;  %v54_v28 = vmul.f32 %v69_v21, %v46_v27 }
 0x13d   :  { %v62_v29 = vadd.f32 %v70_v23, %v54_v28 }
 0x13f   :  { %64 = vst.msk [vmem:[%s122_s3 + $0x8] sm:$0x3f] %vm22_vm1, %v62_v29 }

// kernel: conformer_forward.47
= control target key start
LH: loop header
LB: loop body
LE: loop exit
PB: predicated region body
PF: predicated region fallthrough
CT: control target
= control target key end

     0   :  { %9 = vsyncpa [#allocation3], 0  ;;  %vm17_vm0 = vcmask 129024   ;;  %v214_v2 = vmov 0.0|0.0   ;;  %vm215_vm1 = vmmov 0   ;;  %v216_v4 = vmov 0.0   ;;  %s275_s0 = inlined_call_operand.vmem [shape: f32[2,7,16], index: 0, kind: input, shape index: {}]   ;;  %s276_s1 = inlined_call_operand.vmem [shape: f32[16,5], index: 1, kind: input, shape index: {}]   ;;  %s277_s2 = inlined_call_operand.hbm [shape: f32[2,16], index: 2, kind: output, shape index: {0}]   ;;  %s278_s3 = inlined_call_operand.hbm [shape: f32[2,5], index: 3, kind: output, shape index: {1}]  }
   0x1   :  { %v42_v0 = vld [vmem:[%s276_s1] sm:$0xff]  ;;  %v43_v1 = vld [vmem:[%s276_s1 + $0x8] sm:$0xff]  ;;  %158 = vmatprep.subr.bf16.mxu0 %v214_v2  ;;  %155 = vmatprep.mubr.msk.f32.mxu0 %vm215_vm1, %v216_v4 }
   0x2   :  { %v159_v3 = vpack.c.bf16 %v43_v1, %v42_v0  ;;  %v15_v5 = vld [vmem:[%s275_s0] sm:$0x7f]  ;;  %v16_v6 = vld [vmem:[%s275_s0 + $0x8] sm:$0x7f] }
   0x3   :  { %v18_v7 = vsel %vm17_vm0, %v15_v5, 0.0  ;;  %v25_v8 = vsel %vm17_vm0, %v16_v6, 0.0 }
   0x4   :  { %10 = vsyncpa [#allocation5], 0  ;;  %160 = vmatpush3.bf16.msra.mxu0 %v159_v3  ;;  %v19_v9 = vrot.slane %v18_v7, 4  ;;  %v26_v10 = vrot.slane %v25_v8, 4  ;;  %vm37_vm2 = vcmask 1041409   ;;  %vm44_vm3 = vcmask 130048  }
   0x5   :  { %vm40_vm4 = vcmask 123904   ;;  %s217_s0 = smov [#allocation2]  }
   0x6   :  { %v20_v11 = vadd.f32 %v19_v9, %v18_v7  ;;  %v27_v12 = vadd.f32 %v26_v10, %v25_v8  ;;  %s125_s1 = sshll.u32 %s217_s0, 4  ;;  %s126_s1 = int_to_ptr.vmem [resolvable:$true] %s125_s1 }
   0x7   :  { %s166_s20 = scalar_lea.vmem %s126_s1, 32  ;;  %p171_p1 = scmp.lt.s32.totalorder %s126_s1, %s126_s1 }
   0x8   :  { %v21_v13 = vrot.slane %v20_v11, 2  ;;  %v28_v14 = vrot.slane %v27_v12, 2  ;;  %p167_p0 = scmp.ne.s32.totalorder %s126_s1, %s166_s20  ;;  %p172_p2 = scmp.lt.s32.totalorder %s166_s20, %s166_s20 }
   0xa   :  { %v22_v15 = vadd.f32 %v21_v13, %v20_v11  ;;  %v29_v16 = vadd.f32 %v28_v14, %v27_v12  ;;  %p173_p3 = por %p172_p2, %p171_p1 }
   0xc   :  { %v23_v17 = vrot.slane %v22_v15, 1  ;;  %v30_v18 = vrot.slane %v29_v16, 1  ;;  %p174_p4 = pnand %p173_p3, %p167_p0 }
   0xe   :  { %v24_v19 = vadd.f32 %v23_v17, %v22_v15  ;;  %v31_v20 = vadd.f32 %v30_v18, %v29_v16 }
  0x10   :  { %v33_v21 = vmul.f32 0.14285715, %v24_v19  ;;  %v34_v22 = vmul.f32 0.14285715, %v31_v20 }
  0x12   :  { %v38_v23 = vsel %vm37_vm2, %v34_v22, %v33_v21 }
  0x13   :  { %156 = vmatmul.mubr.msk.f32.vlgmr.msra.gmra.mrb[0].mxu0 %vm44_vm3, %v38_v23  ;;  %41 = vst.msk [vmem:[#allocation2] sm:$0x3] %vm40_vm4, %v38_v23 }
  0x14   :  { %177 = shalt.err (!%p174_p4)
}
  0x15   :  { %s178_s23 = scalar_lea.hbm %s277_s2, 32 }
  0x16   :  { %p179_p5 = scmp.ne.s32.totalorder %s277_s2, %s178_s23  ;;  %p182_p6 = scmp.lt.u32.totalorder %s178_s23, %s277_s2 }
  0x18   :  { %p184_p7 = pnand %p182_p6, %p179_p5 }
  0x1a   :  { %187 = shalt.err (!%p184_p7)
}
  0x1b   :  { %128 = dma.vmem_to_hbm [thread:$0]  %s126_s1, 32, %s277_s2, [#allocation3]   ;;  %vm117_vm5 = vcmask 33792  }
  0x1c   :  { %s218_s30 = smov [#allocation4]  }
  0x1d   :  { %s135_s4 = sshll.u32 %s218_s30, 4  ;;  %s136_s4 = int_to_ptr.vmem [resolvable:$true] %s135_s4 }
  0x1e   :  { %s188_s5 = scalar_lea.vmem %s136_s4, 32  ;;  %p193_p9 = scmp.lt.s32.totalorder %s136_s4, %s136_s4 }
  0x1f   :  { %p189_p8 = scmp.ne.s32.totalorder %s136_s4, %s188_s5  ;;  %p194_p10 = scmp.lt.s32.totalorder %s188_s5, %s188_s5 }
  0x21   :  { %p195_p11 = por %p194_p10, %p193_p9 }
  0x23   :  { %p196_p12 = pnand %p195_p11, %p189_p8 }
  0xe6   :  { %v113_v24 = vpop.f32.mrb[0].mxu0 }
  0xe7   :  { %118 = vst.msk [vmem:[#allocation4] sm:$0x3] %vm117_vm5, %v113_v24  ;;  %v157_v25 = vpop.f32.mrb[1].mxu0 }
  0xe8   :  { %199 = shalt.err (!%p196_p12)
}
  0xe9   :  { %s200_s8 = scalar_lea.hbm %s278_s3, 32 }
  0xea   :  { %p201_p13 = scmp.ne.s32.totalorder %s278_s3, %s200_s8  ;;  %p204_p0 = scmp.lt.u32.totalorder %s200_s8, %s278_s3 }
  0xec   :  { %p206_p1 = pnand %p204_p0, %p201_p13 }
  0xee   :  { %209 = shalt.err (!%p206_p1)
}
  0xef   :  { %138 = dma.vmem_to_hbm [thread:$0]  %s136_s4, 32, %s278_s3, [#allocation5]  }
  0xf0   :  { %210 = dma.done.wait [#allocation3], 32  }
  0xf1   :  { %211 = vsyncadd [#allocation3], 4294967264 }
  0xf2   :  { %212 = dma.done.wait [#allocation5], 32  }
  0xf3   :  { %213 = vsyncadd [#allocation5], 4294967264 }
  0xf4   :  { %145 = vsyncpa [#allocation3], 1 }
  0xf5   :  { %146 = vsyncpa [#allocation5], 1 }

// kernel: conformer_forward.34
= control target key start
LH: loop header
LB: loop body
LE: loop exit
PB: predicated region body
PF: predicated region fallthrough
CT: control target
= control target key end

     0   :  { %s637_s24 = smov 0   ;;  %s696_s0 = inlined_call_operand.vmem [shape: f32[2,13,16], index: 0, kind: input, shape index: {}]   ;;  %s697_s1 = inlined_call_operand.vmem [shape: f32[2,7,16], index: 1, kind: input, shape index: {}]   ;;  %s698_s2 = inlined_call_operand.vmem [shape: f32[7,16], index: 2, kind: input, shape index: {}]   ;;  %s699_s3 = inlined_call_operand.vmem [shape: f32[1,16], index: 3, kind: input, shape index: {}]   ;;  %s700_s4 = inlined_call_operand.vmem [shape: f32[1,16], index: 4, kind: input, shape index: {}]   ;;  %s701_s5 = inlined_call_operand.vmem [shape: bf16[16,16], index: 5, kind: input, shape index: {}]   ;;  %s702_s6 = inlined_call_operand.vmem [shape: f32[1,16], index: 6, kind: input, shape index: {}]   ;;  %s703_s7 = inlined_call_operand.vmem [shape: f32[2,7,16], index: 7, kind: output, shape index: {}]  }
   0x1 LB: > { %s540_s25 = sadd.s32 4294967295, %s593_s24   ;;  %p544_p0 = scmp.ge.s32.totalorder %s593_s24, 1  ;;  %s593_s24 = sphi %s637_s24, %s17_s24  }
   0x2   : > { %p246_p1 = scmp.lt.s32.totalorder %s593_s24, 3 }
   0x4   : > { %p247_p2 = pnand %p544_p0, %p246_p1 }
   0x5   : > { %v582_v0 = vld [vmem:[%s701_s5] sm:$0xff] (!%p247_p2)   ;;  %v595_v1 = vmov (!%p247_p2), 0.0   ;;  %p281_p3 = scmp.lt.s32.totalorder (!%p247_p2), %s540_s25, 1  ;;  %vm596_vm0 = vmmov (!%p247_p2), 0   ;;  %vm323_vm1 = vcmask (!%p247_p2), 1045504   ;;  %vm338_vm2 = vcmask (!%p247_p2), 1044480  }
   0x6   : > { %250 = sbr.rel (%p247_p2) target bundleno = 286 (0x11e), region = 48  ;;  %566 = vmatprep.subr.bf16.mxu0 (!%p247_p2), %v595_v1  ;;  %568 = vmatprep.mubr.msk.bf16.mxu0 (!%p247_p2), %vm596_vm0, %v595_v1  ;;  %v549_v2 = vld [vmem:[%s698_s2] ss:$0 sm:$0xff] (!%p247_p2)  ;;  %v550_v3 = vld [vmem:[%s698_s2 + $0x1] ss:$0 sm:$0xff] (!%p247_p2)  ;;  %vm353_vm3 = vcmask (!%p247_p2), 1043456  }
   0x7   : > { %567 = vmatpush3.bf16.msra.mxu0 (!%p247_p2), %v582_v0  ;;  %v551_v4 = vld [vmem:[%s698_s2 + $0x2] ss:$0 sm:$0xff] (!%p247_p2)  ;;  %v552_v5 = vld [vmem:[%s698_s2 + $0x3] ss:$0 sm:$0xff] (!%p247_p2)  ;;  %v553_v6 = vld [vmem:[%s698_s2 + $0x4] ss:$0 sm:$0xff] (!%p247_p2) }
   0x8   : > { %v554_v9 = vld [vmem:[%s698_s2 + $0x5] ss:$0 sm:$0xff] (!%p247_p2)  ;;  %v555_v22 = vld [vmem:[%s698_s2 + $0x6] ss:$0 sm:$0xff] (!%p247_p2)  ;;  %vm368_vm4 = vcmask (!%p247_p2), 1042432   ;;  %vm383_vm5 = vcmask (!%p247_p2), 1041408  }
   0x9   : > { %v556_v44 = vld [vmem:[%s699_s3] ss:$0 sm:$0xff] (!%p247_p2)  ;;  %vm427_vm6 = vcmask (!%p247_p2), 130048   ;;  %vm473_vm7 = vcmask (!%p247_p2), 129024  }
   0xa   : > { %v557_v46 = vld [vmem:[%s700_s4] ss:$0 sm:$0xff] (!%p247_p2) }
   0xb   : > { %v558_v56 = vld [vmem:[%s702_s6] ss:$0 sm:$0xff] (!%p247_p2) }
   0xd   : > { %s705_s25 = smov (!%p281_p3, %s540_s25), 1 }
   0xe   : > { %s563_s30 = sshll.u32 %s705_s25, 4  ;;  %s547_s29 = sshll.u32 %s705_s25, 3 }
   0xf   : > { %s285_s14 = scalar_lea.vmem %s696_s0, %s563_s30  ;;  %s289_s9 = scalar_lea.vmem %s697_s1, %s547_s29 }
  0x10   : > { %v295_v7 = vld [vmem:[%s285_s14] sm:$0xff]  ;;  %v296_v8 = vld [vmem:[%s285_s14 + $0x8] sm:$0x1f]  ;;  %s293_s14 = scalar_lea.vmem %s703_s7, %s547_s29 }
  0x11   : > { %v302_v10 = vmul.f32 %v549_v2, %v295_v7  ;;  %v309_v11 = vmul.f32 %v550_v3, %v295_v7  ;;  %v319_v12 = vmul.f32 %v551_v4, %v295_v7  ;;  %v320_v13 = vmul.f32 %v551_v4, %v296_v8  ;;  %v471_v58 = vld [vmem:[%s289_s9] sm:$0x7f] }
  0x12   : > { %v334_v14 = vmul.f32 %v552_v5, %v295_v7  ;;  %v335_v15 = vmul.f32 %v552_v5, %v296_v8  ;;  %v349_v16 = vmul.f32 %v553_v6, %v295_v7  ;;  %v350_v17 = vmul.f32 %v553_v6, %v296_v8 }
  0x13   : > { %v311_v18 = vrot.slane %v309_v11, 1  ;;  %v324_v19 = vrot.slane %v319_v12, 2  ;;  %v325_v20 = vrot.slane %v320_v13, 2  ;;  %v364_v21 = vmul.f32 %v554_v9, %v295_v7 }
  0x14   : > { %v339_v23 = vrot.slane %v334_v14, 3  ;;  %v340_v24 = vrot.slane %v335_v15, 3  ;;  %v354_v25 = vrot.slane %v349_v16, 4  ;;  %v355_v26 = vrot.slane %v350_v17, 4 }
  0x15   : > { %v313_v27 = vadd.f32 %v311_v18, %v302_v10  ;;  %v326_v28 = vsel %vm323_vm1, %v324_v19, %v325_v20  ;;  %v365_v29 = vmul.f32 %v554_v9, %v296_v8  ;;  %v369_v31 = vrot.slane %v364_v21, 5 }
  0x16   : > { %v341_v30 = vsel %vm338_vm2, %v339_v23, %v340_v24  ;;  %v379_v32 = vmul.f32 %v555_v22, %v295_v7  ;;  %v380_v33 = vmul.f32 %v555_v22, %v296_v8  ;;  %v356_v36 = vsel %vm353_vm3, %v354_v25, %v355_v26 }
  0x17   : > { %v328_v34 = vadd.f32 %v326_v28, %v313_v27  ;;  %v370_v35 = vrot.slane %v365_v29, 5 }
  0x18   : > { %v384_v37 = vrot.slane %v379_v32, 6  ;;  %v385_v38 = vrot.slane %v380_v33, 6 }
  0x19   : > { %v343_v39 = vadd.f32 %v341_v30, %v328_v34  ;;  %v371_v40 = vsel %vm368_vm4, %v369_v31, %v370_v35 }
  0x1a   : > { %v386_v42 = vsel %vm383_vm5, %v384_v37, %v385_v38 }
  0x1b   : > { %v358_v41 = vadd.f32 %v356_v36, %v343_v39 }
  0x1d   : > { %v373_v43 = vadd.f32 %v371_v40, %v358_v41 }
  0x1f   : > { %v388_v45 = vadd.f32 %v386_v42, %v373_v43 }
  0x21   : > { %v396_v47 = vmul.f32 %v556_v44, %v388_v45 }
  0x23   : > { %v404_v48 = vadd.f32 %v557_v46, %v396_v47 }
  0x25   : > { %v405_v49 = vsub.f32 0.0, %v404_v48 }
  0x27   : > { %v406_v50 = vmul.f32 1.442695, %v405_v49 }
  0x29   : > { %583 = vpow2.f32 %v406_v50 }
  0x33   : > { %v584_v51 = vpop.eup %583 }
  0x34   : > { %v408_v52 = vadd.f32 1.0, %v584_v51 }
  0x36   : > { %585 = vrcp.f32 %v408_v52 }
  0x40   : > { %v586_v53 = vpop.eup %585 }
  0x41   : > { %v410_v54 = vmul.f32 %v586_v53, %v404_v48 }
  0x43   : > { %v411_v55 = vpack.c.bf16 %v410_v54, %v410_v54 }
  0x45   : > { %569 = vmatmul.mubr.msk.bf16.vlgmr.msra.gmra.mrb[0].mxu0 %vm427_vm6, %v411_v55 }
 0x118   : > { %v465_v57 = vpop.f32.mrb[0].mxu0 }
 0x119   : > { %v466_v59 = vadd.f32 %v558_v56, %v465_v57  ;;  %v570_v60 = vpop.f32.mrb[1].mxu0 }
 0x11a   : > { %v468_v61 = vpop.f32.mrb[2].mxu0 }
 0x11b   : > { %v472_v62 = vadd.f32 %v471_v58, %v466_v59  ;;  %v571_v63 = vpop.f32.mrb[3].mxu0 }
 0x11d   : > { %474 = vst.msk [vmem:[%s293_s14] sm:$0x7f] %vm473_vm7, %v472_v62 }
 0x11e PF: > { %s17_s24 = sadd.s32 1, %s593_s24  }
 0x11f   : > { %p14_p4 = scmp.ge.s32.totalorder %s17_s24, 4  }
 0x121   :  { %16 = sbr.rel (!%p14_p4) target bundleno = 1 (0x1), region = 81 }

</bundles_post_ra>
